<compile_context>
chip_gen: v6e
topology: v6e:2x2x1
jax: 0.10.0
libtpu: 0.0.40
codegen_flags: <defaults>
</compile_context>

<pallas_src>
import jax
import jax.numpy as jnp
from jax.experimental import pallas as pl
from jax.experimental.pallas import tpu as pltpu


# ----------------------------------------------------------------------------
# Fused forward kernel (one grid step == one block of `bblk` packed images)
# ----------------------------------------------------------------------------
def _make_kernel(bblk):
    def kernel(p_ref, x_ref, sr1_ref, sc1_ref, sr2_ref, sc2_ref,
               bd1_ref, b1_ref, bd2_ref, b2_ref, o_ref):
        # p_ref (SMEM f32[3, 20]); per stage: [a, c, w2[0:9], b2[0:9]] with
        #   t   = relu(a*x + c)     (Conv1x1(1->1) + eval-mode BN, fused affine)
        #   k_j = w2[j]*t + b2[j]   (Conv1x1(1->9) kernel generator)
        #   out = relu(sum_j k_j * x[h+dy-1, w+dx-1])

        def involution_relu(x, stage, w):
            # x: (H, bblk*w) f32; image b occupies lanes [b*w, (b+1)*w).
            h_dim, l_dim = x.shape
            a = p_ref[stage, 0]
            c = p_ref[stage, 1]
            t = jnp.maximum(a * x + c, 0.0)
            # Per-image column index (w is a power of two); masks reproduce the
            # unfold zero padding at the left/right edge of every packed image.
            col = jax.lax.broadcasted_iota(jnp.int32, (h_dim, l_dim), 1) & (w - 1)
            x_l = jnp.where(col == 0,     0.0, jnp.roll(x,  1, axis=1))  # x[:, w-1]
            x_r = jnp.where(col == w - 1, 0.0, jnp.roll(x, -1, axis=1))  # x[:, w+1]
            cols = (x_l, x, x_r)
            zrow = jnp.zeros((1, l_dim), jnp.float32)
            acc = jnp.zeros((h_dim, l_dim), jnp.float32)
            for dy in range(3):
                for dx in range(3):
                    j = dy * 3 + dx
                    tap = cols[dx]
                    if dy == 0:     # x[h-1, :]: shift rows down, top row = zero pad
                        tap = jnp.concatenate([zrow, tap[:-1, :]], axis=0)
                    elif dy == 2:   # x[h+1, :]: shift rows up, bottom row = zero pad
                        tap = jnp.concatenate([tap[1:, :], zrow], axis=0)
                    kj = p_ref[stage, 2 + j] * t + p_ref[stage, 11 + j]
                    acc = acc + kj * tap
            return jnp.maximum(acc, 0.0)                 # model's ReLU, fused

        def maxpool2(y, sr_ref, sc_ref):
            # 2x2 / stride-2 max pool on the packed slab.  Per-image widths are
            # even, so window pairs never straddle an image boundary.
            m = jnp.maximum(y, jnp.roll(y, -1, axis=1))  # max(y[:, c], y[:, c+1])
            n = jnp.maximum(m, jnp.roll(m, -1, axis=0))  # 2x2 window max at even (r, c)
            # Stride-2 subsample via exact 0/1 selector matmuls (MXU is idle).
            n = jnp.dot(sr_ref[...], n, preferred_element_type=jnp.float32)
            return jnp.dot(n, sc_ref[...], preferred_element_type=jnp.float32)

        x = x_ref[0]                                     # (32, bblk*32)
        x = involution_relu(x, 0, 32)
        x = maxpool2(x, sr1_ref, sc1_ref)                # (16, bblk*16)
        x = involution_relu(x, 1, 16)
        x = maxpool2(x, sr2_ref, sc2_ref)                # (8, bblk*8)
        x = involution_relu(x, 2, 8)                     # (8, bblk*8)

        # FC head, batched over the whole image block.  Flatten + fc1 are folded
        # into block-diagonal weights bd1[h] (bblk*8, bblk*64), so the packed
        # lane layout never has to be transposed; fc2 is one block-diag matmul.
        acc = b1_ref[...]                                # (1, bblk*64)
        for h in range(8):
            acc = acc + jnp.dot(x[h:h + 1, :], bd1_ref[h],
                                preferred_element_type=jnp.float32)
        hidden = jnp.maximum(acc, 0.0)
        logits = jnp.dot(hidden, bd2_ref[...],
                         preferred_element_type=jnp.float32) + b2_ref[...]
        o_ref[0] = logits                                # (1, bblk*10)
    return kernel


# ----------------------------------------------------------------------------
# Packed constants (selectors / block-diagonal FC weights) for a given bblk
# ----------------------------------------------------------------------------
def _pack_params(params, bblk):
    f32 = jnp.float32

    def row_sel(h):                       # (h//2, h): picks even rows
        i = jnp.arange(h // 2)
        return jnp.zeros((h // 2, h), f32).at[i, 2 * i].set(1.0)

    def col_sel(l):                       # (l, l//2): picks even lanes
        k = jnp.arange(l // 2)
        return jnp.zeros((l, l // 2), f32).at[2 * k, k].set(1.0)

    eye_b = jnp.eye(bblk, dtype=f32)
    w1 = params["w1"]                                         # (64, 64)  [o, h*8+w]
    w1_hwo = jnp.transpose(w1.reshape(64, 8, 8), (1, 2, 0))   # (8, 8, 64) [h, w, o]
    # bd1[h, b*8+w, b'*64+o] = (b == b') * fc1.weight[o, h*8+w]
    bd1 = jnp.einsum("bc,hwo->hbwco", eye_b, w1_hwo).reshape(8, bblk * 8, bblk * 64)
    w2 = params["w2"]                                         # (10, 64)  [j, o]
    # bd2[b*64+o, b'*10+j] = (b == b') * fc2.weight[j, o]
    bd2 = jnp.einsum("bc,jo->bocj", eye_b, w2).reshape(bblk * 64, bblk * 10)
    return {
        "sr1": row_sel(32), "sc1": col_sel(bblk * 32),
        "sr2": row_sel(16), "sc2": col_sel(bblk * 16),
        "bd1": bd1, "b1p": jnp.tile(params["b1"], bblk).reshape(1, bblk * 64),
        "bd2": bd2, "b2p": jnp.tile(params["b2"], bblk).reshape(1, bblk * 10),
    }


def involution_model(x_nchw, params, *, bblk=8):
    B = x_nchw.shape[0]
    assert B % bblk == 0, "batch must be a multiple of the image-block size"
    G = B // bblk                     # keep G >= 2 so v7x can use both TensorCores
    pk = _pack_params(params, bblk)
    # One cheap fused HBM relayout (single XLA op): drop the channel dim and
    # pack `bblk` images side by side along lanes (BlockSpec cannot transpose).
    xp = x_nchw[:, 0].reshape(G, bblk, 32, 32).transpose(0, 2, 1, 3)
    xp = xp.reshape(G, 32, bblk * 32)

    out = pl.pallas_call(
        _make_kernel(bblk),
        out_shape=jax.ShapeDtypeStruct((G, 1, bblk * 10), jnp.float32),
        grid=(G,),
        in_specs=[
            pl.BlockSpec(memory_space=pltpu.MemorySpace.SMEM),            # inv params (3,20)
            pl.BlockSpec((1, 32, bblk * 32), lambda g: (g, 0, 0)),        # packed images
            pl.BlockSpec((16, 32), lambda g: (0, 0)),                     # pool1 row selector
            pl.BlockSpec((bblk * 32, bblk * 16), lambda g: (0, 0)),       # pool1 col selector
            pl.BlockSpec((8, 16), lambda g: (0, 0)),                      # pool2 row selector
            pl.BlockSpec((bblk * 16, bblk * 8), lambda g: (0, 0)),        # pool2 col selector
            pl.BlockSpec((8, bblk * 8, bblk * 64), lambda g: (0, 0, 0)),  # fc1 block-diag
            pl.BlockSpec((1, bblk * 64), lambda g: (0, 0)),               # fc1 bias (tiled)
            pl.BlockSpec((bblk * 64, bblk * 10), lambda g: (0, 0)),       # fc2 block-diag
            pl.BlockSpec((1, bblk * 10), lambda g: (0, 0)),               # fc2 bias (tiled)
        ],
        out_specs=pl.BlockSpec((1, 1, bblk * 10), lambda g: (g, 0, 0)),
        compiler_params=pltpu.CompilerParams(
            dimension_semantics=("parallel",)),
    )(params["inv"], xp,
      pk["sr1"], pk["sc1"], pk["sr2"], pk["sc2"],
      pk["bd1"], pk["b1p"], pk["bd2"], pk["b2p"])
    return out.reshape(B, 10)


# ----------------------------------------------------------------------------
# Deterministic parameter init (matches torch layer shapes / BN eval fusion)
# ----------------------------------------------------------------------------
def init_params(key):
    keys = jax.random.split(key, 7)

    def inv_params(k):
        k1, k2, k3, k4 = jax.random.split(k, 4)
        w1 = 0.3 * jax.random.normal(k1, (), jnp.float32)      # Conv2d(1,1,1) weight
        b1 = 0.1 * jax.random.normal(k2, (), jnp.float32)      # Conv2d(1,1,1) bias
        w2 = 0.1 * jax.random.normal(k3, (9,), jnp.float32)    # Conv2d(1,9,1) weight
        b2 = 0.05 * jax.random.normal(k4, (9,), jnp.float32)   # Conv2d(1,9,1) bias
        # BatchNorm2d(1), eval mode: gamma=1, beta=0, mean=0, var=1.
        # TODO(synk): training-mode (batch-statistics) BatchNorm is not modeled;
        # the a/c affine must be re-fused if real running stats are loaded.
        gamma, beta, rm, rv, eps = 1.0, 0.0, 0.0, 1.0, 1e-5
        scale = gamma / jnp.sqrt(rv + eps)
        a = w1 * scale
        c = (b1 - rm) * scale + beta
        return jnp.concatenate([jnp.stack([a, c]), w2, b2]).astype(jnp.float32)

    inv = jnp.stack([inv_params(keys[0]), inv_params(keys[1]), inv_params(keys[2])])
    return {
        "inv": inv,                                                       # (3, 20)
        "w1": 0.1 * jax.random.normal(keys[3], (64, 64), jnp.float32),    # fc1 (out, in)
        "b1": 0.1 * jax.random.normal(keys[4], (64,), jnp.float32),
        "w2": 0.1 * jax.random.normal(keys[5], (10, 64), jnp.float32),    # fc2 (out, in)
        "b2": 0.1 * jax.random.normal(keys[6], (10,), jnp.float32),
    }


# ----------------------------------------------------------------------------
# Pure-JAX reference (same math, no Pallas) for the correctness check
# ----------------------------------------------------------------------------
def _ref_involution_relu(x, p):
    B, H, W = x.shape
    a, c = p[0], p[1]
    w2, b2 = p[2:11], p[11:20]
    t = jnp.maximum(a * x + c, 0.0)
    xp = jnp.pad(x, ((0, 0), (1, 1), (1, 1)))
    out = jnp.zeros_like(x)
    for j in range(9):
        dy, dx = j // 3, j % 3
        out = out + (w2[j] * t + b2[j]) * xp[:, dy:dy + H, dx:dx + W]
    return jnp.maximum(out, 0.0)


def _ref_pool(y):
    B, H, W = y.shape
    return jnp.max(y.reshape(B, H // 2, 2, W // 2, 2), axis=(2, 4))


def ref_model(x_nchw, params):
    x = x_nchw[:, 0]
    x = _ref_pool(_ref_involution_relu(x, params["inv"][0]))
    x = _ref_pool(_ref_involution_relu(x, params["inv"][1]))
    x = _ref_involution_relu(x, params["inv"][2])
    xf = x.reshape(x.shape[0], -1)                       # torch Flatten order (h, w)
    hp = jax.lax.Precision.HIGHEST
    h = jnp.maximum(jnp.dot(xf, params["w1"].T, precision=hp) + params["b1"], 0.0)
    return jnp.dot(h, params["w2"].T, precision=hp) + params["b2"]


if __name__ == "__main__":
    key = jax.random.PRNGKey(0)
    kx, kp = jax.random.split(key)
    # fc1 expects 1*1*64 features -> 32x32 input (8x8 after two 2x2 pools).
    # B=16 with bblk=8 gives a 2-step parallel grid (both v7x TCs busy).
    B = 16
    x = jax.random.normal(kx, (B, 1, 32, 32), jnp.float32)
    params = init_params(kp)

    out = jax.block_until_ready(involution_model(x, params, bblk=8))
    ref = jax.block_until_ready(ref_model(x, params))

    assert out.shape == (B, 10)
    if not jnp.allclose(out, ref, atol=2e-3, rtol=2e-3):
        err = float(jnp.max(jnp.abs(out - ref)))
        raise AssertionError(
            f"Pallas output mismatch vs JAX reference (max abs err={err:.3e})")
    print("KERNEL_OK")
</pallas_src>

<mosaic_0001>
module attributes {stable_mosaic.version = 11 : i64} {
  func.func @kernel(%arg0: i32, %arg1: memref<3x20xf32, #tpu.memory_space<smem>>, %arg2: memref<1x32x256xf32, #tpu.memory_space<vmem>>, %arg3: memref<16x32xf32, #tpu.memory_space<vmem>>, %arg4: memref<256x128xf32, #tpu.memory_space<vmem>>, %arg5: memref<8x16xf32, #tpu.memory_space<vmem>>, %arg6: memref<128x64xf32, #tpu.memory_space<vmem>>, %arg7: memref<8x64x512xf32, #tpu.memory_space<vmem>>, %arg8: memref<1x512xf32, #tpu.memory_space<vmem>>, %arg9: memref<512x80xf32, #tpu.memory_space<vmem>>, %arg10: memref<1x80xf32, #tpu.memory_space<vmem>>, %arg11: memref<1x1x80xf32, #tpu.memory_space<vmem>>) attributes {dimension_semantics = [#tpu.dimension_semantics<parallel>], iteration_bounds = array<i64: 2>, scalar_prefetch = 0 : i64, scratch_operands = 0 : i64, tpu.core_type = #tpu.core_type<tc>, window_params = [{transform_indices = @transform_0, window_bounds = array<i64: 3, 20>}, {transform_indices = @transform_1, window_bounds = array<i64: 1, 32, 256>}, {pipeline_mode = #tpu.pipeline_mode<synchronous>, transform_indices = @transform_2, window_bounds = array<i64: 16, 32>}, {pipeline_mode = #tpu.pipeline_mode<synchronous>, transform_indices = @transform_3, window_bounds = array<i64: 256, 128>}, {pipeline_mode = #tpu.pipeline_mode<synchronous>, transform_indices = @transform_4, window_bounds = array<i64: 8, 16>}, {pipeline_mode = #tpu.pipeline_mode<synchronous>, transform_indices = @transform_5, window_bounds = array<i64: 128, 64>}, {pipeline_mode = #tpu.pipeline_mode<synchronous>, transform_indices = @transform_6, window_bounds = array<i64: 8, 64, 512>}, {pipeline_mode = #tpu.pipeline_mode<synchronous>, transform_indices = @transform_7, window_bounds = array<i64: 1, 512>}, {pipeline_mode = #tpu.pipeline_mode<synchronous>, transform_indices = @transform_8, window_bounds = array<i64: 512, 80>}, {pipeline_mode = #tpu.pipeline_mode<synchronous>, transform_indices = @transform_9, window_bounds = array<i64: 1, 80>}, {transform_indices = @transform_10, window_bounds = array<i64: 1, 1, 80>}]} {
    %c0 = arith.constant 0 : index
    %c0_0 = arith.constant 0 : index
    %c0_1 = arith.constant 0 : index
    %0 = vector.load %arg2[%c0, %c0_0, %c0_1] : memref<1x32x256xf32, #tpu.memory_space<vmem>>, vector<1x32x256xf32>
    %1 = vector.shape_cast %0 : vector<1x32x256xf32> to vector<32x256xf32>
    %c0_2 = arith.constant 0 : index
    %c0_3 = arith.constant 0 : index
    %2 = memref.load %arg1[%c0_2, %c0_3] : memref<3x20xf32, #tpu.memory_space<smem>>
    %c0_4 = arith.constant 0 : index
    %c1 = arith.constant 1 : index
    %3 = memref.load %arg1[%c0_4, %c1] : memref<3x20xf32, #tpu.memory_space<smem>>
    %4 = vector.broadcast %2 : f32 to vector<32x256xf32>
    %5 = arith.mulf %4, %1 : vector<32x256xf32>
    %6 = vector.broadcast %3 : f32 to vector<32x256xf32>
    %7 = arith.addf %5, %6 : vector<32x256xf32>
    %cst = arith.constant 0.000000e+00 : f32
    %8 = vector.broadcast %cst : f32 to vector<32x256xf32>
    %9 = arith.maximumf %7, %8 : vector<32x256xf32>
    %10 = tpu.iota {dimensions = array<i32: 1>} : vector<32x256xi32>
    %c31_i32 = arith.constant 31 : i32
    %11 = vector.broadcast %c31_i32 : i32 to vector<32x256xi32>
    %12 = arith.andi %10, %11 : vector<32x256xi32>
    %c0_i32 = arith.constant 0 : i32
    %13 = vector.broadcast %c0_i32 : i32 to vector<32x256xi32>
    %14 = arith.cmpi eq, %12, %13 : vector<32x256xi32>
    %15 = vector.extract_strided_slice %1 {offsets = [0, 255], sizes = [32, 1], strides = [1, 1]} : vector<32x256xf32> to vector<32x1xf32>
    %16 = vector.extract_strided_slice %1 {offsets = [0, 0], sizes = [32, 255], strides = [1, 1]} : vector<32x256xf32> to vector<32x255xf32>
    %17 = tpu.concatenate %15, %16 in 1 : vector<32x1xf32>, vector<32x255xf32> -> vector<32x256xf32>
    %cst_5 = arith.constant 0.000000e+00 : f32
    %18 = vector.broadcast %cst_5 : f32 to vector<32x256xf32>
    %19 = arith.select %14, %18, %17 : vector<32x256xi1>, vector<32x256xf32>
    %c31_i32_6 = arith.constant 31 : i32
    %20 = vector.broadcast %c31_i32_6 : i32 to vector<32x256xi32>
    %21 = arith.cmpi eq, %12, %20 : vector<32x256xi32>
    %22 = vector.extract_strided_slice %1 {offsets = [0, 1], sizes = [32, 255], strides = [1, 1]} : vector<32x256xf32> to vector<32x255xf32>
    %23 = vector.extract_strided_slice %1 {offsets = [0, 0], sizes = [32, 1], strides = [1, 1]} : vector<32x256xf32> to vector<32x1xf32>
    %24 = tpu.concatenate %22, %23 in 1 : vector<32x255xf32>, vector<32x1xf32> -> vector<32x256xf32>
    %cst_7 = arith.constant 0.000000e+00 : f32
    %25 = vector.broadcast %cst_7 : f32 to vector<32x256xf32>
    %26 = arith.select %21, %25, %24 : vector<32x256xi1>, vector<32x256xf32>
    %cst_8 = arith.constant 0.000000e+00 : f32
    %27 = vector.broadcast %cst_8 : f32 to vector<1x256xf32>
    %cst_9 = arith.constant 0.000000e+00 : f32
    %28 = vector.broadcast %cst_9 : f32 to vector<32x256xf32>
    %29 = vector.extract_strided_slice %19 {offsets = [0, 0], sizes = [31, 256], strides = [1, 1]} : vector<32x256xf32> to vector<31x256xf32>
    %30 = tpu.concatenate %27, %29 in 0 : vector<1x256xf32>, vector<31x256xf32> -> vector<32x256xf32>
    %c0_10 = arith.constant 0 : index
    %c2 = arith.constant 2 : index
    %31 = memref.load %arg1[%c0_10, %c2] : memref<3x20xf32, #tpu.memory_space<smem>>
    %32 = vector.broadcast %31 : f32 to vector<32x256xf32>
    %33 = arith.mulf %32, %9 : vector<32x256xf32>
    %c0_11 = arith.constant 0 : index
    %c11 = arith.constant 11 : index
    %34 = memref.load %arg1[%c0_11, %c11] : memref<3x20xf32, #tpu.memory_space<smem>>
    %35 = vector.broadcast %34 : f32 to vector<32x256xf32>
    %36 = arith.addf %33, %35 : vector<32x256xf32>
    %37 = arith.mulf %36, %30 : vector<32x256xf32>
    %38 = arith.addf %28, %37 : vector<32x256xf32>
    %39 = vector.extract_strided_slice %1 {offsets = [0, 0], sizes = [31, 256], strides = [1, 1]} : vector<32x256xf32> to vector<31x256xf32>
    %40 = tpu.concatenate %27, %39 in 0 : vector<1x256xf32>, vector<31x256xf32> -> vector<32x256xf32>
    %c0_12 = arith.constant 0 : index
    %c3 = arith.constant 3 : index
    %41 = memref.load %arg1[%c0_12, %c3] : memref<3x20xf32, #tpu.memory_space<smem>>
    %42 = vector.broadcast %41 : f32 to vector<32x256xf32>
    %43 = arith.mulf %42, %9 : vector<32x256xf32>
    %c0_13 = arith.constant 0 : index
    %c12 = arith.constant 12 : index
    %44 = memref.load %arg1[%c0_13, %c12] : memref<3x20xf32, #tpu.memory_space<smem>>
    %45 = vector.broadcast %44 : f32 to vector<32x256xf32>
    %46 = arith.addf %43, %45 : vector<32x256xf32>
    %47 = arith.mulf %46, %40 : vector<32x256xf32>
    %48 = arith.addf %38, %47 : vector<32x256xf32>
    %49 = vector.extract_strided_slice %26 {offsets = [0, 0], sizes = [31, 256], strides = [1, 1]} : vector<32x256xf32> to vector<31x256xf32>
    %50 = tpu.concatenate %27, %49 in 0 : vector<1x256xf32>, vector<31x256xf32> -> vector<32x256xf32>
    %c0_14 = arith.constant 0 : index
    %c4 = arith.constant 4 : index
    %51 = memref.load %arg1[%c0_14, %c4] : memref<3x20xf32, #tpu.memory_space<smem>>
    %52 = vector.broadcast %51 : f32 to vector<32x256xf32>
    %53 = arith.mulf %52, %9 : vector<32x256xf32>
    %c0_15 = arith.constant 0 : index
    %c13 = arith.constant 13 : index
    %54 = memref.load %arg1[%c0_15, %c13] : memref<3x20xf32, #tpu.memory_space<smem>>
    %55 = vector.broadcast %54 : f32 to vector<32x256xf32>
    %56 = arith.addf %53, %55 : vector<32x256xf32>
    %57 = arith.mulf %56, %50 : vector<32x256xf32>
    %58 = arith.addf %48, %57 : vector<32x256xf32>
    %c0_16 = arith.constant 0 : index
    %c5 = arith.constant 5 : index
    %59 = memref.load %arg1[%c0_16, %c5] : memref<3x20xf32, #tpu.memory_space<smem>>
    %60 = vector.broadcast %59 : f32 to vector<32x256xf32>
    %61 = arith.mulf %60, %9 : vector<32x256xf32>
    %c0_17 = arith.constant 0 : index
    %c14 = arith.constant 14 : index
    %62 = memref.load %arg1[%c0_17, %c14] : memref<3x20xf32, #tpu.memory_space<smem>>
    %63 = vector.broadcast %62 : f32 to vector<32x256xf32>
    %64 = arith.addf %61, %63 : vector<32x256xf32>
    %65 = arith.mulf %64, %19 : vector<32x256xf32>
    %66 = arith.addf %58, %65 : vector<32x256xf32>
    %c0_18 = arith.constant 0 : index
    %c6 = arith.constant 6 : index
    %67 = memref.load %arg1[%c0_18, %c6] : memref<3x20xf32, #tpu.memory_space<smem>>
    %68 = vector.broadcast %67 : f32 to vector<32x256xf32>
    %69 = arith.mulf %68, %9 : vector<32x256xf32>
    %c0_19 = arith.constant 0 : index
    %c15 = arith.constant 15 : index
    %70 = memref.load %arg1[%c0_19, %c15] : memref<3x20xf32, #tpu.memory_space<smem>>
    %71 = vector.broadcast %70 : f32 to vector<32x256xf32>
    %72 = arith.addf %69, %71 : vector<32x256xf32>
    %73 = arith.mulf %72, %1 : vector<32x256xf32>
    %74 = arith.addf %66, %73 : vector<32x256xf32>
    %c0_20 = arith.constant 0 : index
    %c7 = arith.constant 7 : index
    %75 = memref.load %arg1[%c0_20, %c7] : memref<3x20xf32, #tpu.memory_space<smem>>
    %76 = vector.broadcast %75 : f32 to vector<32x256xf32>
    %77 = arith.mulf %76, %9 : vector<32x256xf32>
    %c0_21 = arith.constant 0 : index
    %c16 = arith.constant 16 : index
    %78 = memref.load %arg1[%c0_21, %c16] : memref<3x20xf32, #tpu.memory_space<smem>>
    %79 = vector.broadcast %78 : f32 to vector<32x256xf32>
    %80 = arith.addf %77, %79 : vector<32x256xf32>
    %81 = arith.mulf %80, %26 : vector<32x256xf32>
    %82 = arith.addf %74, %81 : vector<32x256xf32>
    %83 = vector.extract_strided_slice %19 {offsets = [1, 0], sizes = [31, 256], strides = [1, 1]} : vector<32x256xf32> to vector<31x256xf32>
    %84 = tpu.concatenate %83, %27 in 0 : vector<31x256xf32>, vector<1x256xf32> -> vector<32x256xf32>
    %c0_22 = arith.constant 0 : index
    %c8 = arith.constant 8 : index
    %85 = memref.load %arg1[%c0_22, %c8] : memref<3x20xf32, #tpu.memory_space<smem>>
    %86 = vector.broadcast %85 : f32 to vector<32x256xf32>
    %87 = arith.mulf %86, %9 : vector<32x256xf32>
    %c0_23 = arith.constant 0 : index
    %c17 = arith.constant 17 : index
    %88 = memref.load %arg1[%c0_23, %c17] : memref<3x20xf32, #tpu.memory_space<smem>>
    %89 = vector.broadcast %88 : f32 to vector<32x256xf32>
    %90 = arith.addf %87, %89 : vector<32x256xf32>
    %91 = arith.mulf %90, %84 : vector<32x256xf32>
    %92 = arith.addf %82, %91 : vector<32x256xf32>
    %93 = vector.extract_strided_slice %1 {offsets = [1, 0], sizes = [31, 256], strides = [1, 1]} : vector<32x256xf32> to vector<31x256xf32>
    %94 = tpu.concatenate %93, %27 in 0 : vector<31x256xf32>, vector<1x256xf32> -> vector<32x256xf32>
    %c0_24 = arith.constant 0 : index
    %c9 = arith.constant 9 : index
    %95 = memref.load %arg1[%c0_24, %c9] : memref<3x20xf32, #tpu.memory_space<smem>>
    %96 = vector.broadcast %95 : f32 to vector<32x256xf32>
    %97 = arith.mulf %96, %9 : vector<32x256xf32>
    %c0_25 = arith.constant 0 : index
    %c18 = arith.constant 18 : index
    %98 = memref.load %arg1[%c0_25, %c18] : memref<3x20xf32, #tpu.memory_space<smem>>
    %99 = vector.broadcast %98 : f32 to vector<32x256xf32>
    %100 = arith.addf %97, %99 : vector<32x256xf32>
    %101 = arith.mulf %100, %94 : vector<32x256xf32>
    %102 = arith.addf %92, %101 : vector<32x256xf32>
    %103 = vector.extract_strided_slice %26 {offsets = [1, 0], sizes = [31, 256], strides = [1, 1]} : vector<32x256xf32> to vector<31x256xf32>
    %104 = tpu.concatenate %103, %27 in 0 : vector<31x256xf32>, vector<1x256xf32> -> vector<32x256xf32>
    %c0_26 = arith.constant 0 : index
    %c10 = arith.constant 10 : index
    %105 = memref.load %arg1[%c0_26, %c10] : memref<3x20xf32, #tpu.memory_space<smem>>
    %106 = vector.broadcast %105 : f32 to vector<32x256xf32>
    %107 = arith.mulf %106, %9 : vector<32x256xf32>
    %c0_27 = arith.constant 0 : index
    %c19 = arith.constant 19 : index
    %108 = memref.load %arg1[%c0_27, %c19] : memref<3x20xf32, #tpu.memory_space<smem>>
    %109 = vector.broadcast %108 : f32 to vector<32x256xf32>
    %110 = arith.addf %107, %109 : vector<32x256xf32>
    %111 = arith.mulf %110, %104 : vector<32x256xf32>
    %112 = arith.addf %102, %111 : vector<32x256xf32>
    %cst_28 = arith.constant 0.000000e+00 : f32
    %113 = vector.broadcast %cst_28 : f32 to vector<32x256xf32>
    %114 = arith.maximumf %112, %113 : vector<32x256xf32>
    %115 = vector.extract_strided_slice %114 {offsets = [0, 1], sizes = [32, 255], strides = [1, 1]} : vector<32x256xf32> to vector<32x255xf32>
    %116 = vector.extract_strided_slice %114 {offsets = [0, 0], sizes = [32, 1], strides = [1, 1]} : vector<32x256xf32> to vector<32x1xf32>
    %117 = tpu.concatenate %115, %116 in 1 : vector<32x255xf32>, vector<32x1xf32> -> vector<32x256xf32>
    %118 = arith.maximumf %114, %117 : vector<32x256xf32>
    %119 = vector.extract_strided_slice %118 {offsets = [1, 0], sizes = [31, 256], strides = [1, 1]} : vector<32x256xf32> to vector<31x256xf32>
    %120 = vector.extract_strided_slice %118 {offsets = [0, 0], sizes = [1, 256], strides = [1, 1]} : vector<32x256xf32> to vector<1x256xf32>
    %121 = tpu.concatenate %119, %120 in 0 : vector<31x256xf32>, vector<1x256xf32> -> vector<32x256xf32>
    %122 = arith.maximumf %118, %121 : vector<32x256xf32>
    %c0_29 = arith.constant 0 : index
    %c0_30 = arith.constant 0 : index
    %123 = vector.load %arg3[%c0_29, %c0_30] : memref<16x32xf32, #tpu.memory_space<vmem>>, vector<16x32xf32>
    %cst_31 = arith.constant dense<0.000000e+00> : vector<16x256xf32>
    %124 = tpu.matmul %123, %122, %cst_31 {dimension_numbers = #tpu.dot_dimension_numbers<[1], [0], [0], [1], [0, 0, 1, 1], [], []>} : vector<16x32xf32>, vector<32x256xf32>, vector<16x256xf32> -> vector<16x256xf32>
    %c0_32 = arith.constant 0 : index
    %c0_33 = arith.constant 0 : index
    %125 = vector.load %arg4[%c0_32, %c0_33] : memref<256x128xf32, #tpu.memory_space<vmem>>, vector<256x128xf32>
    %cst_34 = arith.constant dense<0.000000e+00> : vector<16x128xf32>
    %126 = tpu.matmul %124, %125, %cst_34 {dimension_numbers = #tpu.dot_dimension_numbers<[1], [0], [0], [1], [0, 0, 1, 1], [], []>} : vector<16x256xf32>, vector<256x128xf32>, vector<16x128xf32> -> vector<16x128xf32>
    %c1_35 = arith.constant 1 : index
    %c0_36 = arith.constant 0 : index
    %127 = memref.load %arg1[%c1_35, %c0_36] : memref<3x20xf32, #tpu.memory_space<smem>>
    %c1_37 = arith.constant 1 : index
    %c1_38 = arith.constant 1 : index
    %128 = memref.load %arg1[%c1_37, %c1_38] : memref<3x20xf32, #tpu.memory_space<smem>>
    %129 = vector.broadcast %127 : f32 to vector<16x128xf32>
    %130 = arith.mulf %129, %126 : vector<16x128xf32>
    %131 = vector.broadcast %128 : f32 to vector<16x128xf32>
    %132 = arith.addf %130, %131 : vector<16x128xf32>
    %cst_39 = arith.constant 0.000000e+00 : f32
    %133 = vector.broadcast %cst_39 : f32 to vector<16x128xf32>
    %134 = arith.maximumf %132, %133 : vector<16x128xf32>
    %135 = tpu.iota {dimensions = array<i32: 1>} : vector<16x128xi32>
    %c15_i32 = arith.constant 15 : i32
    %136 = vector.broadcast %c15_i32 : i32 to vector<16x128xi32>
    %137 = arith.andi %135, %136 : vector<16x128xi32>
    %c0_i32_40 = arith.constant 0 : i32
    %138 = vector.broadcast %c0_i32_40 : i32 to vector<16x128xi32>
    %139 = arith.cmpi eq, %137, %138 : vector<16x128xi32>
    %140 = vector.extract_strided_slice %126 {offsets = [0, 127], sizes = [16, 1], strides = [1, 1]} : vector<16x128xf32> to vector<16x1xf32>
    %141 = vector.extract_strided_slice %126 {offsets = [0, 0], sizes = [16, 127], strides = [1, 1]} : vector<16x128xf32> to vector<16x127xf32>
    %142 = tpu.concatenate %140, %141 in 1 : vector<16x1xf32>, vector<16x127xf32> -> vector<16x128xf32>
    %cst_41 = arith.constant 0.000000e+00 : f32
    %143 = vector.broadcast %cst_41 : f32 to vector<16x128xf32>
    %144 = arith.select %139, %143, %142 : vector<16x128xi1>, vector<16x128xf32>
    %c15_i32_42 = arith.constant 15 : i32
    %145 = vector.broadcast %c15_i32_42 : i32 to vector<16x128xi32>
    %146 = arith.cmpi eq, %137, %145 : vector<16x128xi32>
    %147 = vector.extract_strided_slice %126 {offsets = [0, 1], sizes = [16, 127], strides = [1, 1]} : vector<16x128xf32> to vector<16x127xf32>
    %148 = vector.extract_strided_slice %126 {offsets = [0, 0], sizes = [16, 1], strides = [1, 1]} : vector<16x128xf32> to vector<16x1xf32>
    %149 = tpu.concatenate %147, %148 in 1 : vector<16x127xf32>, vector<16x1xf32> -> vector<16x128xf32>
    %cst_43 = arith.constant 0.000000e+00 : f32
    %150 = vector.broadcast %cst_43 : f32 to vector<16x128xf32>
    %151 = arith.select %146, %150, %149 : vector<16x128xi1>, vector<16x128xf32>
    %cst_44 = arith.constant 0.000000e+00 : f32
    %152 = vector.broadcast %cst_44 : f32 to vector<1x128xf32>
    %cst_45 = arith.constant 0.000000e+00 : f32
    %153 = vector.broadcast %cst_45 : f32 to vector<16x128xf32>
    %154 = vector.extract_strided_slice %144 {offsets = [0, 0], sizes = [15, 128], strides = [1, 1]} : vector<16x128xf32> to vector<15x128xf32>
    %155 = tpu.concatenate %152, %154 in 0 : vector<1x128xf32>, vector<15x128xf32> -> vector<16x128xf32>
    %c1_46 = arith.constant 1 : index
    %c2_47 = arith.constant 2 : index
    %156 = memref.load %arg1[%c1_46, %c2_47] : memref<3x20xf32, #tpu.memory_space<smem>>
    %157 = vector.broadcast %156 : f32 to vector<16x128xf32>
    %158 = arith.mulf %157, %134 : vector<16x128xf32>
    %c1_48 = arith.constant 1 : index
    %c11_49 = arith.constant 11 : index
    %159 = memref.load %arg1[%c1_48, %c11_49] : memref<3x20xf32, #tpu.memory_space<smem>>
    %160 = vector.broadcast %159 : f32 to vector<16x128xf32>
    %161 = arith.addf %158, %160 : vector<16x128xf32>
    %162 = arith.mulf %161, %155 : vector<16x128xf32>
    %163 = arith.addf %153, %162 : vector<16x128xf32>
    %164 = vector.extract_strided_slice %126 {offsets = [0, 0], sizes = [15, 128], strides = [1, 1]} : vector<16x128xf32> to vector<15x128xf32>
    %165 = tpu.concatenate %152, %164 in 0 : vector<1x128xf32>, vector<15x128xf32> -> vector<16x128xf32>
    %c1_50 = arith.constant 1 : index
    %c3_51 = arith.constant 3 : index
    %166 = memref.load %arg1[%c1_50, %c3_51] : memref<3x20xf32, #tpu.memory_space<smem>>
    %167 = vector.broadcast %166 : f32 to vector<16x128xf32>
    %168 = arith.mulf %167, %134 : vector<16x128xf32>
    %c1_52 = arith.constant 1 : index
    %c12_53 = arith.constant 12 : index
    %169 = memref.load %arg1[%c1_52, %c12_53] : memref<3x20xf32, #tpu.memory_space<smem>>
    %170 = vector.broadcast %169 : f32 to vector<16x128xf32>
    %171 = arith.addf %168, %170 : vector<16x128xf32>
    %172 = arith.mulf %171, %165 : vector<16x128xf32>
    %173 = arith.addf %163, %172 : vector<16x128xf32>
    %174 = vector.extract_strided_slice %151 {offsets = [0, 0], sizes = [15, 128], strides = [1, 1]} : vector<16x128xf32> to vector<15x128xf32>
    %175 = tpu.concatenate %152, %174 in 0 : vector<1x128xf32>, vector<15x128xf32> -> vector<16x128xf32>
    %c1_54 = arith.constant 1 : index
    %c4_55 = arith.constant 4 : index
    %176 = memref.load %arg1[%c1_54, %c4_55] : memref<3x20xf32, #tpu.memory_space<smem>>
    %177 = vector.broadcast %176 : f32 to vector<16x128xf32>
    %178 = arith.mulf %177, %134 : vector<16x128xf32>
    %c1_56 = arith.constant 1 : index
    %c13_57 = arith.constant 13 : index
    %179 = memref.load %arg1[%c1_56, %c13_57] : memref<3x20xf32, #tpu.memory_space<smem>>
    %180 = vector.broadcast %179 : f32 to vector<16x128xf32>
    %181 = arith.addf %178, %180 : vector<16x128xf32>
    %182 = arith.mulf %181, %175 : vector<16x128xf32>
    %183 = arith.addf %173, %182 : vector<16x128xf32>
    %c1_58 = arith.constant 1 : index
    %c5_59 = arith.constant 5 : index
    %184 = memref.load %arg1[%c1_58, %c5_59] : memref<3x20xf32, #tpu.memory_space<smem>>
    %185 = vector.broadcast %184 : f32 to vector<16x128xf32>
    %186 = arith.mulf %185, %134 : vector<16x128xf32>
    %c1_60 = arith.constant 1 : index
    %c14_61 = arith.constant 14 : index
    %187 = memref.load %arg1[%c1_60, %c14_61] : memref<3x20xf32, #tpu.memory_space<smem>>
    %188 = vector.broadcast %187 : f32 to vector<16x128xf32>
    %189 = arith.addf %186, %188 : vector<16x128xf32>
    %190 = arith.mulf %189, %144 : vector<16x128xf32>
    %191 = arith.addf %183, %190 : vector<16x128xf32>
    %c1_62 = arith.constant 1 : index
    %c6_63 = arith.constant 6 : index
    %192 = memref.load %arg1[%c1_62, %c6_63] : memref<3x20xf32, #tpu.memory_space<smem>>
    %193 = vector.broadcast %192 : f32 to vector<16x128xf32>
    %194 = arith.mulf %193, %134 : vector<16x128xf32>
    %c1_64 = arith.constant 1 : index
    %c15_65 = arith.constant 15 : index
    %195 = memref.load %arg1[%c1_64, %c15_65] : memref<3x20xf32, #tpu.memory_space<smem>>
    %196 = vector.broadcast %195 : f32 to vector<16x128xf32>
    %197 = arith.addf %194, %196 : vector<16x128xf32>
    %198 = arith.mulf %197, %126 : vector<16x128xf32>
    %199 = arith.addf %191, %198 : vector<16x128xf32>
    %c1_66 = arith.constant 1 : index
    %c7_67 = arith.constant 7 : index
    %200 = memref.load %arg1[%c1_66, %c7_67] : memref<3x20xf32, #tpu.memory_space<smem>>
    %201 = vector.broadcast %200 : f32 to vector<16x128xf32>
    %202 = arith.mulf %201, %134 : vector<16x128xf32>
    %c1_68 = arith.constant 1 : index
    %c16_69 = arith.constant 16 : index
    %203 = memref.load %arg1[%c1_68, %c16_69] : memref<3x20xf32, #tpu.memory_space<smem>>
    %204 = vector.broadcast %203 : f32 to vector<16x128xf32>
    %205 = arith.addf %202, %204 : vector<16x128xf32>
    %206 = arith.mulf %205, %151 : vector<16x128xf32>
    %207 = arith.addf %199, %206 : vector<16x128xf32>
    %208 = vector.extract_strided_slice %144 {offsets = [1, 0], sizes = [15, 128], strides = [1, 1]} : vector<16x128xf32> to vector<15x128xf32>
    %209 = tpu.concatenate %208, %152 in 0 : vector<15x128xf32>, vector<1x128xf32> -> vector<16x128xf32>
    %c1_70 = arith.constant 1 : index
    %c8_71 = arith.constant 8 : index
    %210 = memref.load %arg1[%c1_70, %c8_71] : memref<3x20xf32, #tpu.memory_space<smem>>
    %211 = vector.broadcast %210 : f32 to vector<16x128xf32>
    %212 = arith.mulf %211, %134 : vector<16x128xf32>
    %c1_72 = arith.constant 1 : index
    %c17_73 = arith.constant 17 : index
    %213 = memref.load %arg1[%c1_72, %c17_73] : memref<3x20xf32, #tpu.memory_space<smem>>
    %214 = vector.broadcast %213 : f32 to vector<16x128xf32>
    %215 = arith.addf %212, %214 : vector<16x128xf32>
    %216 = arith.mulf %215, %209 : vector<16x128xf32>
    %217 = arith.addf %207, %216 : vector<16x128xf32>
    %218 = vector.extract_strided_slice %126 {offsets = [1, 0], sizes = [15, 128], strides = [1, 1]} : vector<16x128xf32> to vector<15x128xf32>
    %219 = tpu.concatenate %218, %152 in 0 : vector<15x128xf32>, vector<1x128xf32> -> vector<16x128xf32>
    %c1_74 = arith.constant 1 : index
    %c9_75 = arith.constant 9 : index
    %220 = memref.load %arg1[%c1_74, %c9_75] : memref<3x20xf32, #tpu.memory_space<smem>>
    %221 = vector.broadcast %220 : f32 to vector<16x128xf32>
    %222 = arith.mulf %221, %134 : vector<16x128xf32>
    %c1_76 = arith.constant 1 : index
    %c18_77 = arith.constant 18 : index
    %223 = memref.load %arg1[%c1_76, %c18_77] : memref<3x20xf32, #tpu.memory_space<smem>>
    %224 = vector.broadcast %223 : f32 to vector<16x128xf32>
    %225 = arith.addf %222, %224 : vector<16x128xf32>
    %226 = arith.mulf %225, %219 : vector<16x128xf32>
    %227 = arith.addf %217, %226 : vector<16x128xf32>
    %228 = vector.extract_strided_slice %151 {offsets = [1, 0], sizes = [15, 128], strides = [1, 1]} : vector<16x128xf32> to vector<15x128xf32>
    %229 = tpu.concatenate %228, %152 in 0 : vector<15x128xf32>, vector<1x128xf32> -> vector<16x128xf32>
    %c1_78 = arith.constant 1 : index
    %c10_79 = arith.constant 10 : index
    %230 = memref.load %arg1[%c1_78, %c10_79] : memref<3x20xf32, #tpu.memory_space<smem>>
    %231 = vector.broadcast %230 : f32 to vector<16x128xf32>
    %232 = arith.mulf %231, %134 : vector<16x128xf32>
    %c1_80 = arith.constant 1 : index
    %c19_81 = arith.constant 19 : index
    %233 = memref.load %arg1[%c1_80, %c19_81] : memref<3x20xf32, #tpu.memory_space<smem>>
    %234 = vector.broadcast %233 : f32 to vector<16x128xf32>
    %235 = arith.addf %232, %234 : vector<16x128xf32>
    %236 = arith.mulf %235, %229 : vector<16x128xf32>
    %237 = arith.addf %227, %236 : vector<16x128xf32>
    %cst_82 = arith.constant 0.000000e+00 : f32
    %238 = vector.broadcast %cst_82 : f32 to vector<16x128xf32>
    %239 = arith.maximumf %237, %238 : vector<16x128xf32>
    %240 = vector.extract_strided_slice %239 {offsets = [0, 1], sizes = [16, 127], strides = [1, 1]} : vector<16x128xf32> to vector<16x127xf32>
    %241 = vector.extract_strided_slice %239 {offsets = [0, 0], sizes = [16, 1], strides = [1, 1]} : vector<16x128xf32> to vector<16x1xf32>
    %242 = tpu.concatenate %240, %241 in 1 : vector<16x127xf32>, vector<16x1xf32> -> vector<16x128xf32>
    %243 = arith.maximumf %239, %242 : vector<16x128xf32>
    %244 = vector.extract_strided_slice %243 {offsets = [1, 0], sizes = [15, 128], strides = [1, 1]} : vector<16x128xf32> to vector<15x128xf32>
    %245 = vector.extract_strided_slice %243 {offsets = [0, 0], sizes = [1, 128], strides = [1, 1]} : vector<16x128xf32> to vector<1x128xf32>
    %246 = tpu.concatenate %244, %245 in 0 : vector<15x128xf32>, vector<1x128xf32> -> vector<16x128xf32>
    %247 = arith.maximumf %243, %246 : vector<16x128xf32>
    %c0_83 = arith.constant 0 : index
    %c0_84 = arith.constant 0 : index
    %248 = vector.load %arg5[%c0_83, %c0_84] : memref<8x16xf32, #tpu.memory_space<vmem>>, vector<8x16xf32>
    %cst_85 = arith.constant dense<0.000000e+00> : vector<8x128xf32>
    %249 = tpu.matmul %248, %247, %cst_85 {dimension_numbers = #tpu.dot_dimension_numbers<[1], [0], [0], [1], [0, 0, 1, 1], [], []>} : vector<8x16xf32>, vector<16x128xf32>, vector<8x128xf32> -> vector<8x128xf32>
    %c0_86 = arith.constant 0 : index
    %c0_87 = arith.constant 0 : index
    %250 = vector.load %arg6[%c0_86, %c0_87] : memref<128x64xf32, #tpu.memory_space<vmem>>, vector<128x64xf32>
    %cst_88 = arith.constant dense<0.000000e+00> : vector<8x64xf32>
    %251 = tpu.matmul %249, %250, %cst_88 {dimension_numbers = #tpu.dot_dimension_numbers<[1], [0], [0], [1], [0, 0, 1, 1], [], []>} : vector<8x128xf32>, vector<128x64xf32>, vector<8x64xf32> -> vector<8x64xf32>
    %c2_89 = arith.constant 2 : index
    %c0_90 = arith.constant 0 : index
    %252 = memref.load %arg1[%c2_89, %c0_90] : memref<3x20xf32, #tpu.memory_space<smem>>
    %c2_91 = arith.constant 2 : index
    %c1_92 = arith.constant 1 : index
    %253 = memref.load %arg1[%c2_91, %c1_92] : memref<3x20xf32, #tpu.memory_space<smem>>
    %254 = vector.broadcast %252 : f32 to vector<8x64xf32>
    %255 = arith.mulf %254, %251 : vector<8x64xf32>
    %256 = vector.broadcast %253 : f32 to vector<8x64xf32>
    %257 = arith.addf %255, %256 : vector<8x64xf32>
    %cst_93 = arith.constant 0.000000e+00 : f32
    %258 = vector.broadcast %cst_93 : f32 to vector<8x64xf32>
    %259 = arith.maximumf %257, %258 : vector<8x64xf32>
    %260 = tpu.iota {dimensions = array<i32: 1>} : vector<8x64xi32>
    %c7_i32 = arith.constant 7 : i32
    %261 = vector.broadcast %c7_i32 : i32 to vector<8x64xi32>
    %262 = arith.andi %260, %261 : vector<8x64xi32>
    %c0_i32_94 = arith.constant 0 : i32
    %263 = vector.broadcast %c0_i32_94 : i32 to vector<8x64xi32>
    %264 = arith.cmpi eq, %262, %263 : vector<8x64xi32>
    %265 = vector.extract_strided_slice %251 {offsets = [0, 63], sizes = [8, 1], strides = [1, 1]} : vector<8x64xf32> to vector<8x1xf32>
    %266 = vector.extract_strided_slice %251 {offsets = [0, 0], sizes = [8, 63], strides = [1, 1]} : vector<8x64xf32> to vector<8x63xf32>
    %267 = tpu.concatenate %265, %266 in 1 : vector<8x1xf32>, vector<8x63xf32> -> vector<8x64xf32>
    %cst_95 = arith.constant 0.000000e+00 : f32
    %268 = vector.broadcast %cst_95 : f32 to vector<8x64xf32>
    %269 = arith.select %264, %268, %267 : vector<8x64xi1>, vector<8x64xf32>
    %c7_i32_96 = arith.constant 7 : i32
    %270 = vector.broadcast %c7_i32_96 : i32 to vector<8x64xi32>
    %271 = arith.cmpi eq, %262, %270 : vector<8x64xi32>
    %272 = vector.extract_strided_slice %251 {offsets = [0, 1], sizes = [8, 63], strides = [1, 1]} : vector<8x64xf32> to vector<8x63xf32>
    %273 = vector.extract_strided_slice %251 {offsets = [0, 0], sizes = [8, 1], strides = [1, 1]} : vector<8x64xf32> to vector<8x1xf32>
    %274 = tpu.concatenate %272, %273 in 1 : vector<8x63xf32>, vector<8x1xf32> -> vector<8x64xf32>
    %cst_97 = arith.constant 0.000000e+00 : f32
    %275 = vector.broadcast %cst_97 : f32 to vector<8x64xf32>
    %276 = arith.select %271, %275, %274 : vector<8x64xi1>, vector<8x64xf32>
    %cst_98 = arith.constant 0.000000e+00 : f32
    %277 = vector.broadcast %cst_98 : f32 to vector<1x64xf32>
    %cst_99 = arith.constant 0.000000e+00 : f32
    %278 = vector.broadcast %cst_99 : f32 to vector<8x64xf32>
    %279 = vector.extract_strided_slice %269 {offsets = [0, 0], sizes = [7, 64], strides = [1, 1]} : vector<8x64xf32> to vector<7x64xf32>
    %280 = tpu.concatenate %277, %279 in 0 : vector<1x64xf32>, vector<7x64xf32> -> vector<8x64xf32>
    %c2_100 = arith.constant 2 : index
    %c2_101 = arith.constant 2 : index
    %281 = memref.load %arg1[%c2_100, %c2_101] : memref<3x20xf32, #tpu.memory_space<smem>>
    %282 = vector.broadcast %281 : f32 to vector<8x64xf32>
    %283 = arith.mulf %282, %259 : vector<8x64xf32>
    %c2_102 = arith.constant 2 : index
    %c11_103 = arith.constant 11 : index
    %284 = memref.load %arg1[%c2_102, %c11_103] : memref<3x20xf32, #tpu.memory_space<smem>>
    %285 = vector.broadcast %284 : f32 to vector<8x64xf32>
    %286 = arith.addf %283, %285 : vector<8x64xf32>
    %287 = arith.mulf %286, %280 : vector<8x64xf32>
    %288 = arith.addf %278, %287 : vector<8x64xf32>
    %289 = vector.extract_strided_slice %251 {offsets = [0, 0], sizes = [7, 64], strides = [1, 1]} : vector<8x64xf32> to vector<7x64xf32>
    %290 = tpu.concatenate %277, %289 in 0 : vector<1x64xf32>, vector<7x64xf32> -> vector<8x64xf32>
    %c2_104 = arith.constant 2 : index
    %c3_105 = arith.constant 3 : index
    %291 = memref.load %arg1[%c2_104, %c3_105] : memref<3x20xf32, #tpu.memory_space<smem>>
    %292 = vector.broadcast %291 : f32 to vector<8x64xf32>
    %293 = arith.mulf %292, %259 : vector<8x64xf32>
    %c2_106 = arith.constant 2 : index
    %c12_107 = arith.constant 12 : index
    %294 = memref.load %arg1[%c2_106, %c12_107] : memref<3x20xf32, #tpu.memory_space<smem>>
    %295 = vector.broadcast %294 : f32 to vector<8x64xf32>
    %296 = arith.addf %293, %295 : vector<8x64xf32>
    %297 = arith.mulf %296, %290 : vector<8x64xf32>
    %298 = arith.addf %288, %297 : vector<8x64xf32>
    %299 = vector.extract_strided_slice %276 {offsets = [0, 0], sizes = [7, 64], strides = [1, 1]} : vector<8x64xf32> to vector<7x64xf32>
    %300 = tpu.concatenate %277, %299 in 0 : vector<1x64xf32>, vector<7x64xf32> -> vector<8x64xf32>
    %c2_108 = arith.constant 2 : index
    %c4_109 = arith.constant 4 : index
    %301 = memref.load %arg1[%c2_108, %c4_109] : memref<3x20xf32, #tpu.memory_space<smem>>
    %302 = vector.broadcast %301 : f32 to vector<8x64xf32>
    %303 = arith.mulf %302, %259 : vector<8x64xf32>
    %c2_110 = arith.constant 2 : index
    %c13_111 = arith.constant 13 : index
    %304 = memref.load %arg1[%c2_110, %c13_111] : memref<3x20xf32, #tpu.memory_space<smem>>
    %305 = vector.broadcast %304 : f32 to vector<8x64xf32>
    %306 = arith.addf %303, %305 : vector<8x64xf32>
    %307 = arith.mulf %306, %300 : vector<8x64xf32>
    %308 = arith.addf %298, %307 : vector<8x64xf32>
    %c2_112 = arith.constant 2 : index
    %c5_113 = arith.constant 5 : index
    %309 = memref.load %arg1[%c2_112, %c5_113] : memref<3x20xf32, #tpu.memory_space<smem>>
    %310 = vector.broadcast %309 : f32 to vector<8x64xf32>
    %311 = arith.mulf %310, %259 : vector<8x64xf32>
    %c2_114 = arith.constant 2 : index
    %c14_115 = arith.constant 14 : index
    %312 = memref.load %arg1[%c2_114, %c14_115] : memref<3x20xf32, #tpu.memory_space<smem>>
    %313 = vector.broadcast %312 : f32 to vector<8x64xf32>
    %314 = arith.addf %311, %313 : vector<8x64xf32>
    %315 = arith.mulf %314, %269 : vector<8x64xf32>
    %316 = arith.addf %308, %315 : vector<8x64xf32>
    %c2_116 = arith.constant 2 : index
    %c6_117 = arith.constant 6 : index
    %317 = memref.load %arg1[%c2_116, %c6_117] : memref<3x20xf32, #tpu.memory_space<smem>>
    %318 = vector.broadcast %317 : f32 to vector<8x64xf32>
    %319 = arith.mulf %318, %259 : vector<8x64xf32>
    %c2_118 = arith.constant 2 : index
    %c15_119 = arith.constant 15 : index
    %320 = memref.load %arg1[%c2_118, %c15_119] : memref<3x20xf32, #tpu.memory_space<smem>>
    %321 = vector.broadcast %320 : f32 to vector<8x64xf32>
    %322 = arith.addf %319, %321 : vector<8x64xf32>
    %323 = arith.mulf %322, %251 : vector<8x64xf32>
    %324 = arith.addf %316, %323 : vector<8x64xf32>
    %c2_120 = arith.constant 2 : index
    %c7_121 = arith.constant 7 : index
    %325 = memref.load %arg1[%c2_120, %c7_121] : memref<3x20xf32, #tpu.memory_space<smem>>
    %326 = vector.broadcast %325 : f32 to vector<8x64xf32>
    %327 = arith.mulf %326, %259 : vector<8x64xf32>
    %c2_122 = arith.constant 2 : index
    %c16_123 = arith.constant 16 : index
    %328 = memref.load %arg1[%c2_122, %c16_123] : memref<3x20xf32, #tpu.memory_space<smem>>
    %329 = vector.broadcast %328 : f32 to vector<8x64xf32>
    %330 = arith.addf %327, %329 : vector<8x64xf32>
    %331 = arith.mulf %330, %276 : vector<8x64xf32>
    %332 = arith.addf %324, %331 : vector<8x64xf32>
    %333 = vector.extract_strided_slice %269 {offsets = [1, 0], sizes = [7, 64], strides = [1, 1]} : vector<8x64xf32> to vector<7x64xf32>
    %334 = tpu.concatenate %333, %277 in 0 : vector<7x64xf32>, vector<1x64xf32> -> vector<8x64xf32>
    %c2_124 = arith.constant 2 : index
    %c8_125 = arith.constant 8 : index
    %335 = memref.load %arg1[%c2_124, %c8_125] : memref<3x20xf32, #tpu.memory_space<smem>>
    %336 = vector.broadcast %335 : f32 to vector<8x64xf32>
    %337 = arith.mulf %336, %259 : vector<8x64xf32>
    %c2_126 = arith.constant 2 : index
    %c17_127 = arith.constant 17 : index
    %338 = memref.load %arg1[%c2_126, %c17_127] : memref<3x20xf32, #tpu.memory_space<smem>>
    %339 = vector.broadcast %338 : f32 to vector<8x64xf32>
    %340 = arith.addf %337, %339 : vector<8x64xf32>
    %341 = arith.mulf %340, %334 : vector<8x64xf32>
    %342 = arith.addf %332, %341 : vector<8x64xf32>
    %343 = vector.extract_strided_slice %251 {offsets = [1, 0], sizes = [7, 64], strides = [1, 1]} : vector<8x64xf32> to vector<7x64xf32>
    %344 = tpu.concatenate %343, %277 in 0 : vector<7x64xf32>, vector<1x64xf32> -> vector<8x64xf32>
    %c2_128 = arith.constant 2 : index
    %c9_129 = arith.constant 9 : index
    %345 = memref.load %arg1[%c2_128, %c9_129] : memref<3x20xf32, #tpu.memory_space<smem>>
    %346 = vector.broadcast %345 : f32 to vector<8x64xf32>
    %347 = arith.mulf %346, %259 : vector<8x64xf32>
    %c2_130 = arith.constant 2 : index
    %c18_131 = arith.constant 18 : index
    %348 = memref.load %arg1[%c2_130, %c18_131] : memref<3x20xf32, #tpu.memory_space<smem>>
    %349 = vector.broadcast %348 : f32 to vector<8x64xf32>
    %350 = arith.addf %347, %349 : vector<8x64xf32>
    %351 = arith.mulf %350, %344 : vector<8x64xf32>
    %352 = arith.addf %342, %351 : vector<8x64xf32>
    %353 = vector.extract_strided_slice %276 {offsets = [1, 0], sizes = [7, 64], strides = [1, 1]} : vector<8x64xf32> to vector<7x64xf32>
    %354 = tpu.concatenate %353, %277 in 0 : vector<7x64xf32>, vector<1x64xf32> -> vector<8x64xf32>
    %c2_132 = arith.constant 2 : index
    %c10_133 = arith.constant 10 : index
    %355 = memref.load %arg1[%c2_132, %c10_133] : memref<3x20xf32, #tpu.memory_space<smem>>
    %356 = vector.broadcast %355 : f32 to vector<8x64xf32>
    %357 = arith.mulf %356, %259 : vector<8x64xf32>
    %c2_134 = arith.constant 2 : index
    %c19_135 = arith.constant 19 : index
    %358 = memref.load %arg1[%c2_134, %c19_135] : memref<3x20xf32, #tpu.memory_space<smem>>
    %359 = vector.broadcast %358 : f32 to vector<8x64xf32>
    %360 = arith.addf %357, %359 : vector<8x64xf32>
    %361 = arith.mulf %360, %354 : vector<8x64xf32>
    %362 = arith.addf %352, %361 : vector<8x64xf32>
    %cst_136 = arith.constant 0.000000e+00 : f32
    %363 = vector.broadcast %cst_136 : f32 to vector<8x64xf32>
    %364 = arith.maximumf %362, %363 : vector<8x64xf32>
    %c0_137 = arith.constant 0 : index
    %c0_138 = arith.constant 0 : index
    %365 = vector.load %arg8[%c0_137, %c0_138] : memref<1x512xf32, #tpu.memory_space<vmem>>, vector<1x512xf32>
    %366 = vector.extract_strided_slice %364 {offsets = [0, 0], sizes = [1, 64], strides = [1, 1]} : vector<8x64xf32> to vector<1x64xf32>
    %c0_139 = arith.constant 0 : index
    %c0_140 = arith.constant 0 : index
    %c0_141 = arith.constant 0 : index
    %367 = vector.load %arg7[%c0_139, %c0_140, %c0_141] : memref<8x64x512xf32, #tpu.memory_space<vmem>>, vector<1x64x512xf32>
    %368 = vector.shape_cast %367 : vector<1x64x512xf32> to vector<64x512xf32>
    %cst_142 = arith.constant dense<0.000000e+00> : vector<1x512xf32>
    %369 = tpu.matmul %366, %368, %cst_142 {dimension_numbers = #tpu.dot_dimension_numbers<[1], [0], [0], [1], [0, 0, 1, 1], [], []>} : vector<1x64xf32>, vector<64x512xf32>, vector<1x512xf32> -> vector<1x512xf32>
    %370 = arith.addf %365, %369 : vector<1x512xf32>
    %371 = vector.extract_strided_slice %364 {offsets = [1, 0], sizes = [1, 64], strides = [1, 1]} : vector<8x64xf32> to vector<1x64xf32>
    %c1_143 = arith.constant 1 : index
    %c0_144 = arith.constant 0 : index
    %c0_145 = arith.constant 0 : index
    %372 = vector.load %arg7[%c1_143, %c0_144, %c0_145] : memref<8x64x512xf32, #tpu.memory_space<vmem>>, vector<1x64x512xf32>
    %373 = vector.shape_cast %372 : vector<1x64x512xf32> to vector<64x512xf32>
    %cst_146 = arith.constant dense<0.000000e+00> : vector<1x512xf32>
    %374 = tpu.matmul %371, %373, %cst_146 {dimension_numbers = #tpu.dot_dimension_numbers<[1], [0], [0], [1], [0, 0, 1, 1], [], []>} : vector<1x64xf32>, vector<64x512xf32>, vector<1x512xf32> -> vector<1x512xf32>
    %375 = arith.addf %370, %374 : vector<1x512xf32>
    %376 = vector.extract_strided_slice %364 {offsets = [2, 0], sizes = [1, 64], strides = [1, 1]} : vector<8x64xf32> to vector<1x64xf32>
    %c2_147 = arith.constant 2 : index
    %c0_148 = arith.constant 0 : index
    %c0_149 = arith.constant 0 : index
    %377 = vector.load %arg7[%c2_147, %c0_148, %c0_149] : memref<8x64x512xf32, #tpu.memory_space<vmem>>, vector<1x64x512xf32>
    %378 = vector.shape_cast %377 : vector<1x64x512xf32> to vector<64x512xf32>
    %cst_150 = arith.constant dense<0.000000e+00> : vector<1x512xf32>
    %379 = tpu.matmul %376, %378, %cst_150 {dimension_numbers = #tpu.dot_dimension_numbers<[1], [0], [0], [1], [0, 0, 1, 1], [], []>} : vector<1x64xf32>, vector<64x512xf32>, vector<1x512xf32> -> vector<1x512xf32>
    %380 = arith.addf %375, %379 : vector<1x512xf32>
    %381 = vector.extract_strided_slice %364 {offsets = [3, 0], sizes = [1, 64], strides = [1, 1]} : vector<8x64xf32> to vector<1x64xf32>
    %c3_151 = arith.constant 3 : index
    %c0_152 = arith.constant 0 : index
    %c0_153 = arith.constant 0 : index
    %382 = vector.load %arg7[%c3_151, %c0_152, %c0_153] : memref<8x64x512xf32, #tpu.memory_space<vmem>>, vector<1x64x512xf32>
    %383 = vector.shape_cast %382 : vector<1x64x512xf32> to vector<64x512xf32>
    %cst_154 = arith.constant dense<0.000000e+00> : vector<1x512xf32>
    %384 = tpu.matmul %381, %383, %cst_154 {dimension_numbers = #tpu.dot_dimension_numbers<[1], [0], [0], [1], [0, 0, 1, 1], [], []>} : vector<1x64xf32>, vector<64x512xf32>, vector<1x512xf32> -> vector<1x512xf32>
    %385 = arith.addf %380, %384 : vector<1x512xf32>
    %386 = vector.extract_strided_slice %364 {offsets = [4, 0], sizes = [1, 64], strides = [1, 1]} : vector<8x64xf32> to vector<1x64xf32>
    %c4_155 = arith.constant 4 : index
    %c0_156 = arith.constant 0 : index
    %c0_157 = arith.constant 0 : index
    %387 = vector.load %arg7[%c4_155, %c0_156, %c0_157] : memref<8x64x512xf32, #tpu.memory_space<vmem>>, vector<1x64x512xf32>
    %388 = vector.shape_cast %387 : vector<1x64x512xf32> to vector<64x512xf32>
    %cst_158 = arith.constant dense<0.000000e+00> : vector<1x512xf32>
    %389 = tpu.matmul %386, %388, %cst_158 {dimension_numbers = #tpu.dot_dimension_numbers<[1], [0], [0], [1], [0, 0, 1, 1], [], []>} : vector<1x64xf32>, vector<64x512xf32>, vector<1x512xf32> -> vector<1x512xf32>
    %390 = arith.addf %385, %389 : vector<1x512xf32>
    %391 = vector.extract_strided_slice %364 {offsets = [5, 0], sizes = [1, 64], strides = [1, 1]} : vector<8x64xf32> to vector<1x64xf32>
    %c5_159 = arith.constant 5 : index
    %c0_160 = arith.constant 0 : index
    %c0_161 = arith.constant 0 : index
    %392 = vector.load %arg7[%c5_159, %c0_160, %c0_161] : memref<8x64x512xf32, #tpu.memory_space<vmem>>, vector<1x64x512xf32>
    %393 = vector.shape_cast %392 : vector<1x64x512xf32> to vector<64x512xf32>
    %cst_162 = arith.constant dense<0.000000e+00> : vector<1x512xf32>
    %394 = tpu.matmul %391, %393, %cst_162 {dimension_numbers = #tpu.dot_dimension_numbers<[1], [0], [0], [1], [0, 0, 1, 1], [], []>} : vector<1x64xf32>, vector<64x512xf32>, vector<1x512xf32> -> vector<1x512xf32>
    %395 = arith.addf %390, %394 : vector<1x512xf32>
    %396 = vector.extract_strided_slice %364 {offsets = [6, 0], sizes = [1, 64], strides = [1, 1]} : vector<8x64xf32> to vector<1x64xf32>
    %c6_163 = arith.constant 6 : index
    %c0_164 = arith.constant 0 : index
    %c0_165 = arith.constant 0 : index
    %397 = vector.load %arg7[%c6_163, %c0_164, %c0_165] : memref<8x64x512xf32, #tpu.memory_space<vmem>>, vector<1x64x512xf32>
    %398 = vector.shape_cast %397 : vector<1x64x512xf32> to vector<64x512xf32>
    %cst_166 = arith.constant dense<0.000000e+00> : vector<1x512xf32>
    %399 = tpu.matmul %396, %398, %cst_166 {dimension_numbers = #tpu.dot_dimension_numbers<[1], [0], [0], [1], [0, 0, 1, 1], [], []>} : vector<1x64xf32>, vector<64x512xf32>, vector<1x512xf32> -> vector<1x512xf32>
    %400 = arith.addf %395, %399 : vector<1x512xf32>
    %401 = vector.extract_strided_slice %364 {offsets = [7, 0], sizes = [1, 64], strides = [1, 1]} : vector<8x64xf32> to vector<1x64xf32>
    %c7_167 = arith.constant 7 : index
    %c0_168 = arith.constant 0 : index
    %c0_169 = arith.constant 0 : index
    %402 = vector.load %arg7[%c7_167, %c0_168, %c0_169] : memref<8x64x512xf32, #tpu.memory_space<vmem>>, vector<1x64x512xf32>
    %403 = vector.shape_cast %402 : vector<1x64x512xf32> to vector<64x512xf32>
    %cst_170 = arith.constant dense<0.000000e+00> : vector<1x512xf32>
    %404 = tpu.matmul %401, %403, %cst_170 {dimension_numbers = #tpu.dot_dimension_numbers<[1], [0], [0], [1], [0, 0, 1, 1], [], []>} : vector<1x64xf32>, vector<64x512xf32>, vector<1x512xf32> -> vector<1x512xf32>
    %405 = arith.addf %400, %404 : vector<1x512xf32>
    %cst_171 = arith.constant 0.000000e+00 : f32
    %406 = vector.broadcast %cst_171 : f32 to vector<1x512xf32>
    %407 = arith.maximumf %405, %406 : vector<1x512xf32>
    %c0_172 = arith.constant 0 : index
    %c0_173 = arith.constant 0 : index
    %408 = vector.load %arg9[%c0_172, %c0_173] : memref<512x80xf32, #tpu.memory_space<vmem>>, vector<512x80xf32>
    %cst_174 = arith.constant dense<0.000000e+00> : vector<1x80xf32>
    %409 = tpu.matmul %407, %408, %cst_174 {dimension_numbers = #tpu.dot_dimension_numbers<[1], [0], [0], [1], [0, 0, 1, 1], [], []>} : vector<1x512xf32>, vector<512x80xf32>, vector<1x80xf32> -> vector<1x80xf32>
    %c0_175 = arith.constant 0 : index
    %c0_176 = arith.constant 0 : index
    %410 = vector.load %arg10[%c0_175, %c0_176] : memref<1x80xf32, #tpu.memory_space<vmem>>, vector<1x80xf32>
    %411 = arith.addf %409, %410 : vector<1x80xf32>
    %c0_177 = arith.constant 0 : index
    %c0_178 = arith.constant 0 : index
    %c0_179 = arith.constant 0 : index
    %412 = vector.load %arg11[%c0_177, %c0_178, %c0_179] : memref<1x1x80xf32, #tpu.memory_space<vmem>>, vector<1x1x80xf32>
    %413 = vector.shape_cast %412 : vector<1x1x80xf32> to vector<1x80xf32>
    %414 = vector.shape_cast %411 : vector<1x80xf32> to vector<1x1x80xf32>
    tpu.vector_store %arg11[%c0_177, %c0_178, %c0_179], %414 {strides = array<i32>} : memref<1x1x80xf32, #tpu.memory_space<vmem>>, vector<1x1x80xf32>,
    return
  }
  func.func @transform_0(%arg0: i32) -> (i32, i32) {
    %c0_i32 = arith.constant 0 : i32
    %c0_i32_0 = arith.constant 0 : i32
    %c0_i32_1 = arith.constant 0 : i32
    return %c0_i32, %c0_i32_0 : i32, i32
  }
  func.func @transform_1(%arg0: i32) -> (i32, i32, i32) {
    %c0_i32 = arith.constant 0 : i32
    %c0_i32_0 = arith.constant 0 : i32
    %c0_i32_1 = arith.constant 0 : i32
    return %arg0, %c0_i32, %c0_i32_0 : i32, i32, i32
  }
  func.func @transform_2(%arg0: i32) -> (i32, i32) {
    %c0_i32 = arith.constant 0 : i32
    %c0_i32_0 = arith.constant 0 : i32
    %c0_i32_1 = arith.constant 0 : i32
    return %c0_i32, %c0_i32_0 : i32, i32
  }
  func.func @transform_3(%arg0: i32) -> (i32, i32) {
    %c0_i32 = arith.constant 0 : i32
    %c0_i32_0 = arith.constant 0 : i32
    %c0_i32_1 = arith.constant 0 : i32
    return %c0_i32, %c0_i32_0 : i32, i32
  }
  func.func @transform_4(%arg0: i32) -> (i32, i32) {
    %c0_i32 = arith.constant 0 : i32
    %c0_i32_0 = arith.constant 0 : i32
    %c0_i32_1 = arith.constant 0 : i32
    return %c0_i32, %c0_i32_0 : i32, i32
  }
  func.func @transform_5(%arg0: i32) -> (i32, i32) {
    %c0_i32 = arith.constant 0 : i32
    %c0_i32_0 = arith.constant 0 : i32
    %c0_i32_1 = arith.constant 0 : i32
    return %c0_i32, %c0_i32_0 : i32, i32
  }
  func.func @transform_6(%arg0: i32) -> (i32, i32, i32) {
    %c0_i32 = arith.constant 0 : i32
    %c0_i32_0 = arith.constant 0 : i32
    %c0_i32_1 = arith.constant 0 : i32
    %c0_i32_2 = arith.constant 0 : i32
    return %c0_i32, %c0_i32_0, %c0_i32_1 : i32, i32, i32
  }
  func.func @transform_7(%arg0: i32) -> (i32, i32) {
    %c0_i32 = arith.constant 0 : i32
    %c0_i32_0 = arith.constant 0 : i32
    %c0_i32_1 = arith.constant 0 : i32
    return %c0_i32, %c0_i32_0 : i32, i32
  }
  func.func @transform_8(%arg0: i32) -> (i32, i32) {
    %c0_i32 = arith.constant 0 : i32
    %c0_i32_0 = arith.constant 0 : i32
    %c0_i32_1 = arith.constant 0 : i32
    return %c0_i32, %c0_i32_0 : i32, i32
  }
  func.func @transform_9(%arg0: i32) -> (i32, i32) {
    %c0_i32 = arith.constant 0 : i32
    %c0_i32_0 = arith.constant 0 : i32
    %c0_i32_1 = arith.constant 0 : i32
    return %c0_i32, %c0_i32_0 : i32, i32
  }
  func.func @transform_10(%arg0: i32) -> (i32, i32, i32) {
    %c0_i32 = arith.constant 0 : i32
    %c0_i32_0 = arith.constant 0 : i32
    %c0_i32_1 = arith.constant 0 : i32
    return %arg0, %c0_i32, %c0_i32_0 : i32, i32, i32
  }
}

</mosaic_0001>

<bundles_post_ra>
// kernel: tpu_custom_call.1
= control target key start
LH: loop header
LB: loop body
LE: loop exit
PB: predicated region body
PF: predicated region fallthrough
CT: control target
= control target key end

     0   :  { %s5973_s0 = inlined_call_operand.vmem [shape: f32[3,20], index: 0, kind: input, shape index: {}]   ;;  %s5974_s1 = inlined_call_operand.vmem [shape: f32[2,32,256], index: 1, kind: input, shape index: {}]   ;;  %s5975_s2 = inlined_call_operand.vmem [shape: f32[16,32], index: 2, kind: input, shape index: {}]   ;;  %s5976_s3 = inlined_call_operand.vmem [shape: f32[256,128], index: 3, kind: input, shape index: {}]   ;;  %s5977_s4 = inlined_call_operand.vmem [shape: f32[8,16], index: 4, kind: input, shape index: {}]   ;;  %s5978_s5 = inlined_call_operand.vmem [shape: f32[128,64], index: 5, kind: input, shape index: {}]   ;;  %s5979_s6 = inlined_call_operand.hbm [shape: f32[8,64,512], index: 6, kind: input, shape index: {}]   ;;  %s5980_s7 = inlined_call_operand.vmem [shape: f32[1,512], index: 7, kind: input, shape index: {}]   ;;  %s5981_s8 = inlined_call_operand.vmem [shape: f32[512,80], index: 8, kind: input, shape index: {}]   ;;  %s5982_s9 = inlined_call_operand.vmem [shape: f32[1,80], index: 9, kind: input, shape index: {}]   ;;  %s5983_s10 = inlined_call_operand.hbm [shape: f32[2,1,80], index: 10, kind: output, shape index: {}]  }
   0x1   :  { %5996 = sst [smem:[#allocation55_spill]] %s5973_s0 }
   0x2   :  { %5997 = sst [smem:[#allocation56_spill]] %s5974_s1 }
   0x3   :  { %5998 = sst [smem:[#allocation57_spill]] %s5975_s2 }
   0x4   :  { %5999 = sst [smem:[#allocation58_spill]] %s5976_s3 }
   0x5   :  { %6000 = sst [smem:[#allocation59_spill]] %s5979_s6 }
   0x6   :  { %15 = vsyncpa [#allocation5], 0 }
   0x7   :  { %16 = vsyncpa [#allocation3], 0 }
   0x8   :  { %17 = vsyncpa [#allocation4], 0 }
   0x9   :  { %19 = vsyncpa [#allocation4 + $0x1], 0  ;;  %s4289_s13 = smov 0   ;;  %s4291_s14 = smov 0  }
   0xa   :  { %s4293_s15 = smov 0   ;;  %s4295_s16 = smov 0  }
   0xb LB: > { %s4310_s17 = sadd.s32 4294967295, %s4220_s16   ;;  %s3780_s18 = sadd.s32 4294967294, %s4220_s16   ;;  %s4220_s16 = sphi %s4295_s16, %s6145_s16   ;;  %s4216_s15 = sphi %s4293_s15, %s6144_s15   ;;  %s4212_s14 = sphi %s4291_s14, %s6143_s14   ;;  %s4208_s13 = sphi %s4289_s13, %s6142_s13  }
   0xc   : > { %s4314_s19 = sadd.s32 1, %s4220_s16   ;;  %s247_s20 = sadd.s32 1, %s4216_s15 }
   0xd   : > { %s244_s21 = ssub.s32 %s4220_s16, %s4314_s19  ;;  %p257_p0 = scmp.ne.s32.totalorder %s4216_s15, %s4212_s14 }
   0xe   : > { %p245_p1 = scmp.eq.s32.totalorder %s244_s21, 0  ;;  %p258_p2 = scmp.eq.s32.totalorder %s4310_s17, 1 }
   0xf   : > { %p263_p3 = scmp.ne.s32.totalorder %s4212_s14, %s4208_s13  ;;  %p264_p4 = scmp.eq.s32.totalorder %s3780_s18, 1 }
  0x10   : > { %s4325_s22 = scalar_select %p245_p1, %s4216_s15, %s247_s20  }
  0x11   : > { %p4327_p5 = por %p258_p2, %p257_p0  ;;  %p4331_p6 = por %p264_p4, %p263_p3 }
  0x12   : > { %6001 = sst [smem:[#allocation11_spill]] %s4325_s22  ;;  %p3781_p7 = scmp.ge.s32.totalorder %s4220_s16, 1 }
  0x13   : > { %s6002_s23 = scalar_select %p4327_p5, 1, 0 }
  0x14   : > { %s6003_s24 = scalar_select %p4331_p6, 1, 0 }
  0x15   : > { %p271_p8 = scmp.lt.s32.totalorder %s4220_s16, 3  ;;  %p5984_p9 = scmp.eq.s32.totalorder %s4310_s17, 0 }
  0x16   : > { %s6005_s0 = sld [smem:[#allocation55_spill]]  ;;  %s4222_s29 = smov [#allocation6]  }
  0x17   : > { %p4338_p10 = pnand %p3781_p7, %p271_p8  ;;  %s306_s30 = sshll.u32 %s4222_s29, 4  ;;  %s307_s30 = int_to_ptr.vmem [resolvable:$true] %s306_s30 }
  0x19   : > { %s6004_s25 = scalar_select %p4338_p10, 1, 0 }
  0x1a   : > { %p4052_p11 = pneg %p4338_p10 }
  0x1c   : > { %s284_s28 = sshll.u32 %s6005_s0, 4  ;;  %p4349_p12 = pnand %p5984_p9, %p4052_p11  ;;  %s285_s28 = int_to_ptr.vmem [resolvable:$true] %s284_s28 }
  0x1d   : > { %s4111_s12 = scalar_lea.vmem %s285_s28, 64  ;;  %p4119_p3 = scmp.lt.s32.totalorder %s285_s28, %s285_s28 }
  0x1e   : > { %p4112_p13 = scmp.ne.s32.totalorder %s285_s28, %s4111_s12  ;;  %p4113_p0 = pneg %p4349_p12 }
  0x1f   : > { %p4120_p4 = scmp.lt.s32.totalorder %s4111_s12, %s4111_s12 }
  0x20   : > { %p4114_p1 = pnand %p4113_p0, %p4112_p13 }
  0x21   : > { %p4121_p7 = por %p4120_p4, %p4119_p3 }
  0x22   : > { %p4115_p2 = pneg %p4114_p1 }
  0x24   : > { %p4122_p8 = pnand %p4121_p7, %p4115_p2 }
  0x26   : > { %4125 = shalt.err (!%p4122_p8)
}
  0x27   : > { %s4223_s18 = smov [#allocation2]   ;;  %s4137_s20 = scalar_lea.vmem %s307_s30, 32768 }
  0x28   : > { %4055 = dma.vmem_to_smem (!%p4349_p12), %s285_s28, 64, %s4223_s18, [#allocation5]  }
  0x29   : > { %p4138_p11 = scmp.ne.s32.totalorder %s307_s30, %s4137_s20  ;;  %p4145_p5 = scmp.lt.s32.totalorder %s307_s30, %s307_s30 }
  0x2a   : > { %p4146_p10 = scmp.lt.s32.totalorder %s4137_s20, %s4137_s20 }
  0x2b   : > { %p4140_p9 = pnand %p4138_p11, %p4113_p0 }
  0x2c   : > { %p4147_p13 = por %p4146_p10, %p4145_p5 }
  0x2d   : > { %p4141_p6 = pneg %p4140_p9 }
  0x2f   : > { %p4148_p1 = pnand %p4147_p13, %p4141_p6 }
  0x31   : > { %4151 = shalt.err (!%p4148_p1)
}
  0x32   : > { %s4224_s21 = smov 512   ;;  %s4225_s26 = smov 32  }
  0x33   : > { %s6007_s6 = sld [smem:[#allocation59_spill]]  ;;  %p6008_p2 = scmp.ne.s32.totalorder %s6004_s25, 0 }
  0x35   : > { %339 = sbr.rel (%p6008_p2) target bundleno = 2126 (0x84e), region = 60 }
  0x39   : > { %4058 = dma.hbm_to_vmem [thread:$0]  (!%p4349_p12), %s6007_s6, 32768, %s307_s30, [#allocation3], %s4224_s21, %s4224_s21, %s4225_s26  }
  0x3a   : > { %p6009_p3 = scmp.eq.s32.totalorder %s4310_s17, 0 }
  0x3c   : > { %4195 = dma.done.wait (%p6009_p3), [#allocation5], 64   ;;  %p6010_p9 = pmov %p6009_p3 }
  0x3d   : > { %p6011_p5 = pmov %p6009_p3 }
  0x3e   : > { %4197 = vsyncadd (%p6010_p9), [#allocation5], 4294967232 }
  0x3f   : > { %4199 = dma.done.wait (%p6011_p5), [#allocation3], 32768   ;;  %p6012_p6 = pmov %p6009_p3 }
  0x41   : > { %4201 = vsyncadd (%p6012_p6), [#allocation3], 4294934528 }
  0x42   : > { %349 = sfence }
  0x43   : > { %p381_p10 = scmp.lt.s32.totalorder %s4310_s17, 1  ;;  %s394_s30 = sld [smem:[#allocation2]]  ;;  %vm537_vm0 = vcmask 1040384   ;;  %vm834_vm1 = vcmask 1046528   ;;  %vm457_vm2 = vcmask 7168   ;;  %vm500_vm5 = vcmask 1039360  }
  0x44   : > { %s6013_s1 = sld [smem:[#allocation56_spill]]  ;;  %s5995_s20 = smov 1   ;;  %vm1119_vm8 = vcmask 261120   ;;  %vm4229_vm11 = vmmov 0   ;;  %vm1513_vm12 = vcmask 130048   ;;  %vm1698_vm14 = vcmask 515072  }
  0x45   : > { %s382_s28 = scalar_select %p381_p10, %s4310_s17, 1 }
  0x46   : > { %s3790_s21 = sld [smem:[#allocation2 + $0x1]]  ;;  %s5993_s29 = smov 127  }
  0x47   : > { %s3871_s25 = sshll.u32 %s382_s28, 6  ;;  %s3793_s26 = sld [smem:[#allocation2 + $0x3]] }
  0x48   : > { %s3794_s27 = sld [smem:[#allocation2 + $0xc]]  ;;  %p6139_p0 = scmp.ne.s32.totalorder %s6002_s23, 0 }
  0x49   : > { %v4393_v4 = vstv %s394_s30  ;;  %s3805_s28 = sld [smem:[#allocation2 + $0x9]] }
  0x4a   : > { %s385_s18 = scalar_lea.vmem %s6013_s1, %s3871_s25  ;;  %s3806_s30 = sld [smem:[#allocation2 + $0x12]] }
  0x4b   : > { %v4377_v0 = vld [vmem:[%s385_s18 + $0x38] sm:$0xff]  ;;  %v4379_v1 = vld [vmem:[%s385_s18 + $0x8] sm:$0xff]  ;;  %v4387_v3 = vld [vmem:[%s385_s18] sm:$0xff]  ;;  %s3791_s25 = sld [smem:[#allocation2 + $0x2]] }
  0x4c   : > { %439 = vrot.lane.b32.xlu1 %v4377_v0, %s5995_s20  ;;  %433 = vrot.lane.b32.xlu0 %v4379_v1, %s5995_s20  ;;  %v4385_v2 = vld [vmem:[%s385_s18 + $0x28] sm:$0xff]  ;;  %v4395_v5 = vld [vmem:[%s385_s18 + $0x20] sm:$0xff]  ;;  %v404_v8 = vmul.f32 %v4393_v4, %v4377_v0  ;;  %v610_v12 = vrot.slane %v4377_v0, 7  ;;  %v599_v38 = vrot.slane %v4379_v1, 7  ;;  %v598_v48 = vrot.slane %v4387_v3, 7  ;;  %s3797_s11 = sld [smem:[#allocation2 + $0x5]] }
  0x4d   : > { %v4397_v6 = vld [vmem:[%s385_s18 + $0x30] sm:$0xff]  ;;  %v4407_v9 = vstv %s3790_s21  ;;  %v4409_v10 = vld [vmem:[%s385_s18 + $0x18] sm:$0xff]  ;;  %v606_v15 = vrot.slane %v4385_v2, 7  ;;  %v604_v16 = vrot.slane %v4395_v5, 7  ;;  %v402_v18 = vmul.f32 %v4393_v4, %v4385_v2  ;;  %s3792_s12 = sld [smem:[#allocation2 + $0xb]] }
  0x4e   : > { %v403_v7 = vmul.f32 %v4393_v4, %v4397_v6  ;;  %v4411_v11 = vld [vmem:[%s385_s18 + $0x10] sm:$0xff]  ;;  %v413_v14 = vadd.f32 %v4407_v9, %v404_v8  ;;  %v608_v17 = vrot.slane %v4397_v6, 7  ;;  %v400_v19 = vmul.f32 %v4393_v4, %v4409_v10  ;;  %s3798_s18 = sld [smem:[#allocation2 + $0xe]] }
  0x4f   : > { %v399_v20 = vmul.f32 %v4393_v4, %v4411_v11  ;;  %v401_v21 = vmul.f32 %v4393_v4, %v4395_v5  ;;  %v4435_v24 = vstv %s3793_s26  ;;  %v611_v26 = vsel %vm537_vm0, %v606_v15, %v610_v12  ;;  %s3803_s21 = sld [smem:[#allocation2 + $0x8]] }
  0x50   : > { %437 = vrot.lane.b32.xlu0 %v4385_v2, %s5995_s20  ;;  %449 = vrot.lane.b32.xlu1 %v4387_v3, %s5995_s20  ;;  %v412_v13 = vadd.f32 %v4407_v9, %v403_v7  ;;  %v4433_v23 = vmax.f32 %v413_v14, 0.0  ;;  %v609_v25 = vsel %vm537_vm0, %v604_v16, %v608_v17  ;;  %v411_v27 = vadd.f32 %v4407_v9, %v402_v18  ;;  %s4581_s26 = sld [smem:[#allocation2 + $0x11]] }
  0x51   : > { %v409_v29 = vadd.f32 %v4407_v9, %v400_v19  ;;  %v408_v30 = vadd.f32 %v4407_v9, %v399_v20  ;;  %v4448_v31 = vstv %s3794_s27  ;;  %v410_v33 = vadd.f32 %v4407_v9, %v401_v21  ;;  %s4589_s27 = sld [smem:[#allocation2 + $0x6]] }
  0x52   : > { %v4431_v22 = vmax.f32 %v412_v13, 0.0  ;;  %v631_v32 = vmul.f32 %v4435_v24, %v4433_v23  ;;  %v602_v34 = vrot.slane %v4409_v10, 7  ;;  %v600_v35 = vrot.slane %v4411_v11, 7  ;;  %s6127_s2 = sld [smem:[#allocation57_spill]] }
  0x53   : > { %v4464_v40 = vmax.f32 %v411_v27, 0.0  ;;  %v4466_v41 = vmax.f32 %v409_v29, 0.0  ;;  %v4468_v42 = vmax.f32 %v408_v30, 0.0  ;;  %v4472_v44 = vmax.f32 %v410_v33, 0.0  ;;  %s6128_s3 = sld [smem:[#allocation58_spill]] }
  0x54   : > { %453 = vrot.lane.b32.xlu0 %v4395_v5, %s5995_s20  ;;  %455 = vrot.lane.b32.xlu1 %v4397_v6, %s5995_s20  ;;  %v630_v28 = vmul.f32 %v4435_v24, %v4431_v22  ;;  %v641_v37 = vadd.f32 %v4448_v31, %v631_v32  ;;  %v603_v45 = vsel %vm537_vm0, %v599_v38, %v602_v34  ;;  %v898_v13 = vrot.slane %v4379_v1, 1  ;;  %s5410_s0 = sld [smem:[#allocation2 + $0x86]] }
  0x55   : > { %v605_v46 = vsel %vm537_vm0, %v600_v35, %v604_v16  ;;  %v607_v47 = vsel %vm537_vm0, %v602_v34, %v606_v15  ;;  %v626_v49 = vmul.f32 %v4435_v24, %v4468_v42  ;;  %v627_v50 = vmul.f32 %v4435_v24, %v4466_v41  ;;  %s5412_s1 = sld [smem:[#allocation2 + $0x8f]] }
  0x56   : > { %v640_v36 = vadd.f32 %v4448_v31, %v630_v28  ;;  %v4470_v43 = vmul.f32 %v641_v37, %v611_v26  ;;  %v628_v51 = vmul.f32 %v4435_v24, %v4472_v44  ;;  %v629_v52 = vmul.f32 %v4435_v24, %v4464_v40  ;;  %s5419_s6 = sld [smem:[#allocation2 + $0x8a]] }
  0x57   : > { %v636_v53 = vadd.f32 %v4448_v31, %v626_v49  ;;  %v637_v54 = vadd.f32 %v4448_v31, %v627_v50  ;;  %v601_v55 = vsel %vm537_vm0, %v598_v48, %v600_v35  ;;  %v398_v62 = vmul.f32 %v4393_v4, %v4379_v1  ;;  %s5422_s22 = sld [smem:[#allocation2 + $0x93]] }
  0x58   : > { %435 = vrot.lane.b32.xlu0 %v4409_v10, %s5995_s20  ;;  %451 = vrot.lane.b32.xlu1 %v4411_v11, %s5995_s20  ;;  %v4462_v39 = vmul.f32 %v640_v36, %v609_v25  ;;  %v638_v56 = vadd.f32 %v4448_v31, %v628_v51  ;;  %v639_v57 = vadd.f32 %v4448_v31, %v629_v52  ;;  %v899_v14 = vrot.slane %v4409_v10, 1 }
  0x59   : > { %v4499_v58 = vmul.f32 %v637_v54, %v603_v45  ;;  %v4501_v59 = vmul.f32 %v636_v53, %v601_v55  ;;  %v397_v63 = vmul.f32 %v4393_v4, %v4387_v3  ;;  %v407_v7 = vadd.f32 %v4407_v9, %v398_v62 }
  0x5a   : > { %v4507_v60 = vmul.f32 %v638_v56, %v605_v46  ;;  %v4509_v61 = vmul.f32 %v639_v57, %v607_v47  ;;  %v4521_v15 = vstv %s3805_s28  ;;  %v900_v16 = vsel %vm834_vm1, %v898_v13, %v899_v14  ;;  %s4594_s28 = sld [smem:[#allocation2 + $0x4]] }
  0x5b   : > { %6014 = vst [vmem:[#allocation12_spill] sm:$0xff] %v4499_v58  ;;  %6015 = vst [vmem:[#allocation13_spill] sm:$0xff] %v4501_v59  ;;  %v406_v8 = vadd.f32 %v4407_v9, %v397_v63  ;;  %v4517_v12 = vmax.f32 %v407_v7, 0.0  ;;  %v4528_v18 = vstv %s3806_s30  ;;  %v895_v19 = vrot.slane %v4387_v3, 1  ;;  %s4603_s30 = sld [smem:[#allocation2 + $0x7]] }
  0x5c   : > { %484 = vrot.lane.b32.xlu0 %v4387_v3, %s5993_s29  ;;  %486 = vrot.lane.b32.xlu1 %v4379_v1, %s5993_s29  ;;  %6016 = vst [vmem:[#allocation14_spill] sm:$0xff] %v4507_v60  ;;  %6017 = vst [vmem:[#allocation15_spill] sm:$0xff] %v4509_v61  ;;  %v896_v20 = vrot.slane %v4411_v11, 1  ;;  %v5989_v29 = vrot.slane %v4377_v0, 1  ;;  %v903_v30 = vrot.slane %v4385_v2, 1  ;;  %v926_v32 = vmul.f32 %v4521_v15, %v4464_v40 }
  0x5d   : > { %v922_v17 = vmul.f32 %v4521_v15, %v4517_v12  ;;  %v4526_v4 = vmax.f32 %v406_v8, 0.0  ;;  %v5988_v33 = vrot.slane %v4397_v6, 1  ;;  %v901_v36 = vrot.slane %v4395_v5, 1 }
  0x5e   : > { %v897_v26 = vsel %vm834_vm1, %v895_v19, %v896_v20  ;;  %v908_v34 = vsel %vm834_vm1, %v903_v30, %v5989_v29  ;;  %v936_v35 = vadd.f32 %v4528_v18, %v926_v32  ;;  %v925_v37 = vmul.f32 %v4521_v15, %v4472_v44 }
  0x5f   : > { %v932_v9 = vadd.f32 %v4528_v18, %v922_v17  ;;  %v921_v21 = vmul.f32 %v4521_v15, %v4526_v4  ;;  %v906_v46 = vsel %vm834_vm1, %v901_v36, %v5988_v33  ;;  %v904_v49 = vsel %vm834_vm1, %v899_v14, %v903_v30 }
  0x60   : > { %492 = vrot.lane.b32.xlu0 %v4395_v5, %s5993_s29  ;;  %494 = vrot.lane.b32.xlu1 %v4385_v2, %s5993_s29  ;;  %v4553_v45 = vmul.f32 %v936_v35, %v908_v34  ;;  %v935_v47 = vadd.f32 %v4528_v18, %v925_v37  ;;  %v924_v50 = vmul.f32 %v4521_v15, %v4466_v41  ;;  %v5987_v62 = vlaneseq }
  0x61   : > { %v4535_v25 = vmul.f32 %v932_v9, %v900_v16  ;;  %v931_v27 = vadd.f32 %v4528_v18, %v921_v21  ;;  %v902_v53 = vsel %vm834_vm1, %v896_v20, %v901_v36  ;;  %v923_v54 = vmul.f32 %v4521_v15, %v4468_v42 }
  0x62   : > { %6020 = vst [vmem:[#allocation18_spill] sm:$0xff] %v4553_v45  ;;  %v4562_v51 = vmul.f32 %v935_v47, %v906_v46  ;;  %v934_v52 = vadd.f32 %v4528_v18, %v924_v50  ;;  %v4574_v63 = vand.u32 127, %v5987_v62  ;;  %v563_v7 = vstv %s3791_s25  ;;  %s4612_s25 = sld [smem:[#allocation2 + $0xd]] }
  0x63   : > { %6018 = vst [vmem:[#allocation16_spill] sm:$0xff] %v4535_v25  ;;  %v4539_v28 = vmul.f32 %v931_v27, %v897_v26  ;;  %v933_v56 = vadd.f32 %v4528_v18, %v923_v54  ;;  %v727_v8 = vstv %s3797_s11  ;;  %v625_v14 = vmul.f32 %v4435_v24, %v4517_v12  ;;  %s4620_s11 = sld [smem:[#allocation2 + $0xf]] }
  0x64   : > { %496 = vrot.lane.b32.xlu0 %v4397_v6, %s5993_s29  ;;  %498 = vrot.lane.b32.xlu1 %v4377_v0, %s5993_s29  ;;  %6021 = vst [vmem:[#allocation19_spill] sm:$0xff] %v4562_v51  ;;  %v4568_v55 = vmul.f32 %v934_v52, %v904_v49  ;;  %6024 = vst [vmem:[#allocation22_spill] sm:$0xff] %v4574_v63  ;;  %v4577_v13 = vadd.s32 128, %v4574_v63  ;;  %v565_v16 = vmul.f32 %v563_v7, %v4517_v12 }
  0x65   : > { %6019 = vst [vmem:[#allocation17_spill] sm:$0xff] %v4539_v28  ;;  %v4571_v57 = vmul.f32 %v933_v56, %v902_v53  ;;  %v729_v17 = vmul.f32 %v727_v8, %v4517_v12  ;;  %v624_v9 = vmul.f32 %v4435_v24, %v4526_v4  ;;  %v573_v19 = vstv %s3792_s12  ;;  %s4638_s12 = sld [smem:[#allocation2 + $0x10]] }
  0x66   : > { %6022 = vst [vmem:[#allocation20_spill] sm:$0xff] %v4568_v55  ;;  %v4587_v20 = vstv %s3798_s18  ;;  %v635_v27 = vadd.f32 %v4448_v31, %v625_v14  ;;  %v621_v30 = vsel %vm537_vm0, 0.0, %v599_v38  ;;  %v564_v32 = vmul.f32 %v563_v7, %v4526_v4  ;;  %s4719_s18 = sld [smem:[#allocation2 + $0xa]] }
  0x67   : > { %6023 = vst [vmem:[#allocation21_spill] sm:$0xff] %v4571_v57  ;;  %v728_v24 = vmul.f32 %v727_v8, %v4526_v4  ;;  %v4601_v34 = vstv %s3803_s21  ;;  %v4605_v35 = vadd.f32 %v573_v19, %v565_v16  ;;  %v4608_v36 = vadd.f32 %v4587_v20, %v729_v17  ;;  %s4746_s21 = sld [smem:[#allocation2 + $0x13]] }
  0x68   : > { %488 = vrot.lane.b32.xlu0 %v4411_v11, %s5993_s29  ;;  %490 = vrot.lane.b32.xlu1 %v4409_v10, %s5993_s29  ;;  %v634_v37 = vadd.f32 %v4448_v31, %v624_v9  ;;  %v732_v46 = vmul.f32 %v727_v8, %v4472_v44  ;;  %v620_v38 = vsel %vm537_vm0, 0.0, %v598_v48  ;;  %v733_v47 = vmul.f32 %v727_v8, %v4464_v40 }
  0x69   : > { %v570_v49 = vmul.f32 %v563_v7, %v4431_v22  ;;  %v571_v50 = vmul.f32 %v563_v7, %v4433_v23  ;;  %v4622_v52 = vmul.f32 %v635_v27, %v621_v30  ;;  %v734_v31 = vmul.f32 %v727_v8, %v4431_v22 }
  0x6a   : > { %v735_v53 = vmul.f32 %v727_v8, %v4433_v23  ;;  %v867_v54 = vmul.f32 %v4601_v34, %v4431_v22  ;;  %v4628_v56 = vadd.f32 %v573_v19, %v564_v32  ;;  %v4631_v48 = vadd.f32 %v4587_v20, %v728_v24 }
  0x6b   : > { %v868_v14 = vmul.f32 %v4601_v34, %v4433_v23  ;;  %v4636_v16 = vstv %s4581_s26  ;;  %v4640_v17 = vmul.f32 %v634_v37, %v620_v38  ;;  %v4643_v9 = vadd.f32 %v4587_v20, %v732_v46  ;;  %s3811_s26 = sld [smem:[#allocation2 + $0x80]] }
  0x6c   : > { %v566_v27 = vmul.f32 %v563_v7, %v4468_v42  ;;  %v567_v30 = vmul.f32 %v563_v7, %v4466_v41  ;;  %v4648_v32 = vadd.f32 %v4587_v20, %v733_v47  ;;  %v4650_v24 = vadd.f32 %v573_v19, %v570_v49 }
  0x6d   : > { %v4652_v62 = vadd.f32 %v573_v19, %v571_v50  ;;  %v4655_v33 = vstv %s4589_s27  ;;  %v4658_v37 = vadd.f32 %v4587_v20, %v734_v31  ;;  %v4661_v46 = vadd.f32 %v4587_v20, %v735_v53  ;;  %s3812_s27 = sld [smem:[#allocation2 + $0x81]] }
  0x6e   : > { %v4664_v38 = vadd.f32 %v4636_v16, %v867_v54  ;;  %v691_v29 = vstv %s4594_s28  ;;  %v4668_v47 = vadd.f32 %v4636_v16, %v868_v14  ;;  %v568_v49 = vmul.f32 %v563_v7, %v4472_v44  ;;  %s5348_s28 = sld [smem:[#allocation2 + $0x83]] }
  0x6f   : > { %v569_v50 = vmul.f32 %v563_v7, %v4464_v40  ;;  %v799_v26 = vstv %s4603_s30  ;;  %v4673_v21 = vadd.f32 %v573_v19, %v566_v27  ;;  %v4675_v31 = vadd.f32 %v573_v19, %v567_v30  ;;  %s5353_s30 = sld [smem:[#allocation2 + $0x8c]] }
  0x70   : > { %6025 = vst [vmem:[#allocation23_spill] sm:$0xff] %v4664_v38  ;;  %6026 = vst [vmem:[#allocation24_spill] sm:$0xff] %v4668_v47  ;;  %v730_v53 = vmul.f32 %v727_v8, %v4468_v42  ;;  %v765_v54 = vmul.f32 %v4655_v33, %v4517_v12  ;;  %v731_v57 = vmul.f32 %v727_v8, %v4466_v41  ;;  %v701_v51 = vstv %s4612_s25  ;;  %s5355_s25 = sld [smem:[#allocation2 + $0x89]] }
  0x71   : > { %6027 = vst [vmem:[#allocation25_spill] sm:$0xff] %v4675_v31  ;;  %v693_v14 = vmul.f32 %v691_v29, %v4517_v12  ;;  %v4684_v55 = vstv %s4620_s11  ;;  %v801_v7 = vmul.f32 %v799_v26, %v4517_v12  ;;  %v692_v45 = vmul.f32 %v691_v29, %v4526_v4  ;;  %s6129_s11 = smov 127  }
  0x72   : > { %v764_v27 = vmul.f32 %v4655_v33, %v4526_v4  ;;  %v800_v30 = vmul.f32 %v799_v26, %v4526_v4  ;;  %v4691_v28 = vadd.f32 %v573_v19, %v568_v49  ;;  %v4693_v25 = vadd.f32 %v573_v19, %v569_v50 }
  0x73   : > { %v809_v47 = vstv %s4638_s12  ;;  %v804_v8 = vmul.f32 %v799_v26, %v4472_v44  ;;  %v4698_v61 = vadd.f32 %v4587_v20, %v730_v53  ;;  %v775_v60 = vadd.f32 %v4684_v55, %v765_v54  ;;  %s5364_s12 = sld [smem:[#allocation2 + $0x92]] }
  0x74   : > { %6028 = vst [vmem:[#allocation26_spill] sm:$0xff] %v4691_v28  ;;  %6029 = vst [vmem:[#allocation27_spill] sm:$0xff] %v4693_v25  ;;  %v805_v38 = vmul.f32 %v799_v26, %v4464_v40  ;;  %v770_v58 = vmul.f32 %v4655_v33, %v4431_v22  ;;  %v4705_v59 = vadd.f32 %v4587_v20, %v731_v57 }
  0x75   : > { %v4707_v49 = vadd.f32 %v701_v51, %v693_v14  ;;  %v698_v19 = vmul.f32 %v691_v29, %v4431_v22  ;;  %v771_v50 = vmul.f32 %v4655_v33, %v4433_v23  ;;  %v4712_v25 = vadd.f32 %v809_v47, %v801_v7 }
  0x76   : > { %v4714_v53 = vadd.f32 %v701_v51, %v692_v45  ;;  %v774_v54 = vadd.f32 %v4684_v55, %v764_v27  ;;  %v4717_v28 = vadd.f32 %v809_v47, %v800_v30  ;;  %v4721_v31 = vadd.f32 %v809_v47, %v804_v8 }
  0x77   : > { %6030 = vst [vmem:[#allocation28_spill] sm:$0xff] %v4707_v49  ;;  %6031 = vst [vmem:[#allocation29_spill] sm:$0xff] %v4712_v25  ;;  %v699_v57 = vmul.f32 %v691_v29, %v4433_v23  ;;  %v806_v20 = vmul.f32 %v799_v26, %v4431_v22  ;;  %v807_v14 = vmul.f32 %v799_v26, %v4433_v23 }
  0x78   : > { %6032 = vst [vmem:[#allocation30_spill] sm:$0xff] %v4714_v53  ;;  %6033 = vst [vmem:[#allocation31_spill] sm:$0xff] %v4721_v31  ;;  %v4727_v49 = vmul.f32 %v775_v60, %v4379_v1  ;;  %v4729_v7 = vadd.f32 %v809_v47, %v805_v38  ;;  %v780_v45 = vadd.f32 %v4684_v55, %v770_v58 }
  0x79   : > { %v694_v27 = vmul.f32 %v691_v29, %v4468_v42  ;;  %v4733_v30 = vadd.f32 %v701_v51, %v698_v19  ;;  %v781_v8 = vadd.f32 %v4684_v55, %v771_v50  ;;  %v695_v31 = vmul.f32 %v691_v29, %v4466_v41 }
  0x7a   : > { %6034 = vst [vmem:[#allocation32_spill] sm:$0xff] %v4727_v49  ;;  %v766_v25 = vmul.f32 %v4655_v33, %v4468_v42  ;;  %v4740_v53 = vmul.f32 %v774_v54, %v4387_v3  ;;  %v696_v1 = vmul.f32 %v691_v29, %v4472_v44  ;;  %v697_v60 = vmul.f32 %v691_v29, %v4464_v40 }
  0x7b   : > { %6035 = vst [vmem:[#allocation33_spill] sm:$0xff] %v4733_v30  ;;  %v767_v58 = vmul.f32 %v4655_v33, %v4466_v41  ;;  %v4748_v38 = vadd.f32 %v701_v51, %v699_v57  ;;  %v4750_v19 = vadd.f32 %v809_v47, %v806_v20  ;;  %v4752_v50 = vadd.f32 %v809_v47, %v807_v14 }
  0x7c   : > { %v802_v30 = vmul.f32 %v799_v26, %v4468_v42  ;;  %v4756_v3 = vmul.f32 %v780_v45, %v4397_v6  ;;  %v4758_v54 = vadd.f32 %v701_v51, %v694_v27  ;;  %v803_v29 = vmul.f32 %v799_v26, %v4466_v41 }
  0x7d   : > { %6036 = vst [vmem:[#allocation34_spill] sm:$0xff] %v4748_v38  ;;  %6037 = vst [vmem:[#allocation35_spill] sm:$0xff] %v4752_v50  ;;  %v862_v49 = vmul.f32 %v4601_v34, %v4517_v12  ;;  %v4764_v57 = vmul.f32 %v781_v8, %v4377_v0  ;;  %v4766_v20 = vadd.f32 %v701_v51, %v695_v31  ;;  %v6042_v45 = vand.u32 31, %v4574_v63 }
  0x7e   : > { %6038 = vst [vmem:[#allocation36_spill] sm:$0xff] %v4756_v3  ;;  %6039 = vst [vmem:[#allocation37_spill] sm:$0xff] %v4758_v54  ;;  %v776_v14 = vadd.f32 %v4684_v55, %v766_v25  ;;  %v928_v50 = vmul.f32 %v4521_v15, %v4433_v23  ;;  %v6045_v26 = vand.u32 31, %v4577_v13  ;;  %v4783_v8 = vadd.f32 %v701_v51, %v696_v1 }
  0x7f   : > { %6040 = vst [vmem:[#allocation38_spill] sm:$0xff] %v4764_v57  ;;  %6041 = vst [vmem:[#allocation39_spill] sm:$0xff] %v4766_v20  ;;  %vm4773_vm3 = vcmp.eq.s32.totalorder %v6042_v45, 0  ;;  %v4785_v31 = vadd.f32 %v701_v51, %v697_v60  ;;  %v777_v25 = vadd.f32 %v4684_v55, %v767_v58  ;;  %v980_v57 = vstv %s4719_s18  ;;  %s5394_s18 = sld [smem:[#allocation2 + $0x82]] }
  0x80   : > { %vm4779_vm4 = vcmp.eq.s32.totalorder %v6045_v26, 0  ;;  %6048 = vst [vmem:[#allocation40_spill] sm:$0xff] %v4783_v8  ;;  %v4789_v20 = vadd.f32 %v809_v47, %v802_v30  ;;  %v982_v45 = vmul.f32 %v980_v57, %v4517_v12  ;;  %v861_v54 = vmul.f32 %v4601_v34, %v4526_v4 }
  0x81   : > { %6049 = vst [vmem:[#allocation41_spill] sm:$0xff] %v4785_v31  ;;  %v927_v26 = vmul.f32 %v4521_v15, %v4431_v22  ;;  %v4796_v38 = vadd.f32 %v809_v47, %v803_v29  ;;  %v4799_v1 = vadd.f32 %v4636_v16, %v862_v49  ;;  %v981_v51 = vmul.f32 %v980_v57, %v4526_v4 }
  0x82   : > { %v769_v60 = vmul.f32 %v4655_v33, %v4464_v40  ;;  %v4805_v30 = vmul.f32 %v776_v14, %v4411_v11  ;;  %v938_v12 = vadd.f32 %v4528_v18, %v928_v50  ;;  %v988_v58 = vmul.f32 %v980_v57, %v4433_v23 }
  0x83   : > { %6050 = vst [vmem:[#allocation42_spill] sm:$0xff] %v4796_v38  ;;  %6051 = vst [vmem:[#allocation43_spill] sm:$0xff] %v4799_v1  ;;  %v768_v15 = vmul.f32 %v4655_v33, %v4472_v44  ;;  %v990_v47 = vstv %s4746_s21  ;;  %v6053_v29 = vrot.slane %v4377_v0, 1  ;;  %v987_v4 = vmul.f32 %v980_v57, %v4431_v22  ;;  %s5398_s21 = sld [smem:[#allocation2 + $0x85]] }
  0x84   : > { %6052 = vst [vmem:[#allocation44_spill] sm:$0xff] %v4805_v30  ;;  %v866_v38 = vmul.f32 %v4601_v34, %v4464_v40  ;;  %v4821_v50 = vmul.f32 %v777_v25, %v4409_v10  ;;  %v4823_v23 = vadd.f32 %v990_v47, %v982_v45  ;;  %v4826_v33 = vadd.f32 %v4636_v16, %v861_v54 }
  0x85   : > { %v918_v49 = vsel %vm834_vm1, %v6053_v29, 0.0  ;;  %v937_v0 = vadd.f32 %v4528_v18, %v927_v26  ;;  %v4829_v14 = vadd.f32 %v990_v47, %v981_v51  ;;  %v6054_v22 = vrot.slane %v4397_v6, 1 }
  0x86   : > { %v779_v30 = vadd.f32 %v4684_v55, %v769_v60  ;;  %v986_v31 = vmul.f32 %v980_v57, %v4464_v40  ;;  %v4836_v8 = vmul.f32 %v938_v12, %v918_v49  ;;  %v4838_v10 = vadd.f32 %v990_v47, %v988_v58 }
  0x87   : > { %v917_v29 = vsel %vm834_vm1, %v6054_v22, 0.0  ;;  %v778_v25 = vadd.f32 %v4684_v55, %v768_v15  ;;  %v865_v54 = vmul.f32 %v4601_v34, %v4472_v44  ;;  %v4843_v18 = vadd.f32 %v990_v47, %v987_v4 }
  0x88   : > { %v4846_v45 = vadd.f32 %v4636_v16, %v866_v38  ;;  %v985_v6 = vmul.f32 %v980_v57, %v4472_v44  ;;  %v864_v26 = vmul.f32 %v4601_v34, %v4466_v41  ;;  %v4851_v60 = vmul.f32 %v937_v0, %v917_v29 }
  0x89   : > { %v984_v12 = vmul.f32 %v980_v57, %v4466_v41  ;;  %v863_v55 = vmul.f32 %v4601_v34, %v4468_v42  ;;  %v983_v58 = vmul.f32 %v980_v57, %v4468_v42  ;;  %v4860_v44 = vmul.f32 %v779_v30, %v4385_v2 }
  0x8a   : > { %6055 = vst [vmem:[#allocation45_spill] sm:$0xff] %v4846_v45  ;;  %v4862_v49 = vadd.f32 %v990_v47, %v986_v31  ;;  %v4873_v34 = vmul.f32 %v778_v25, %v4395_v5  ;;  %v4876_v42 = vadd.f32 %v4636_v16, %v865_v54  ;;  %v4880_v31 = vadd.f32 %v990_v47, %v985_v6 }
  0x8b   : > { %v4883_v30 = vadd.f32 %v4636_v16, %v864_v26  ;;  %v4889_v5 = vadd.f32 %v990_v47, %v984_v12  ;;  %v4892_v29 = vadd.f32 %v4636_v16, %v863_v55  ;;  %v4894_v25 = vadd.f32 %v990_v47, %v983_v58 }
  0x8c   : > { %6056 = vst [vmem:[#allocation46_spill] sm:$0xff] %v4862_v49  ;;  %6057 = vst [vmem:[#allocation47_spill] sm:$0xff] %v4873_v34  ;;  %v6064_v55 = vand.u32 31, %v4574_v63 }
  0x8d   : > { %6058 = vst [vmem:[#allocation48_spill] sm:$0xff] %v4876_v42  ;;  %6059 = vst [vmem:[#allocation49_spill] sm:$0xff] %v4880_v31  ;;  %v6074_v42 = vld [vmem:[#allocation13_spill] sm:$0xff] }
  0x8e   : > { %6060 = vst [vmem:[#allocation50_spill] sm:$0xff] %v4883_v30  ;;  %6061 = vst [vmem:[#allocation51_spill] sm:$0xff] %v4889_v5  ;;  %vm4945_vm6 = vcmp.eq.s32.totalorder %v6064_v55, 31 }
  0x8f   : > { %6062 = vst [vmem:[#allocation52_spill] sm:$0xff] %v4892_v29  ;;  %6063 = vst [vmem:[#allocation53_spill] sm:$0xff] %v4894_v25 }
  0xbe   : > { %v4818_v1 = vpop.permute.xlu1 %439  ;;  %v434_v11 = vpop.permute.xlu0 %433 }
  0xc2   : > { %v438_v40 = vpop.permute.xlu0 %437  ;;  %v450_v51 = vpop.permute.xlu1 %449 }
  0xc3   : > { %v458_v15 = vsel %vm457_vm2, %v450_v51, %v434_v11  ;;  %v470_v38 = vsel %vm457_vm2, %v434_v11, %v450_v51 }
  0xc4   : > { %v4866_v4 = vsel %vm4773_vm3, 0.0, %v470_v38  ;;  %v4870_v41 = vsel %vm4779_vm4, 0.0, %v458_v15 }
  0xc5   : > { %v538_v57 = vrot.slane %v4866_v4, 7  ;;  %v539_v2 = vrot.slane %v4870_v41, 7  ;;  %v4887_v11 = vmul.f32 %v4631_v48, %v4866_v4  ;;  %v4903_v15 = vmul.f32 %v4608_v36, %v4870_v41 }
  0xc6   : > { %v454_v0 = vpop.permute.xlu0 %453  ;;  %v456_v22 = vpop.permute.xlu1 %455 }
  0xc7   : > { %v560_v54 = vsel %vm537_vm0, 0.0, %v538_v57  ;;  %v561_v6 = vsel %vm537_vm0, 0.0, %v539_v2  ;;  %v460_v26 = vsel %vm457_vm2, %v454_v0, %v438_v40  ;;  %v472_v51 = vsel %vm457_vm2, %v438_v40, %v454_v0 }
  0xc8   : > { %v582_v48 = vmul.f32 %v4628_v56, %v560_v54  ;;  %v4907_v16 = vsel %vm4773_vm3, 0.0, %v472_v51  ;;  %v4911_v47 = vsel %vm4779_vm4, 0.0, %v460_v26  ;;  %v583_v12 = vmul.f32 %v4605_v35, %v561_v6 }
  0xc9   : > { %v544_v56 = vrot.slane %v4907_v16, 7  ;;  %v546_v36 = vrot.slane %v4911_v47, 7  ;;  %v4923_v38 = vmul.f32 %v4643_v9, %v4907_v16  ;;  %v4927_v0 = vmul.f32 %v4648_v32, %v4911_v47 }
  0xca   : > { %v4918_v58 = vadd.f32 %v4640_v17, %v582_v48  ;;  %v436_v35 = vpop.permute.xlu0 %435  ;;  %v452_v54 = vpop.permute.xlu1 %451  ;;  %v461_v6 = vsel %vm457_vm2, %v456_v22, %v4818_v1  ;;  %v473_v17 = vsel %vm457_vm2, %v4818_v1, %v456_v22  ;;  %v6067_v22 = vand.u32 31, %v4577_v13 }
  0xcb   : > { %v459_v26 = vsel %vm457_vm2, %v452_v54, %v436_v35  ;;  %v471_v51 = vsel %vm457_vm2, %v436_v35, %v452_v54  ;;  %v480_v9 = vsel %vm4773_vm3, 0.0, %v473_v17  ;;  %v481_v32 = vsel %vm4779_vm4, 0.0, %v461_v6 }
  0xcc   : > { %v476_v48 = vsel %vm4773_vm3, 0.0, %v471_v51  ;;  %v477_v40 = vsel %vm4779_vm4, 0.0, %v459_v26  ;;  %vm4951_vm7 = vcmp.eq.s32.totalorder %v6067_v22, 31  ;;  %v4956_v54 = vadd.f32 %v4622_v52, %v583_v12 }
  0xcd   : > { %v841_v27 = vrot.slane %v4907_v16, 1  ;;  %v548_v6 = vrot.slane %v480_v9, 7  ;;  %v550_v3 = vrot.slane %v481_v32, 7  ;;  %v845_v17 = vrot.slane %v480_v9, 1 }
  0xce   : > { %v847_v26 = vrot.slane %v481_v32, 1  ;;  %v540_v51 = vrot.slane %v476_v48, 7  ;;  %v542_v55 = vrot.slane %v477_v40, 7  ;;  %v485_v63 = vpop.permute.xlu0 %484  ;;  %v487_v25 = vpop.permute.xlu1 %486  ;;  %v843_v5 = vrot.slane %v4911_v47, 1 }
  0xcf   : > { %v549_v13 = vsel %vm537_vm0, %v544_v56, %v548_v6  ;;  %v551_v22 = vsel %vm537_vm0, %v546_v36, %v550_v3  ;;  %v4963_v31 = vmul.f32 %v4658_v37, %v480_v9  ;;  %v4968_v12 = vmul.f32 %v4661_v46, %v481_v32 }
  0xd0   : > { %v588_v52 = vmul.f32 %v4650_v24, %v549_v13  ;;  %v589_v16 = vmul.f32 %v4652_v62, %v551_v22  ;;  %v4971_v49 = vmul.f32 %v4698_v61, %v476_v48  ;;  %v4974_v29 = vsel %vm834_vm1, %v841_v27, %v845_v17  ;;  %v6072_v22 = vld [vmem:[#allocation26_spill] sm:$0xff] }
  0xd1   : > { %6070 = vst [vmem:[#allocation54_spill] sm:$0xff] %v4974_v29  ;;  %v541_v47 = vsel %vm537_vm0, %v538_v57, %v540_v51  ;;  %v543_v6 = vsel %vm537_vm0, %v539_v2, %v542_v55  ;;  %v4979_v37 = vmul.f32 %v4705_v59, %v477_v40  ;;  %v857_v46 = vsel %vm834_vm1, %v845_v17, 0.0  ;;  %v6071_v59 = vld [vmem:[#allocation25_spill] sm:$0xff]  ;;  %v6075_v29 = vld [vmem:[#allocation12_spill] sm:$0xff] }
  0xd2   : > { %v4982_v24 = vadd.f32 %v4462_v39, %v588_v52  ;;  %v4985_v62 = vadd.f32 %v4470_v43, %v589_v16  ;;  %v858_v61 = vsel %vm834_vm1, %v847_v26, 0.0  ;;  %v493_v9 = vpop.permute.xlu0 %492  ;;  %v495_v32 = vpop.permute.xlu1 %494  ;;  %v545_v3 = vsel %vm537_vm0, %v540_v51, %v544_v56  ;;  %v6073_v52 = vld [vmem:[#allocation27_spill] sm:$0xff] }
  0xd3   : > { %v547_v57 = vsel %vm537_vm0, %v542_v55, %v546_v36  ;;  %v584_v2 = vmul.f32 %v4673_v21, %v541_v47  ;;  %v585_v13 = vmul.f32 %v6071_v59, %v543_v6  ;;  %v586_v39 = vmul.f32 %v6072_v22, %v545_v3  ;;  %v6076_v51 = vld [vmem:[#allocation23_spill] sm:$0xff]  ;;  %v6077_v47 = vld [vmem:[#allocation14_spill] sm:$0xff] }
  0xd4   : > { %v587_v30 = vmul.f32 %v6073_v52, %v547_v57  ;;  %v836_v43 = vrot.slane %v476_v48, 1  ;;  %v839_v16 = vrot.slane %v477_v40, 1  ;;  %v501_v56 = vsel %vm500_vm5, %v485_v63, %v487_v25  ;;  %v6078_v40 = vld [vmem:[#allocation15_spill] sm:$0xff] }
  0xd5   : > { %v4996_v17 = vadd.f32 %v6074_v42, %v584_v2  ;;  %v4999_v34 = vadd.f32 %v6075_v29, %v585_v13  ;;  %v517_v36 = vsel %vm500_vm5, %v487_v25, %v485_v63  ;;  %v5004_v21 = vsel %vm834_vm1, %v843_v5, %v847_v26  ;;  %v6079_v29 = vld [vmem:[#allocation24_spill] sm:$0xff] }
  0xd6   : > { %v5007_v55 = vmul.f32 %v6076_v51, %v857_v46  ;;  %v5010_v6 = vadd.f32 %v6077_v47, %v586_v39  ;;  %v5013_v48 = vadd.f32 %v6078_v40, %v587_v30  ;;  %v497_v42 = vpop.permute.xlu0 %496  ;;  %v499_v3 = vpop.permute.xlu1 %498  ;;  %v5016_v57 = vmul.f32 %v6079_v29, %v858_v61  ;;  %v6086_v51 = vld [vmem:[#allocation29_spill] sm:$0xff] }
  0xd7   : > { %v6080_v2 = vrot.slane %v4866_v4, 1  ;;  %v5025_v25 = vsel %vm4945_vm6, 0.0, %v501_v56  ;;  %v5029_v26 = vsel %vm4951_vm7, 0.0, %v517_v36  ;;  %v6081_v30 = vrot.slane %v4870_v41, 1  ;;  %v6085_v36 = vld [vmem:[#allocation28_spill] sm:$0xff] }
  0xd8   : > { %v5037_v61 = vsel %vm834_vm1, %v836_v43, %v841_v27  ;;  %v666_v4 = vrot.slane %v5025_v25, 7  ;;  %v667_v59 = vrot.slane %v5029_v26, 7  ;;  %v5042_v13 = vsel %vm834_vm1, %v839_v16, %v843_v5  ;;  %v6084_v5 = vld [vmem:[#allocation30_spill] sm:$0xff] }
  0xd9   : > { %v5021_v63 = vsel %vm834_vm1, %v6080_v2, %v836_v43  ;;  %v5034_v46 = vsel %vm834_vm1, %v6081_v30, %v839_v16  ;;  %6082 = vst [vmem:[#allocation25_spill] sm:$0xff] %v5037_v61  ;;  %6083 = vst [vmem:[#allocation26_spill] sm:$0xff] %v5042_v13  ;;  %v818_v22 = vmul.f32 %v4717_v28, %v5025_v25  ;;  %v958_v29 = vrot.slane %v5029_v26, 1  ;;  %v6090_v61 = vld [vmem:[#allocation32_spill] sm:$0xff]  ;;  %v6092_v13 = vld [vmem:[#allocation34_spill] sm:$0xff] }
  0xda   : > { %v503_v39 = vsel %vm500_vm5, %v493_v9, %v495_v32  ;;  %v519_v41 = vsel %vm500_vm5, %v495_v32, %v493_v9  ;;  %v688_v52 = vsel %vm537_vm0, 0.0, %v666_v4  ;;  %v689_v56 = vsel %vm537_vm0, 0.0, %v667_v59  ;;  %v489_v32 = vpop.permute.xlu0 %488  ;;  %v491_v40 = vpop.permute.xlu1 %490 }
  0xdb   : > { %v5052_v27 = vsel %vm4945_vm6, 0.0, %v503_v39  ;;  %v5056_v43 = vsel %vm4951_vm7, 0.0, %v519_v41  ;;  %v710_v16 = vmul.f32 %v6084_v5, %v688_v52  ;;  %v711_v28 = vmul.f32 %v6085_v36, %v689_v56  ;;  %v6087_v39 = vld [vmem:[#allocation31_spill] sm:$0xff] }
  0xdc   : > { %v819_v47 = vmul.f32 %v6086_v51, %v5029_v26  ;;  %v672_v2 = vrot.slane %v5052_v27, 7  ;;  %v674_v30 = vrot.slane %v5056_v43, 7  ;;  %v5068_v41 = vmul.f32 %v6087_v39, %v5052_v27 }
  0xdd   : > { %v718_v52 = vadd.f32 %v710_v16, %v4918_v58  ;;  %v719_v56 = vadd.f32 %v711_v28, %v4956_v54  ;;  %v504_v5 = vsel %vm500_vm5, %v497_v42, %v499_v3  ;;  %v520_v36 = vsel %vm500_vm5, %v499_v3, %v497_v42 }
  0xde   : > { %6088 = vst [vmem:[#allocation27_spill] sm:$0xff] %v5068_v41  ;;  %v5076_v51 = vmul.f32 %v4729_v7, %v5056_v43  ;;  %v5080_v26 = vsel %vm4945_vm6, 0.0, %v504_v5  ;;  %v5084_v39 = vsel %vm4951_vm7, 0.0, %v520_v36  ;;  %v502_v58 = vsel %vm500_vm5, %v489_v32, %v491_v40 }
  0xdf   : > { %v754_v54 = vadd.f32 %v4887_v11, %v718_v52  ;;  %v755_v16 = vadd.f32 %v4903_v15, %v719_v56  ;;  %v676_v42 = vrot.slane %v5080_v26, 7  ;;  %v678_v3 = vrot.slane %v5084_v39, 7  ;;  %v6091_v52 = vld [vmem:[#allocation33_spill] sm:$0xff] }
  0xe0   : > { %6089 = vst [vmem:[#allocation13_spill] sm:$0xff] %v5076_v51  ;;  %v824_v7 = vmul.f32 %v4750_v19, %v5080_v26  ;;  %v5992_v28 = vrot.slane %v5080_v26, 1  ;;  %v518_v36 = vsel %vm500_vm5, %v491_v40, %v489_v32  ;;  %v6093_v19 = vld [vmem:[#allocation35_spill] sm:$0xff]  ;;  %v5112_v40 = vsel %vm4945_vm6, 0.0, %v502_v58 }
  0xe1   : > { %v790_v9 = vadd.f32 %v4740_v53, %v754_v54  ;;  %v791_v41 = vadd.f32 %v6090_v61, %v755_v16  ;;  %v677_v11 = vsel %vm537_vm0, %v672_v2, %v676_v42  ;;  %v679_v15 = vsel %vm537_vm0, %v674_v30, %v678_v3 }
  0xe2   : > { %v716_v56 = vmul.f32 %v6091_v52, %v677_v11  ;;  %v717_v51 = vmul.f32 %v6092_v13, %v679_v15  ;;  %v825_v45 = vmul.f32 %v6093_v19, %v5084_v39  ;;  %v977_v5 = vsel %vm834_vm1, %v5992_v28, 0.0  ;;  %v6096_v15 = vld [vmem:[#allocation39_spill] sm:$0xff]  ;;  %v6097_v52 = vld [vmem:[#allocation36_spill] sm:$0xff]  ;;  %v6098_v19 = vld [vmem:[#allocation38_spill] sm:$0xff] }
  0xe3   : > { %v826_v32 = vadd.f32 %v818_v22, %v790_v9  ;;  %v6094_v53 = vrot.slane %v5084_v39, 1  ;;  %v5116_v54 = vsel %vm4951_vm7, 0.0, %v518_v36  ;;  %v668_v42 = vrot.slane %v5112_v40, 7  ;;  %v6099_v28 = vld [vmem:[#allocation40_spill] sm:$0xff] }
  0xe4   : > { %v724_v13 = vadd.f32 %v716_v56, %v4982_v24  ;;  %v725_v16 = vadd.f32 %v717_v51, %v4985_v62  ;;  %v670_v22 = vrot.slane %v5116_v54, 7  ;;  %v827_v9 = vadd.f32 %v819_v47, %v791_v41  ;;  %v6095_v47 = vld [vmem:[#allocation37_spill] sm:$0xff] }
  0xe5   : > { %v978_v61 = vsel %vm834_vm1, %v6094_v53, 0.0  ;;  %v820_v3 = vmul.f32 %v4789_v20, %v5112_v40  ;;  %v956_v1 = vrot.slane %v5112_v40, 1  ;;  %v959_v58 = vrot.slane %v5116_v54, 1  ;;  %v6125_v40 = vld [vmem:[#allocation21_spill] sm:$0xff] }
  0xe6   : > { %v760_v35 = vadd.f32 %v4963_v31, %v724_v13  ;;  %v761_v36 = vadd.f32 %v4968_v12, %v725_v16  ;;  %v669_v24 = vsel %vm537_vm0, %v666_v4, %v668_v42  ;;  %v671_v62 = vsel %vm537_vm0, %v667_v59, %v670_v22  ;;  %v6100_v13 = vld [vmem:[#allocation41_spill] sm:$0xff] }
  0xe7   : > { %v673_v51 = vsel %vm537_vm0, %v668_v42, %v672_v2  ;;  %v675_v11 = vsel %vm537_vm0, %v670_v22, %v674_v30  ;;  %v712_v41 = vmul.f32 %v6095_v47, %v669_v24  ;;  %v713_v20 = vmul.f32 %v6096_v15, %v671_v62  ;;  %v6101_v2 = vld [vmem:[#allocation43_spill] sm:$0xff]  ;;  %v6102_v62 = vld [vmem:[#allocation42_spill] sm:$0xff] }
  0xe8   : > { %v796_v56 = vadd.f32 %v6097_v52, %v760_v35  ;;  %v797_v53 = vadd.f32 %v6098_v19, %v761_v36  ;;  %v714_v31 = vmul.f32 %v6099_v28, %v673_v51  ;;  %v715_v12 = vmul.f32 %v6100_v13, %v675_v11  ;;  %v6107_v19 = vld [vmem:[#allocation45_spill] sm:$0xff] }
  0xe9   : > { %v720_v4 = vadd.f32 %v712_v41, %v4996_v17  ;;  %v721_v59 = vadd.f32 %v713_v20, %v4999_v34  ;;  %v880_v16 = vmul.f32 %v6101_v2, %v5034_v46  ;;  %v960_v30 = vsel %vm834_vm1, %v958_v29, %v959_v58  ;;  %v6106_v20 = vld [vmem:[#allocation17_spill] sm:$0xff]  ;;  %v6114_v2 = vld [vmem:[#allocation26_spill] sm:$0xff] }
  0xea   : > { %v832_v42 = vadd.f32 %v824_v7, %v796_v56  ;;  %v833_v22 = vadd.f32 %v825_v45, %v797_v53  ;;  %v722_v35 = vadd.f32 %v714_v31, %v5010_v6  ;;  %v723_v36 = vadd.f32 %v715_v12, %v5013_v48  ;;  %v6105_v7 = vld [vmem:[#allocation16_spill] sm:$0xff]  ;;  %v6111_v12 = vld [vmem:[#allocation54_spill] sm:$0xff] }
  0xeb   : > { %v756_v28 = vadd.f32 %v4971_v49, %v720_v4  ;;  %v757_v24 = vadd.f32 %v4979_v37, %v721_v59  ;;  %v888_v17 = vadd.f32 %v880_v16, %v827_v9  ;;  %v1000_v34 = vmul.f32 %v4823_v23, %v960_v30  ;;  %v6104_v49 = vld [vmem:[#allocation44_spill] sm:$0xff]  ;;  %v6115_v16 = vld [vmem:[#allocation50_spill] sm:$0xff] }
  0xec   : > { %v821_v46 = vmul.f32 %v6102_v62, %v5116_v54  ;;  %v879_v51 = vmul.f32 %v4826_v33, %v5021_v63  ;;  %v6103_v45 = vrot.slane %v5025_v25, 1  ;;  %v894_v48 = vadd.f32 %v5016_v57, %v833_v22  ;;  %v6116_v22 = vld [vmem:[#allocation27_spill] sm:$0xff]  ;;  %v6119_v62 = vld [vmem:[#allocation18_spill] sm:$0xff] }
  0xed   : > { %v792_v29 = vadd.f32 %v6104_v49, %v756_v28  ;;  %v793_v37 = vadd.f32 %v4821_v50, %v757_v24  ;;  %v948_v23 = vadd.f32 %v6105_v7, %v888_v17  ;;  %v1006_v9 = vmul.f32 %v4838_v10, %v978_v61  ;;  %v6118_v28 = vld [vmem:[#allocation52_spill] sm:$0xff] }
  0xee   : > { %v957_v6 = vsel %vm834_vm1, %v6103_v45, %v956_v1  ;;  %v887_v11 = vadd.f32 %v879_v51, %v826_v32  ;;  %v954_v33 = vadd.f32 %v4836_v8, %v894_v48  ;;  %v893_v63 = vadd.f32 %v5007_v55, %v832_v42  ;;  %v6120_v51 = vld [vmem:[#allocation46_spill] sm:$0xff]  ;;  %v6122_v49 = vld [vmem:[#allocation20_spill] sm:$0xff] }
  0xef   : > { %v999_v47 = vmul.f32 %v4829_v14, %v957_v6  ;;  %v828_v25 = vadd.f32 %v820_v3, %v792_v29  ;;  %v829_v41 = vadd.f32 %v821_v46, %v793_v37  ;;  %v5167_v15 = vadd.f32 %v1000_v34, %v948_v23  ;;  %v6123_v37 = vld [vmem:[#allocation51_spill] sm:$0xff] }
  0xf0   : > { %v759_v57 = vadd.f32 %v4927_v0, %v723_v36  ;;  %v947_v52 = vadd.f32 %v6106_v20, %v887_v11  ;;  %v5171_v50 = vadd.f32 %v1006_v9, %v954_v33  ;;  %v953_v56 = vadd.f32 %v4851_v60, %v893_v63  ;;  %v6117_v36 = vld [vmem:[#allocation25_spill] sm:$0xff]  ;;  %v6124_v9 = vld [vmem:[#allocation19_spill] sm:$0xff] }
  0xf1   : > { %v1005_v10 = vmul.f32 %v4843_v18, %v977_v5  ;;  %v963_v14 = vrot.slane %v5056_v43, 1  ;;  %v1016_v8 = vmax.f32 %v5167_v15, 0.0  ;;  %v758_v32 = vadd.f32 %v4923_v38, %v722_v35  ;;  %v6108_v18 = vld [vmem:[#allocation13_spill] sm:$0xff] }
  0xf2   : > { %v795_v55 = vadd.f32 %v4860_v44, %v759_v57  ;;  %v961_v61 = vrot.slane %v5052_v27, 1  ;;  %v1007_v3 = vadd.f32 %v999_v47, %v947_v52  ;;  %v884_v53 = vmul.f32 %v6107_v19, %v5004_v21  ;;  %v6110_v44 = vld [vmem:[#allocation47_spill] sm:$0xff]  ;;  %v6112_v27 = vld [vmem:[#allocation48_spill] sm:$0xff] }
  0xf3   : > { %v1013_v0 = vadd.f32 %v1005_v10, %v953_v56  ;;  %1033 = vrot.lane.b32.xlu1 %v1016_v8, %s5993_s29  ;;  %v1022_v60 = vmax.f32 %v5171_v50, 0.0  ;;  %v6109_v43 = vrot.slane %v5084_v39, 1  ;;  %v794_v13 = vadd.f32 %v6110_v44, %v758_v32 }
  0xf4   : > { %v831_v5 = vadd.f32 %v6108_v18, %v795_v55  ;;  %v1015_v38 = vmax.f32 %v1007_v3, 0.0  ;;  %v883_v4 = vmul.f32 %v6112_v27, %v6111_v12  ;;  %v6113_v59 = vrot.slane %v5080_v26, 1 }
  0xf5   : > { %v968_v31 = vsel %vm834_vm1, %v963_v14, %v6109_v43  ;;  %v882_v30 = vmul.f32 %v6115_v16, %v6114_v2  ;;  %v830_v35 = vadd.f32 %v6116_v22, %v794_v13  ;;  %v964_v39 = vsel %vm834_vm1, %v959_v58, %v963_v14  ;;  %v6121_v58 = vld [vmem:[#allocation49_spill] sm:$0xff] }
  0xf6   : > { %v966_v21 = vsel %vm834_vm1, %v961_v61, %v6113_v59  ;;  %v892_v42 = vadd.f32 %v884_v53, %v831_v5  ;;  %v881_v24 = vmul.f32 %v6118_v28, %v6117_v36  ;;  %1031 = vrot.lane.b32.xlu0 %v1015_v38, %s5993_s29  ;;  %v1021_v17 = vmax.f32 %v1013_v0, 0.0 }
  0xf7   : > { %v890_v34 = vadd.f32 %v882_v30, %v829_v41  ;;  %v962_v26 = vsel %vm834_vm1, %v956_v1, %v961_v61  ;;  %1045 = vrot.lane.b32.xlu1 %v1022_v60, %s5993_s29  ;;  %v1004_v45 = vmul.f32 %v6120_v51, %v968_v31  ;;  %v891_v54 = vadd.f32 %v883_v4, %v830_v35  ;;  %v6126_v1 = vld [vmem:[#allocation53_spill] sm:$0xff] }
  0xf8   : > { %v952_v46 = vadd.f32 %v6119_v62, %v892_v42  ;;  %v889_v6 = vadd.f32 %v881_v24, %v828_v25  ;;  %v1003_v48 = vmul.f32 %v6121_v58, %v966_v21  ;;  %v1002_v7 = vmul.f32 %v6123_v37, %v964_v39 }
  0xf9   : > { %v950_v29 = vadd.f32 %v6122_v49, %v890_v34  ;;  %v951_v11 = vadd.f32 %v6124_v9, %v891_v54  ;;  %v1001_v33 = vmul.f32 %v6126_v1, %v962_v26  ;;  %v4228_v50 = vmov 0.0   ;;  %v1218_v9 = vld [vmem:[%s6128_s3 + $0x78] sm:$0xff]  ;;  %v1232_v1 = vld [vmem:[%s6128_s3 + $0xe8] sm:$0xff] }
  0xfa   : > { %v1012_v23 = vadd.f32 %v1004_v45, %v952_v46  ;;  %v949_v47 = vadd.f32 %v6125_v40, %v889_v6  ;;  %1043 = vrot.lane.b32.xlu0 %v1021_v17, %s5993_s29  ;;  %1190 = vmatprep.mubr.f32.mxu1 %v4228_v50  ;;  %v1217_v40 = vld [vmem:[%s6128_s3 + $0x70] sm:$0xff] }
  0xfb   : > { %v1010_v63 = vadd.f32 %v1002_v7, %v950_v29  ;;  %v1011_v15 = vadd.f32 %v1003_v48, %v951_v11  ;;  %4000 = vmatprep.subr.mxu0 %v4228_v50  ;;  %v1117_v7 = vld [vmem:[%s6127_s2] sm:$0xff]  ;;  %v1233_v11 = vld [vmem:[%s6128_s3 + $0xf0] sm:$0xff]  ;;  %4004 = vmatprep.mubr.msk.f32.mxu0 %vm4229_vm11, %v4228_v50 }
  0xfc   : > { %v1020_v41 = vmax.f32 %v1012_v23, 0.0  ;;  %v1009_v57 = vadd.f32 %v1001_v33, %v949_v47  ;;  %v1234_v23 = vld [vmem:[%s6128_s3 + $0xf8] sm:$0xff]  ;;  %v1118_v47 = vld [vmem:[%s6127_s2 + $0x8] sm:$0xff]  ;;  %s5414_s2 = sld [smem:[#allocation2 + $0x87]] }
  0xfd   : > { %v1019_v25 = vmax.f32 %v1011_v15, 0.0  ;;  %v1018_v20 = vmax.f32 %v1010_v63, 0.0  ;;  %v1216_v33 = vld [vmem:[%s6128_s3 + $0x68] sm:$0xff]  ;;  %v1231_v63 = vld [vmem:[%s6128_s3 + $0xe0] sm:$0xff]  ;;  %v1230_v15 = vld [vmem:[%s6128_s3 + $0xd8] sm:$0xff] }
  0xfe   : > { %1041 = vrot.lane.b32.xlu1 %v1020_v41, %s5993_s29  ;;  %v1017_v52 = vmax.f32 %v1009_v57, 0.0  ;;  %v1214_v57 = vld [vmem:[%s6128_s3 + $0x58] sm:$0xff] }
  0xff   : > { %1039 = vrot.lane.b32.xlu0 %v1019_v25, %s5993_s29 }
 0x102   : > { %1037 = vrot.lane.b32.xlu1 %v1018_v20, %s5993_s29 }
 0x103   : > { %1035 = vrot.lane.b32.xlu0 %v1017_v52, %s5993_s29  ;;  %s5396_s29 = sld [smem:[#allocation2 + $0x8b]] }
 0x165   : > { %v1034_v56 = vpop.permute.xlu1 %1033 }
 0x168   : > { %v1032_v10 = vpop.permute.xlu0 %1031 }
 0x169   : > { %v1047_v14 = vsel %vm500_vm5, %v1032_v10, %v1034_v56  ;;  %v1063_v55 = vsel %vm500_vm5, %v1034_v56, %v1032_v10  ;;  %v1046_v32 = vpop.permute.xlu1 %1045  ;;  %v1212_v56 = vld [vmem:[%s6128_s3 + $0x48] sm:$0xff]  ;;  %v1227_v10 = vld [vmem:[%s6128_s3 + $0xc0] sm:$0xff] }
 0x16a   : > { %v1067_v61 = vmax.f32 %v1015_v38, %v1047_v14  ;;  %v1068_v3 = vmax.f32 %v1016_v8, %v1063_v55  ;;  %v1211_v14 = vld [vmem:[%s6128_s3 + $0x40] sm:$0xff]  ;;  %v1226_v55 = vld [vmem:[%s6128_s3 + $0xb8] sm:$0xff] }
 0x16c   : > { %v1044_v0 = vpop.permute.xlu0 %1043  ;;  %v1083_v31 = vrot.slane %v1067_v61, 1  ;;  %v1086_v44 = vrot.slane %v1068_v3, 1 }
 0x16d   : > { %v1050_v19 = vsel %vm500_vm5, %v1044_v0, %v1046_v32  ;;  %v1066_v53 = vsel %vm500_vm5, %v1046_v32, %v1044_v0  ;;  %v1210_v32 = vld [vmem:[%s6128_s3 + $0x38] sm:$0xff]  ;;  %v1224_v0 = vld [vmem:[%s6128_s3 + $0xa8] sm:$0xff] }
 0x16e   : > { %v1073_v18 = vmax.f32 %v1021_v17, %v1050_v19  ;;  %v1074_v5 = vmax.f32 %v1022_v60, %v1066_v53  ;;  %v1208_v19 = vld [vmem:[%s6128_s3 + $0x28] sm:$0xff]  ;;  %v1223_v53 = vld [vmem:[%s6128_s3 + $0xa0] sm:$0xff] }
 0x170   : > { %v1042_v43 = vpop.permute.xlu1 %1041  ;;  %v1093_v13 = vrot.slane %v1073_v18, 1  ;;  %v1095_v12 = vrot.slane %v1074_v5, 1 }
 0x171   : > { %v1040_v27 = vpop.permute.xlu0 %1039 }
 0x172   : > { %v1049_v4 = vsel %vm500_vm5, %v1040_v27, %v1042_v43  ;;  %v1065_v59 = vsel %vm500_vm5, %v1042_v43, %v1040_v27  ;;  %v1108_v38 = vsel %vm834_vm1, %v1095_v12, %v1086_v44  ;;  %v1107_v8 = vsel %vm834_vm1, %v1093_v13, %v1083_v31  ;;  %v1206_v43 = vld [vmem:[%s6128_s3 + $0x18] sm:$0xff]  ;;  %v1219_v27 = vld [vmem:[%s6128_s3 + $0x80] sm:$0xff] }
 0x173   : > { %v1071_v21 = vmax.f32 %v1019_v25, %v1049_v4  ;;  %v1072_v2 = vmax.f32 %v1020_v41, %v1065_v59  ;;  %v1116_v30 = vmax.f32 %v1074_v5, %v1108_v38  ;;  %v1115_v42 = vmax.f32 %v1073_v18, %v1107_v8  ;;  %v1215_v41 = vld [vmem:[%s6128_s3 + $0x60] sm:$0xff]  ;;  %v1229_v25 = vld [vmem:[%s6128_s3 + $0xd0] sm:$0xff]  ;;  %v1222_v5 = vld [vmem:[%s6128_s3 + $0x98] sm:$0xff] }
 0x174   : > { %v1038_v16 = vpop.permute.xlu1 %1037  ;;  %v1207_v18 = vld [vmem:[%s6128_s3 + $0x20] sm:$0xff] }
 0x175   : > { %v1089_v60 = vrot.slane %v1071_v21, 1  ;;  %v1091_v22 = vrot.slane %v1072_v2, 1  ;;  %v1036_v35 = vpop.permute.xlu0 %1035  ;;  %1150 = vmatprep.subr.mxu1 %v1116_v30  ;;  %v1203_v4 = vld [vmem:[%s6128_s3] sm:$0xff] }
 0x176   : > { %v1048_v39 = vsel %vm500_vm5, %v1036_v35, %v1038_v16  ;;  %v1064_v36 = vsel %vm500_vm5, %v1038_v16, %v1036_v35  ;;  %1151 = vmatpush1.msra.mxu1 %v1115_v42  ;;  %v1312_v42 = vstv %s3811_s26  ;;  %s5400_s26 = sld [smem:[#allocation2 + $0x8e]] }
 0x177   : > { %v1069_v28 = vmax.f32 %v1017_v52, %v1048_v39  ;;  %v1070_v24 = vmax.f32 %v1018_v20, %v1064_v36  ;;  %v1096_v17 = vsel %vm834_vm1, %v1091_v22, %v1095_v12  ;;  %v1094_v34 = vsel %vm834_vm1, %v1089_v60, %v1093_v13  ;;  %v1213_v20 = vld [vmem:[%s6128_s3 + $0x50] sm:$0xff]  ;;  %v1228_v52 = vld [vmem:[%s6128_s3 + $0xc8] sm:$0xff] }
 0x178   : > { %v1114_v26 = vmax.f32 %v1072_v2, %v1096_v17  ;;  %v1113_v62 = vmax.f32 %v1071_v21, %v1094_v34  ;;  %v1220_v13 = vld [vmem:[%s6128_s3 + $0x88] sm:$0xff]  ;;  %v1315_v36 = vstv %s3812_s27  ;;  %s5402_s27 = sld [smem:[#allocation2 + $0x88]] }
 0x179   : > { %v1084_v46 = vrot.slane %v1069_v28, 1  ;;  %v1087_v51 = vrot.slane %v1070_v24, 1  ;;  %v1204_v12 = vld [vmem:[%s6128_s3 + $0x8] sm:$0xff] }
 0x17a   : > { %1152 = vmatprep.subr.mxu1 %v1114_v26 }
 0x17b   : > { %1153 = vmatpush1.msra.mxu1 %v1113_v62  ;;  %v1092_v45 = vsel %vm834_vm1, %v1087_v51, %v1091_v22  ;;  %v1090_v54 = vsel %vm834_vm1, %v1084_v46, %v1089_v60  ;;  %v1088_v6 = vsel %vm834_vm1, %v1086_v44, %v1087_v51  ;;  %v1085_v49 = vsel %vm834_vm1, %v1083_v31, %v1084_v46  ;;  %v1221_v31 = vld [vmem:[%s6128_s3 + $0x90] sm:$0xff] }
 0x17c   : > { %v1112_v58 = vmax.f32 %v1070_v24, %v1092_v45  ;;  %v1111_v48 = vmax.f32 %v1069_v28, %v1090_v54  ;;  %v1110_v29 = vmax.f32 %v1068_v3, %v1088_v6  ;;  %v1109_v37 = vmax.f32 %v1067_v61, %v1085_v49  ;;  %v1225_v61 = vld [vmem:[%s6128_s3 + $0xb0] sm:$0xff] }
 0x17d   : > { %v1209_v3 = vld [vmem:[%s6128_s3 + $0x30] sm:$0xff]  ;;  %v1368_v51 = vstv %s5348_s28  ;;  %s5404_s28 = sld [smem:[#allocation2 + $0x84]] }
 0x17e   : > { %1154 = vmatprep.subr.mxu1 %v1112_v58  ;;  %v1205_v44 = vld [vmem:[%s6128_s3 + $0x10] sm:$0xff]  ;;  %v1372_v58 = vstv %s5353_s30  ;;  %s5406_s30 = sld [smem:[#allocation2 + $0x91]] }
 0x17f   : > { %1155 = vmatpush1.msra.mxu1 %v1111_v48  ;;  %v1460_v48 = vstv %s5355_s25  ;;  %s5417_s3 = sld [smem:[#allocation2 + $0x90]] }
 0x180   : > { %1156 = vmatprep.subr.mxu1 %v1110_v29  ;;  %s3836_s25 = sld [smem:[#allocation2 + $0x103]] }
 0x181   : > { %1157 = vmatpush1.msra.mxu1 %v1109_v37  ;;  %v1464_v37 = vstv %s5364_s12  ;;  %s5589_s12 = sld [smem:[#allocation2 + $0x10b]] }
 0x182   : > { %3809 = vmatmul.mubr.msk.f32.vlgmr.msra.gmra.mxu1 %vm1119_vm8, %v1117_v7  ;;  %3872 = vmatprep.subr.mxu1 %v1234_v23 }
 0x183   : > { %1196 = vmatprep.mubr.f32.mxu1 %v4228_v50  ;;  %3873 = vmatpush3.msra.mxu1 %v1218_v9 }
 0x184   : > { %3874 = vmatprep.subr.mxu1 %v1233_v11 }
 0x185   : > { %3875 = vmatpush3.msra.mxu1 %v1217_v40 }
 0x186   : > { %3810 = vmatmul.mubr.msk.f32.gmra.mxu1 %vm1119_vm8, %v1118_v47  ;;  %3876 = vmatprep.subr.mxu1 %v1232_v1  ;;  %v6130_v47 = vld [vmem:[#allocation22_spill] sm:$0xff] }
 0x187   : > { %3877 = vmatpush3.msra.mxu1 %v1216_v33  ;;  %v1320_v1 = vand.u32 15, %v6130_v47  ;;  %v1350_v33 = vstv %s5394_s18  ;;  %s5591_s18 = sld [smem:[#allocation2 + $0x10c]] }
 0x188   : > { %3878 = vmatprep.subr.mxu1 %v1231_v63 }
 0x189   : > { %3879 = vmatpush3.msra.mxu1 %v1215_v41  ;;  %vm5424_vm9 = vcmp.eq.s32.totalorder %v1320_v1, 0  ;;  %v1354_v41 = vstv %s5396_s29  ;;  %vm5443_vm10 = vcmp.eq.s32.totalorder %v1320_v1, 15  ;;  %s5593_s29 = sld [smem:[#allocation2 + $0x104]] }
 0x18a   : > { %3880 = vmatprep.subr.mxu1 %v1230_v15  ;;  %v1400_v15 = vstv %s5398_s21  ;;  %s5595_s21 = sld [smem:[#allocation2 + $0x105]] }
 0x18b   : > { %3881 = vmatpush3.msra.mxu1 %v1214_v57 }
 0x18c   : > { %3882 = vmatprep.subr.mxu1 %v1229_v25 }
 0x18d   : > { %3883 = vmatpush3.msra.mxu1 %v1213_v20  ;;  %v1388_v20 = vstv %s5404_s28  ;;  %s5604_s28 = sld [smem:[#allocation2 + $0x107]] }
 0x18e   : > { %3884 = vmatprep.subr.mxu1 %v1228_v52  ;;  %v1404_v52 = vstv %s5400_s26  ;;  %s5598_s26 = sld [smem:[#allocation2 + $0x106]] }
 0x18f   : > { %3885 = vmatpush3.msra.mxu1 %v1212_v56 }
 0x190   : > { %3886 = vmatprep.subr.mxu1 %v1227_v10  ;;  %v1442_v10 = vstv %s5402_s27  ;;  %s5602_s27 = sld [smem:[#allocation2 + $0x10d]] }
 0x191   : > { %3887 = vmatpush3.msra.mxu1 %v1211_v14  ;;  %v1446_v14 = vstv %s5406_s30  ;;  %s5606_s30 = sld [smem:[#allocation2 + $0x10e]] }
 0x192   : > { %3888 = vmatprep.subr.mxu1 %v1226_v55  ;;  %v1412_v55 = vstv %s5410_s0  ;;  %s5608_s0 = sld [smem:[#allocation2 + $0x10f]] }
 0x193   : > { %3889 = vmatpush3.msra.mxu1 %v1210_v32 }
 0x194   : > { %3890 = vmatprep.subr.mxu1 %v1225_v61 }
 0x195   : > { %3891 = vmatpush3.msra.mxu1 %v1209_v3  ;;  %v1416_v3 = vstv %s5412_s1  ;;  %s5610_s1 = sld [smem:[#allocation2 + $0x108]] }
 0x196   : > { %3892 = vmatprep.subr.mxu1 %v1224_v0  ;;  %v1424_v0 = vstv %s5414_s2  ;;  %s6135_s2 = smov 1  }
 0x197   : > { %3893 = vmatpush3.msra.mxu1 %v1208_v19 }
 0x198   : > { %3894 = vmatprep.subr.mxu1 %v1223_v53 }
 0x199   : > { %3895 = vmatpush3.msra.mxu1 %v1207_v18 }
 0x19a   : > { %3896 = vmatprep.subr.mxu1 %v1222_v5 }
 0x19b   : > { %3897 = vmatpush3.msra.mxu1 %v1206_v43 }
 0x19c   : > { %3898 = vmatprep.subr.mxu1 %v1221_v31 }
 0x19d   : > { %3899 = vmatpush3.msra.mxu1 %v1205_v44 }
 0x19e   : > { %3900 = vmatprep.subr.mxu1 %v1220_v13 }
 0x19f   : > { %3901 = vmatpush3.msra.mxu1 %v1204_v12 }
 0x1a0   : > { %3902 = vmatprep.subr.mxu1 %v1219_v27 }
 0x1a1   : > { %3903 = vmatpush3.msra.mxu1 %v1203_v4  ;;  %v1428_v4 = vstv %s5417_s3  ;;  %s4230_s3 = smov 65  }
 0x242   : > { %v1192_v59 = vpop.f32.mrf.mxu1 }
 0x244   : > { %v1194_v38 = vpop.f32.mrf.mxu1 }
 0x245   : > { %1299 = vmatprep.mubr.f32.mxu1 %v1194_v38  ;;  %v1478_v38 = vstv %s5419_s6  ;;  %s4231_s6 = smov 63  }
 0x246   : > { %v1198_v8 = vpop.f32.mrf.mxu1  ;;  %1300 = vmatmul.mubr.f32.vlgmr.msra.gmra.mxu1 %v1192_v59 }
 0x248   : > { %v1200_v21 = vpop.f32.mrf.mxu1 }
 0x249   : > { %1304 = vmatprep.mubr.f32.mxu1 %v1200_v21 }
 0x24a   : > { %1305 = vmatmul.mubr.f32.gmra.mxu1 %v1198_v8  ;;  %v1482_v8 = vstv %s5422_s22  ;;  %s3833_s22 = sld [smem:[#allocation2 + $0x101]] }
 0x24b   : > { %1895 = vmatprep.mubr.f32.mxu1 %v4228_v50 }
 0x306   : > { %v3904_v2 = vpop.f32.mrf.mxu1 }
 0x308   : > { %v3905_v16 = vpop.f32.mrf.mxu1 }
 0x309   : > { %v5344_v30 = vadd.f32 %v3905_v16, %v3904_v2 }
 0x30a   : > { %v3907_v60 = vpop.f32.mrf.mxu1 }
 0x30b   : > { %1324 = vrot.lane.b32.xlu0 %v5344_v30, %s5995_s20  ;;  %v1313_v35 = vmul.f32 %v5344_v30, %v1312_v42  ;;  %v1361_v17 = vrot.slane %v5344_v30, 7  ;;  %v1453_v29 = vrot.slane %v5344_v30, 1 }
 0x30c   : > { %v3908_v22 = vpop.f32.mrf.mxu1 }
 0x30d   : > { %v5351_v39 = vadd.f32 %v3908_v22, %v3907_v60  ;;  %v1316_v34 = vadd.f32 %v1315_v36, %v1313_v35  ;;  %v1366_v2 = vsel %vm537_vm0, 0.0, %v1361_v17 }
 0x30f   : > { %v1314_v28 = vmul.f32 %v5351_v39, %v1312_v42  ;;  %1326 = vrot.lane.b32.xlu1 %v5351_v39, %s5995_s20  ;;  %1333 = vrot.lane.b32.xlu0 %v5344_v30, %s6129_s11  ;;  %v1362_v24 = vrot.slane %v5351_v39, 7  ;;  %v5374_v45 = vmax.f32 %v1316_v34, 0.0  ;;  %v1454_v6 = vrot.slane %v5351_v39, 1  ;;  %s5408_s20 = sld [smem:[#allocation2 + $0x8d]] }
 0x311   : > { %v1317_v26 = vadd.f32 %v1315_v36, %v1314_v28  ;;  %v1363_v62 = vsel %vm537_vm0, %v1361_v17, %v1362_v24  ;;  %v1455_v23 = vsel %vm834_vm1, %v1453_v29, %v1454_v6  ;;  %v1461_v9 = vmul.f32 %v1460_v48, %v5374_v45 }
 0x312   : > { %v1351_v57 = vmul.f32 %v1350_v33, %v5374_v45  ;;  %v1369_v25 = vmul.f32 %v1368_v51, %v5374_v45  ;;  %v1401_v53 = vmul.f32 %v1400_v15, %v5374_v45  ;;  %v1389_v5 = vmul.f32 %v1388_v20, %v5374_v45 }
 0x313   : > { %v5369_v46 = vmax.f32 %v1317_v26, 0.0  ;;  %1335 = vrot.lane.b32.xlu1 %v5351_v39, %s6129_s11  ;;  %v1465_v11 = vadd.f32 %v1464_v37, %v1461_v9  ;;  %v1413_v13 = vmul.f32 %v1412_v55, %v5374_v45  ;;  %v1443_v35 = vmul.f32 %v1442_v10, %v5374_v45 }
 0x314   : > { %v1355_v31 = vadd.f32 %v1354_v41, %v1351_v57  ;;  %v1373_v44 = vadd.f32 %v1372_v58, %v1369_v25  ;;  %v1405_v60 = vadd.f32 %v1404_v52, %v1401_v53 }
 0x315   : > { %v1370_v54 = vmul.f32 %v1368_v51, %v5369_v46  ;;  %v5392_v40 = vmul.f32 %v1465_v11, %v1455_v23  ;;  %v1392_v61 = vstv %s5408_s20  ;;  %v1352_v43 = vmul.f32 %v1350_v33, %v5369_v46  ;;  %s3834_s20 = sld [smem:[#allocation2 + $0x102]] }
 0x316   : > { %v1375_v24 = vmul.f32 %v1373_v44, %v1366_v2  ;;  %v1393_v34 = vadd.f32 %v1392_v61, %v1389_v5  ;;  %v1417_v26 = vadd.f32 %v1416_v3, %v1413_v13  ;;  %v1390_v17 = vmul.f32 %v1388_v20, %v5369_v46 }
 0x317   : > { %v1374_v49 = vadd.f32 %v1372_v58, %v1370_v54  ;;  %v1356_v28 = vadd.f32 %v1354_v41, %v1352_v43  ;;  %v1425_v54 = vmul.f32 %v1424_v0, %v5374_v45  ;;  %v1402_v23 = vmul.f32 %v1400_v15, %v5369_v46 }
 0x318   : > { %v1447_v1 = vadd.f32 %v1446_v14, %v1443_v35  ;;  %v1414_v63 = vmul.f32 %v1412_v55, %v5369_v46  ;;  %v1419_v53 = vmul.f32 %v5344_v30, %v1417_v26  ;;  %v1426_v18 = vmul.f32 %v1424_v0, %v5369_v46 }
 0x319   : > { %v5382_v7 = vmul.f32 %v1374_v49, %v1363_v62  ;;  %v1429_v15 = vadd.f32 %v1428_v4, %v1425_v54  ;;  %v1406_v5 = vadd.f32 %v1404_v52, %v1402_v23  ;;  %v1479_v30 = vmul.f32 %v1478_v38, %v5374_v45 }
 0x31a   : > { %v1418_v13 = vadd.f32 %v1416_v3, %v1414_v63  ;;  %v1462_v0 = vmul.f32 %v1460_v48, %v5369_v46  ;;  %v1480_v48 = vmul.f32 %v1478_v38, %v5369_v46 }
 0x37d   : > { %v1325_v56 = vpop.permute.xlu0 %1324 }
 0x37e   : > { %v1330_v32 = vsel %vm5424_vm9, 0.0, %v1325_v56 }
 0x37f   : > { %v1343_v19 = vrot.slane %v1330_v32, 7  ;;  %v1407_v41 = vmul.f32 %v1405_v60, %v1330_v32  ;;  %v1435_v56 = vrot.slane %v1330_v32, 1  ;;  %v1420_v60 = vmul.f32 %v5351_v39, %v1418_v13  ;;  %v1590_v13 = vld [vmem:[%s5978_s5 + $0x18] sm:$0xff] }
 0x381   : > { %v1348_v12 = vsel %vm537_vm0, 0.0, %v1343_v19  ;;  %v1327_v27 = vpop.permute.xlu1 %1326  ;;  %v1334_v59 = vpop.permute.xlu0 %1333 }
 0x382   : > { %v1357_v21 = vmul.f32 %v1355_v31, %v1348_v12  ;;  %v1331_v16 = vsel %vm5424_vm9, 0.0, %v1327_v27  ;;  %v1339_v42 = vsel %vm5443_vm10, 0.0, %v1334_v59  ;;  %v1444_v12 = vmul.f32 %v1442_v10, %v5369_v46 }
 0x383   : > { %v1344_v22 = vrot.slane %v1331_v16, 7  ;;  %v1381_v36 = vrot.slane %v1339_v42, 7  ;;  %v1436_v11 = vrot.slane %v1331_v16, 1  ;;  %v1408_v52 = vmul.f32 %v1406_v5, %v1331_v16  ;;  %v1596_v5 = vld [vmem:[%s5978_s5 + $0x48] sm:$0xff] }
 0x384   : > { %v1377_v49 = vadd.f32 %v1375_v24, %v1357_v21  ;;  %v1471_v27 = vrot.slane %v1339_v42, 1  ;;  %v1430_v10 = vadd.f32 %v1428_v4, %v1426_v18  ;;  %v1448_v45 = vadd.f32 %v1446_v14, %v1444_v12  ;;  %v1593_v18 = vld [vmem:[%s5978_s5 + $0x30] sm:$0xff]  ;;  %v1588_v12 = vld [vmem:[%s5978_s5 + $0x8] sm:$0xff] }
 0x385   : > { %v1345_v62 = vsel %vm537_vm0, %v1343_v19, %v1344_v22  ;;  %v1386_v51 = vsel %vm537_vm0, 0.0, %v1381_v36  ;;  %v1336_v58 = vpop.permute.xlu1 %1335  ;;  %v1394_v19 = vadd.f32 %v1392_v61, %v1390_v17  ;;  %v1437_v55 = vsel %vm834_vm1, %v1435_v56, %v1436_v11  ;;  %v1600_v56 = vld [vmem:[%s5978_s5 + $0x68] sm:$0xff] }
 0x386   : > { %v1358_v29 = vmul.f32 %v1356_v28, %v1345_v62  ;;  %v1395_v9 = vmul.f32 %v1393_v34, %v1386_v51  ;;  %v1340_v33 = vsel %vm5443_vm10, 0.0, %v1336_v58  ;;  %v1431_v61 = vmul.f32 %v1429_v15, %v1339_v42  ;;  %v1597_v15 = vld [vmem:[%s5978_s5 + $0x50] sm:$0xff] }
 0x387   : > { %v1382_v20 = vrot.slane %v1340_v33, 7  ;;  %v1449_v21 = vmul.f32 %v1447_v1, %v1437_v55  ;;  %v1440_v35 = vsel %vm834_vm1, %v1436_v11, 0.0  ;;  %v1483_v42 = vadd.f32 %v1482_v8, %v1479_v30  ;;  %v1592_v55 = vld [vmem:[%s5978_s5 + $0x28] sm:$0xff] }
 0x388   : > { %v1378_v57 = vadd.f32 %v5382_v7, %v1358_v29  ;;  %v1397_v25 = vadd.f32 %v1395_v9, %v1377_v49  ;;  %v1472_v7 = vrot.slane %v1340_v33, 1  ;;  %v1432_v28 = vmul.f32 %v1430_v10, %v1340_v33  ;;  %v1819_v10 = vld [vmem:[#allocation6 + $0xc0] sm:$0xff] }
 0x389   : > { %v1383_v31 = vsel %vm537_vm0, %v1381_v36, %v1382_v20  ;;  %v1466_v24 = vadd.f32 %v1464_v37, %v1462_v0  ;;  %v1450_v26 = vmul.f32 %v1448_v45, %v1440_v35  ;;  %v1458_v14 = vsel %vm834_vm1, %v1454_v6, 0.0  ;;  %v1601_v20 = vld [vmem:[%s5978_s5 + $0x70] sm:$0xff]  ;;  %v1826_v0 = vld [vmem:[#allocation6 + $0xf8] sm:$0xff]  ;;  %v1816_v35 = vld [vmem:[#allocation6 + $0xa8] sm:$0xff] }
 0x38a   : > { %v1409_v43 = vadd.f32 %v1407_v41, %v1397_v25  ;;  %v1396_v44 = vmul.f32 %v1394_v19, %v1383_v31  ;;  %v1473_v22 = vsel %vm834_vm1, %v1471_v27, %v1472_v7  ;;  %v1476_v17 = vsel %vm834_vm1, %v1472_v7, 0.0  ;;  %v1602_v25 = vld [vmem:[%s5978_s5 + $0x78] sm:$0xff]  ;;  %v1599_v19 = vld [vmem:[%s5978_s5 + $0x60] sm:$0xff]  ;;  %v1589_v7 = vld [vmem:[%s5978_s5 + $0x10] sm:$0xff] }
 0x38b   : > { %v1485_v4 = vmul.f32 %v1483_v42, %v1473_v22  ;;  %v1484_v58 = vadd.f32 %v1482_v8, %v1480_v48  ;;  %v1468_v49 = vmul.f32 %v1466_v24, %v1458_v14  ;;  %v1594_v31 = vld [vmem:[%s5978_s5 + $0x38] sm:$0xff]  ;;  %v1821_v22 = vld [vmem:[#allocation6 + $0xd0] sm:$0xff]  ;;  %v1811_v48 = vld [vmem:[#allocation6 + $0x80] sm:$0xff] }
 0x38c   : > { %v1421_v32 = vadd.f32 %v1419_v53, %v1409_v43  ;;  %v1398_v59 = vadd.f32 %v1396_v44, %v1378_v57  ;;  %v1512_v57 = vld [vmem:[%s5977_s4] sm:$0xff]  ;;  %v1598_v53 = vld [vmem:[%s5978_s5 + $0x58] sm:$0xff]  ;;  %v1817_v42 = vld [vmem:[#allocation6 + $0xb0] sm:$0xff] }
 0x38d   : > { %v1486_v46 = vmul.f32 %v1484_v58, %v1476_v17  ;;  %v1595_v43 = vld [vmem:[%s5978_s5 + $0x40] sm:$0xff]  ;;  %v1818_v45 = vld [vmem:[#allocation6 + $0xb8] sm:$0xff]  ;;  %v1813_v24 = vld [vmem:[#allocation6 + $0x90] sm:$0xff] }
 0x38e   : > { %v1433_v3 = vadd.f32 %v1431_v61, %v1421_v32  ;;  %v1410_v2 = vadd.f32 %v1408_v52, %v1398_v59  ;;  %v1591_v44 = vld [vmem:[%s5978_s5 + $0x20] sm:$0xff]  ;;  %v1824_v59 = vld [vmem:[#allocation6 + $0xe8] sm:$0xff] }
 0x38f   : > { %v1587_v32 = vld [vmem:[%s5978_s5] sm:$0xff]  ;;  %1847 = vmatprep.subr.mxu1 %v1824_v59  ;;  %v1804_v17 = vld [vmem:[#allocation6 + $0x48] sm:$0xff]  ;;  %v1732_v59 = vstv %s5602_s27 }
 0x390   : > { %v1451_v16 = vadd.f32 %v1449_v21, %v1433_v3  ;;  %v1422_v36 = vadd.f32 %v1420_v60, %v1410_v2  ;;  %v1823_v21 = vld [vmem:[#allocation6 + $0xe0] sm:$0xff]  ;;  %v1825_v3 = vld [vmem:[#allocation6 + $0xf0] sm:$0xff]  ;;  %v1820_v2 = vld [vmem:[#allocation6 + $0xc8] sm:$0xff] }
 0x391   : > { %v1822_v60 = vld [vmem:[#allocation6 + $0xd8] sm:$0xff]  ;;  %1848 = vmatpush1.msra.mxu1 %v1823_v21  ;;  %v1803_v14 = vld [vmem:[#allocation6 + $0x40] sm:$0xff]  ;;  %v1800_v58 = vld [vmem:[#allocation6 + $0x28] sm:$0xff] }
 0x392   : > { %v1469_v34 = vadd.f32 %v5392_v40, %v1451_v16  ;;  %v1434_v62 = vadd.f32 %v1432_v28, %v1422_v36  ;;  %1849 = vmatprep.subr.mxu1 %v1820_v2  ;;  %v1815_v16 = vld [vmem:[#allocation6 + $0xa0] sm:$0xff]  ;;  %v1812_v36 = vld [vmem:[#allocation6 + $0x88] sm:$0xff]  ;;  %v1814_v28 = vld [vmem:[#allocation6 + $0x98] sm:$0xff] }
 0x393   : > { %1850 = vmatpush1.msra.mxu1 %v1819_v10 }
 0x394   : > { %v1487_v51 = vadd.f32 %v1485_v4, %v1469_v34  ;;  %v1452_v54 = vadd.f32 %v1450_v26, %v1434_v62  ;;  %1851 = vmatprep.subr.mxu1 %v1816_v35  ;;  %v1808_v34 = vld [vmem:[#allocation6 + $0x68] sm:$0xff]  ;;  %v1810_v4 = vld [vmem:[#allocation6 + $0x78] sm:$0xff]  ;;  %v1807_v26 = vld [vmem:[#allocation6 + $0x60] sm:$0xff] }
 0x395   : > { %1852 = vmatpush1.msra.mxu1 %v1815_v16  ;;  %v1809_v62 = vld [vmem:[#allocation6 + $0x70] sm:$0xff] }
 0x396   : > { %v1489_v29 = vmax.f32 %v1487_v51, 0.0  ;;  %v1470_v38 = vadd.f32 %v1468_v49, %v1452_v54  ;;  %1853 = vmatprep.subr.mxu1 %v1812_v36  ;;  %v1806_v51 = vld [vmem:[#allocation6 + $0x58] sm:$0xff]  ;;  %v1805_v54 = vld [vmem:[#allocation6 + $0x50] sm:$0xff] }
 0x397   : > { %1854 = vmatpush1.msra.mxu1 %v1811_v48  ;;  %v1802_v49 = vld [vmem:[#allocation6 + $0x38] sm:$0xff] }
 0x398   : > { %1493 = vrot.lane.b32.xlu0 %v1489_v29, %s6129_s11  ;;  %v1488_v37 = vadd.f32 %v1486_v46, %v1470_v38  ;;  %1855 = vmatprep.subr.mxu1 %v1808_v34  ;;  %v1801_v46 = vld [vmem:[#allocation6 + $0x30] sm:$0xff]  ;;  %v1796_v38 = vld [vmem:[#allocation6 + $0x8] sm:$0xff] }
 0x399   : > { %1856 = vmatpush1.msra.mxu1 %v1807_v26 }
 0x39a   : > { %v1490_v40 = vmax.f32 %v1488_v37, 0.0  ;;  %1857 = vmatprep.subr.mxu1 %v1804_v17  ;;  %v1798_v37 = vld [vmem:[#allocation6 + $0x18] sm:$0xff] }
 0x39b   : > { %1858 = vmatpush1.msra.mxu1 %v1803_v14 }
 0x39c   : > { %1495 = vrot.lane.b32.xlu1 %v1490_v40, %s6129_s11  ;;  %1859 = vmatprep.subr.mxu1 %v1800_v58 }
 0x40a   : > { %v1494_v39 = vpop.permute.xlu0 %1493 }
 0x40b   : > { %v1499_v23 = vmax.f32 %v1489_v29, %v1494_v39  ;;  %v1799_v29 = vld [vmem:[#allocation6 + $0x20] sm:$0xff]  ;;  %v1797_v39 = vld [vmem:[#allocation6 + $0x10] sm:$0xff] }
 0x40c   : > { %1860 = vmatpush1.msra.mxu1 %v1799_v29 }
 0x40d   : > { %v1503_v11 = vrot.slane %v1499_v23, 1  ;;  %1861 = vmatprep.subr.mxu1 %v1796_v38 }
 0x40e   : > { %v1496_v6 = vpop.permute.xlu1 %1495 }
 0x40f   : > { %v1500_v9 = vmax.f32 %v1490_v40, %v1496_v6  ;;  %v1795_v40 = vld [vmem:[#allocation6] sm:$0xff]  ;;  %v2035_v6 = vld [vmem:[#allocation6 + $0x1f8] sm:$0xff] }
 0x410   : > { %1862 = vmatpush1.msra.mxu1 %v1795_v40 }
 0x411   : > { %v1504_v8 = vrot.slane %v1500_v9, 1 }
 0x413   : > { %v1509_v1 = vsel %vm834_vm1, %v1504_v8, %v1503_v11  ;;  %v1505_v33 = vsel %vm834_vm1, %v1503_v11, %v1504_v8  ;;  %v1677_v8 = vstv %s3833_s22  ;;  %s5637_s22 = sld [smem:[#allocation2 + $0x10a]] }
 0x414   : > { %v1511_v63 = vmax.f32 %v1500_v9, %v1509_v1  ;;  %v1510_v41 = vmax.f32 %v1499_v23, %v1505_v33  ;;  %v2033_v23 = vld [vmem:[#allocation6 + $0x1e8] sm:$0xff]  ;;  %v1680_v33 = vand.u32 7, %v6130_v47 }
 0x415   : > { %2055 = vmatprep.subr.mxu1 %v2033_v23 }
 0x416   : > { %4001 = vmatpush3.msra.mxu0 %v1511_v63  ;;  %vm1681_vm13 = vcmp.eq.s32.totalorder %v1680_v33, 0  ;;  %vm5624_vm15 = vcmp.eq.s32.totalorder %v1680_v33, 7 }
 0x417   : > { %4002 = vmatprep.subr.mxu0 %v4228_v50 }
 0x418   : > { %4003 = vmatpush3.msra.mxu0 %v1510_v41  ;;  %v1706_v41 = vstv %s3834_s20  ;;  %s5649_s20 = sld [smem:[#allocation2 + $0x113]] }
 0x419   : > { %4005 = vmatmul.mubr.msk.f32.vlgmr.msra.gmra.mxu0 %vm1513_vm12, %v1512_v57  ;;  %4007 = vmatprep.subr.mxu0 %v4228_v50  ;;  %v1717_v57 = vstv %s3836_s25 }
 0x41a   : > { %4008 = vmatpush3.msra.mxu0 %v1602_v25  ;;  %4039 = vmatprep.mubr.msk.f32.mxu0 %vm4229_vm11, %v4228_v50 }
 0x41b   : > { %4009 = vmatprep.subr.mxu0 %v4228_v50 }
 0x41c   : > { %4010 = vmatpush3.msra.mxu0 %v1601_v20 }
 0x41d   : > { %4011 = vmatprep.subr.mxu0 %v4228_v50 }
 0x41e   : > { %4012 = vmatpush3.msra.mxu0 %v1600_v56 }
 0x41f   : > { %4013 = vmatprep.subr.mxu0 %v4228_v50 }
 0x420   : > { %4014 = vmatpush3.msra.mxu0 %v1599_v19  ;;  %v1709_v19 = vstv %s5589_s12 }
 0x421   : > { %4015 = vmatprep.subr.mxu0 %v4228_v50 }
 0x422   : > { %4016 = vmatpush3.msra.mxu0 %v1598_v53  ;;  %v1720_v53 = vstv %s5591_s18 }
 0x423   : > { %4017 = vmatprep.subr.mxu0 %v4228_v50 }
 0x424   : > { %4018 = vmatpush3.msra.mxu0 %v1597_v15 }
 0x425   : > { %4019 = vmatprep.subr.mxu0 %v4228_v50 }
 0x426   : > { %4020 = vmatpush3.msra.mxu0 %v1596_v5  ;;  %v1729_v5 = vstv %s5593_s29 }
 0x427   : > { %4021 = vmatprep.subr.mxu0 %v4228_v50 }
 0x428   : > { %4022 = vmatpush3.msra.mxu0 %v1595_v43  ;;  %v1737_v43 = vstv %s5595_s21 }
 0x429   : > { %4023 = vmatprep.subr.mxu0 %v4228_v50 }
 0x42a   : > { %4024 = vmatpush3.msra.mxu0 %v1594_v31 }
 0x42b   : > { %4025 = vmatprep.subr.mxu0 %v4228_v50 }
 0x42c   : > { %4026 = vmatpush3.msra.mxu0 %v1593_v18 }
 0x42d   : > { %4027 = vmatprep.subr.mxu0 %v4228_v50 }
 0x42e   : > { %4028 = vmatpush3.msra.mxu0 %v1592_v55 }
 0x42f   : > { %4029 = vmatprep.subr.mxu0 %v4228_v50 }
 0x430   : > { %4030 = vmatpush3.msra.mxu0 %v1591_v44  ;;  %v2034_v44 = vld [vmem:[#allocation6 + $0x1f0] sm:$0xff] }
 0x431   : > { %4031 = vmatprep.subr.mxu0 %v4228_v50 }
 0x432   : > { %4032 = vmatpush3.msra.mxu0 %v1590_v13  ;;  %v1745_v13 = vstv %s5598_s26  ;;  %s4233_s26 = smov [#allocation7]  }
 0x433   : > { %4033 = vmatprep.subr.mxu0 %v4228_v50 }
 0x434   : > { %4034 = vmatpush3.msra.mxu0 %v1589_v7 }
 0x435   : > { %4035 = vmatprep.subr.mxu0 %v4228_v50 }
 0x436   : > { %4036 = vmatpush3.msra.mxu0 %v1588_v12 }
 0x437   : > { %4037 = vmatprep.subr.mxu0 %v4228_v50 }
 0x438   : > { %4038 = vmatpush3.msra.mxu0 %v1587_v32 }
 0x439   : > { %1918 = vmatprep.subr.mxu0 %v1826_v0  ;;  %v1753_v0 = vstv %s5604_s28 }
 0x4d9   : > { %v1583_v61 = vpop.f32.mrf.mxu0 }
 0x4da   : > { %4040 = vmatmul.mubr.f32.vlgmr.msra.gmra.mxu0 %v1583_v61 }
 0x4db   : > { %v4006_v30 = vpop.f32.mrf.mxu0  ;;  %1966 = vmatprep.mubr.f32.mxu0 %v4228_v50  ;;  %1919 = vmatpush1.msra.mxu0 %v1825_v3 }
 0x4dc   : > { %1920 = vmatprep.subr.mxu0 %v1822_v60 }
 0x4dd   : > { %1921 = vmatpush1.msra.mxu0 %v1821_v22  ;;  %v1740_v22 = vstv %s5606_s30 }
 0x4de   : > { %1922 = vmatprep.subr.mxu0 %v1818_v45  ;;  %v1748_v45 = vstv %s5608_s0 }
 0x4df   : > { %1923 = vmatpush1.msra.mxu0 %v1817_v42  ;;  %v1764_v42 = vstv %s5610_s1 }
 0x4e0   : > { %1924 = vmatprep.subr.mxu0 %v1814_v28 }
 0x4e1   : > { %1925 = vmatpush1.msra.mxu0 %v1813_v24 }
 0x4e2   : > { %1926 = vmatprep.subr.mxu0 %v1810_v4 }
 0x4e3   : > { %1927 = vmatpush1.msra.mxu0 %v1809_v62 }
 0x4e4   : > { %1928 = vmatprep.subr.mxu0 %v1806_v51 }
 0x4e5   : > { %1929 = vmatpush1.msra.mxu0 %v1805_v54 }
 0x4e6   : > { %1930 = vmatprep.subr.mxu0 %v1802_v49 }
 0x4e7   : > { %1931 = vmatpush1.msra.mxu0 %v1801_v46 }
 0x4e8   : > { %1932 = vmatprep.subr.mxu0 %v1798_v37  ;;  %v1786_v37 = vstv %s5637_s22 }
 0x4e9   : > { %1933 = vmatpush1.msra.mxu0 %v1797_v39 }
 0x4ea   : > { %2126 = vmatprep.subr.mxu0 %v2035_v6 }
 0x59a   : > { %v5580_v52 = vpop.f32.mrf.mxu0 }
 0x59b   : > { %1686 = vrot.lane.b32.xlu1 %v5580_v52, %s6135_s2  ;;  %1683 = vrot.lane.b32.xlu0 %v5580_v52, %s4230_s3  ;;  %s5618_s2 = sld [smem:[#allocation2 + $0x109]]  ;;  %v1713_v55 = vrot.slane %v5580_v52, 7 }
 0x59c   : > { %v4041_v27 = vpop.f32.mrf.mxu0  ;;  %s5621_s3 = sld [smem:[#allocation2 + $0x111]] }
 0x59d   : > { %v1715_v35 = vsel %vm537_vm0, 0.0, %v1713_v55  ;;  %v2032_v55 = vld [vmem:[#allocation6 + $0x1e0] sm:$0xff] }
 0x59f   : > { %1695 = vrot.lane.b32.xlu1 %v5580_v52, %s4231_s6  ;;  %1692 = vrot.lane.b32.xlu0 %v5580_v52, %s6129_s11  ;;  %s3832_s11 = sld [smem:[#allocation2 + $0x100]] }
 0x5a0   : > { %s5629_s6 = sld [smem:[#allocation2 + $0x110]] }
 0x5a1   : > { %v1775_v48 = vstv %s5618_s2  ;;  %s379_s2 = sand.u32 1, %s4212_s14  }
 0x5a2   : > { %v1767_v58 = vstv %s5621_s3  ;;  %s380_s22 = scalar_lea.vmem [#allocation7], %s379_s2  ;;  %s3689_s29 = scalar_lea.sflag [#allocation4], %s379_s2 }
 0x5a5   : > { %v1675_v9 = vstv %s3832_s11  ;;  %s5631_s11 = sld [smem:[#allocation2 + $0x112]] }
 0x5a6   : > { %v1676_v11 = vmul.f32 %v1675_v9, %v5580_v52  ;;  %v1756_v54 = vstv %s5629_s6 }
 0x5a8   : > { %v1678_v1 = vadd.f32 %v1677_v8, %v1676_v11  ;;  %v1771_v11 = vrot.slane %v5580_v52, 1 }
 0x5aa   : > { %v5600_v63 = vmax.f32 %v1678_v1, 0.0 }
 0x5ab   : > { %v1778_v38 = vstv %s5631_s11  ;;  %s3868_s11 = sshll.u32 %s4310_s17, 4  ;;  %s4156_s17 = sshll.u32 %s4233_s26, 4  ;;  %s4157_s17 = int_to_ptr.vmem [resolvable:$false] %s4156_s17 }
 0x5ac   : > { %v1707_v20 = vmul.f32 %v1706_v41, %v5600_v63  ;;  %v1718_v56 = vmul.f32 %v1717_v57, %v5600_v63  ;;  %v1730_v30 = vmul.f32 %v1729_v5, %v5600_v63  ;;  %v1738_v2 = vmul.f32 %v1737_v43, %v5600_v63  ;;  %s3699_s18 = scalar_lea.hbm %s5983_s10, %s3868_s11  ;;  %s4158_s27 = scalar_lea.vmem %s4157_s17, 32 }
 0x5ad   : > { %v1746_v10 = vmul.f32 %v1745_v13, %v5600_v63  ;;  %v1754_v34 = vmul.f32 %v1753_v0, %v5600_v63  ;;  %v1765_v14 = vmul.f32 %v1764_v42, %v5600_v63  ;;  %v1776_v46 = vmul.f32 %v1775_v48, %v5600_v63  ;;  %v2029_v13 = vld [vmem:[#allocation6 + $0x1c8] sm:$0xff]  ;;  %v2023_v0 = vld [vmem:[#allocation6 + $0x198] sm:$0xff]  ;;  %v2014_v42 = vld [vmem:[#allocation6 + $0x150] sm:$0xff] }
 0x5ae   : > { %v1710_v7 = vadd.f32 %v1709_v19, %v1707_v20  ;;  %v1721_v12 = vadd.f32 %v1720_v53, %v1718_v56  ;;  %v1733_v28 = vadd.f32 %v1732_v59, %v1730_v30  ;;  %v1741_v26 = vadd.f32 %v1740_v22, %v1738_v2  ;;  %v2024_v30 = vld [vmem:[#allocation6 + $0x1a0] sm:$0xff]  ;;  %v2021_v59 = vld [vmem:[#allocation6 + $0x188] sm:$0xff]  ;;  %v2018_v22 = vld [vmem:[#allocation6 + $0x170] sm:$0xff] }
 0x5af   : > { %v1749_v17 = vadd.f32 %v1748_v45, %v1746_v10  ;;  %v1757_v23 = vadd.f32 %v1756_v54, %v1754_v34  ;;  %v1768_v9 = vadd.f32 %v1767_v58, %v1765_v14  ;;  %v1779_v41 = vadd.f32 %v1778_v38, %v1776_v46  ;;  %v2017_v2 = vld [vmem:[#allocation6 + $0x168] sm:$0xff]  ;;  %v2016_v10 = vld [vmem:[#allocation6 + $0x160] sm:$0xff]  ;;  %v2015_v45 = vld [vmem:[#allocation6 + $0x158] sm:$0xff] }
 0x5b0   : > { %v1722_v36 = vmul.f32 %v1721_v12, %v1715_v35  ;;  %v1787_v57 = vmul.f32 %v1786_v37, %v5600_v63  ;;  %v1773_v56 = vsel %vm834_vm1, %v1771_v11, 0.0  ;;  %v2031_v63 = vld [vmem:[#allocation6 + $0x1d8] sm:$0xff]  ;;  %v2030_v12 = vld [vmem:[#allocation6 + $0x1d0] sm:$0xff]  ;;  %v2013_v35 = vld [vmem:[#allocation6 + $0x148] sm:$0xff] }
 0x5b1   : > { %v1750_v39 = vmul.f32 %v1749_v17, %v5580_v52  ;;  %v2008_v48 = vld [vmem:[#allocation6 + $0x120] sm:$0xff]  ;;  %v2005_v34 = vld [vmem:[#allocation6 + $0x108] sm:$0xff]  ;;  %v2243_v14 = vld [vmem:[#allocation6 + $0x2f8] sm:$0xff] }
 0x5b2   : > { %v2240_v54 = vld [vmem:[#allocation6 + $0x2e0] sm:$0xff]  ;;  %v2242_v58 = vld [vmem:[#allocation6 + $0x2f0] sm:$0xff]  ;;  %v2233_v37 = vld [vmem:[#allocation6 + $0x2a8] sm:$0xff] }
 0x5b3   : > { %v2236_v46 = vld [vmem:[#allocation6 + $0x2c0] sm:$0xff]  ;;  %v2238_v38 = vld [vmem:[#allocation6 + $0x2d0] sm:$0xff] }
 0x5b4   : > { %v2228_v11 = vld [vmem:[#allocation6 + $0x280] sm:$0xff] }
 0x60d   : > { %v1687_v25 = vpop.permute.xlu1 %1686  ;;  %v1684_v47 = vpop.permute.xlu0 %1683 }
 0x60e   : > { %v1689_v15 = vsel %vm457_vm2, %v1684_v47, %v1687_v25  ;;  %v1789_v25 = vstv %s5649_s20  ;;  %s3701_s20 = sshll.u32 %s380_s22, 4  ;;  %s3702_s20 = int_to_ptr.vmem [resolvable:$true] %s3701_s20 }
 0x60f   : > { %v1690_v31 = vsel %vm1681_vm13, 0.0, %v1689_v15  ;;  %v1780_v15 = vmul.f32 %v1779_v41, %v1773_v56  ;;  %v1790_v5 = vadd.f32 %v1789_v25, %v1787_v57  ;;  %v2224_v41 = vld [vmem:[#allocation6 + $0x260] sm:$0xff]  ;;  %v2226_v57 = vld [vmem:[#allocation6 + $0x270] sm:$0xff]  ;;  %v2221_v25 = vld [vmem:[#allocation6 + $0x248] sm:$0xff]  ;;  %s4152_s21 = scalar_lea.vmem %s3702_s20, 16  ;;  %p4159_p8 = scmp.lt.s32.totalorder %s3702_s20, %s4157_s17 }
 0x610   : > { %v1702_v18 = vrot.slane %v1690_v31, 7  ;;  %v1760_v51 = vrot.slane %v1690_v31, 1  ;;  %v1742_v49 = vmul.f32 %v1741_v26, %v1690_v31  ;;  %v2004_v26 = vld [vmem:[#allocation6 + $0x100] sm:$0xff]  ;;  %v2222_v56 = vld [vmem:[#allocation6 + $0x250] sm:$0xff]  ;;  %p4153_p12 = scmp.ne.s32.totalorder %s3702_s20, %s4152_s21  ;;  %p4160_p11 = scmp.lt.s32.totalorder %s4158_s27, %s4152_s21 }
 0x611   : > { %v1696_v32 = vpop.permute.xlu1 %1695  ;;  %v1693_v61 = vpop.permute.xlu0 %1692 }
 0x612   : > { %v1704_v27 = vsel %vm537_vm0, 0.0, %v1702_v18  ;;  %v1699_v21 = vsel %vm1698_vm14, %v1693_v61, %v1696_v32  ;;  %v1762_v6 = vsel %vm834_vm1, %v1760_v51, 0.0  ;;  %v2025_v32 = vld [vmem:[#allocation6 + $0x1a8] sm:$0xff]  ;;  %v2027_v61 = vld [vmem:[#allocation6 + $0x1b8] sm:$0xff]  ;;  %p4154_p4 = pnand %p4153_p12, %p6139_p0  ;;  %p4161_p13 = por %p4160_p11, %p4159_p8 }
 0x613   : > { %v1711_v3 = vmul.f32 %v1710_v7, %v1704_v27  ;;  %v1700_v60 = vsel %vm5624_vm15, 0.0, %v1699_v21  ;;  %v1769_v47 = vmul.f32 %v1768_v9, %v1762_v6  ;;  %v2028_v7 = vld [vmem:[#allocation6 + $0x1c0] sm:$0xff]  ;;  %v2026_v27 = vld [vmem:[#allocation6 + $0x1b0] sm:$0xff]  ;;  %v2241_v51 = vld [vmem:[#allocation6 + $0x2e8] sm:$0xff] }
 0x614   : > { %v1725_v16 = vrot.slane %v1700_v60, 7  ;;  %v1782_v8 = vrot.slane %v1700_v60, 1  ;;  %v1758_v33 = vmul.f32 %v1757_v23, %v1700_v60  ;;  %v2020_v21 = vld [vmem:[#allocation6 + $0x180] sm:$0xff]  ;;  %v2019_v60 = vld [vmem:[#allocation6 + $0x178] sm:$0xff]  ;;  %v2234_v23 = vld [vmem:[#allocation6 + $0x2b0] sm:$0xff]  ;;  %p4155_p7 = pneg %p4154_p4 }
 0x615   : > { %v1723_v4 = vadd.f32 %v1722_v36, %v1711_v3  ;;  %v2022_v3 = vld [vmem:[#allocation6 + $0x190] sm:$0xff]  ;;  %v2009_v36 = vld [vmem:[#allocation6 + $0x128] sm:$0xff]  ;;  %v2231_v9 = vld [vmem:[#allocation6 + $0x298] sm:$0xff] }
 0x616   : > { %v1727_v24 = vsel %vm537_vm0, 0.0, %v1725_v16  ;;  %v1784_v19 = vsel %vm834_vm1, %v1782_v8, 0.0  ;;  %vm1827_vm0 = vcmask 523264   ;;  %v2012_v16 = vld [vmem:[#allocation6 + $0x140] sm:$0xff]  ;;  %v2229_v6 = vld [vmem:[#allocation6 + $0x288] sm:$0xff]  ;;  %v2230_v8 = vld [vmem:[#allocation6 + $0x290] sm:$0xff]  ;;  %p4162_p1 = pnand %p4161_p13, %p4155_p7 }
 0x617   : > { %v1734_v62 = vmul.f32 %v1733_v28, %v1727_v24  ;;  %v1791_v31 = vmul.f32 %v1790_v5, %v1784_v19  ;;  %v2011_v28 = vld [vmem:[#allocation6 + $0x138] sm:$0xff]  ;;  %v2010_v24 = vld [vmem:[#allocation6 + $0x130] sm:$0xff]  ;;  %v2217_v19 = vld [vmem:[#allocation6 + $0x228] sm:$0xff]  ;;  %vm3686_vm1 = vcmask 647168  }
 0x618   : > { %v2218_v5 = vld [vmem:[#allocation6 + $0x230] sm:$0xff] }
 0x619   : > { %v1735_v29 = vadd.f32 %v1734_v62, %v1723_v4  ;;  %v2007_v4 = vld [vmem:[#allocation6 + $0x118] sm:$0xff]  ;;  %v2006_v62 = vld [vmem:[#allocation6 + $0x110] sm:$0xff] }
 0x61b   : > { %v1743_v40 = vadd.f32 %v1742_v49, %v1735_v29  ;;  %v2237_v49 = vld [vmem:[#allocation6 + $0x2c8] sm:$0xff]  ;;  %v2239_v29 = vld [vmem:[#allocation6 + $0x2d8] sm:$0xff] }
 0x61d   : > { %v1751_v1 = vadd.f32 %v1750_v39, %v1743_v40  ;;  %v2235_v40 = vld [vmem:[#allocation6 + $0x2b8] sm:$0xff]  ;;  %v2232_v39 = vld [vmem:[#allocation6 + $0x2a0] sm:$0xff] }
 0x61f   : > { %v1759_v20 = vadd.f32 %v1758_v33, %v1751_v1  ;;  %v2225_v1 = vld [vmem:[#allocation6 + $0x268] sm:$0xff]  ;;  %v2227_v33 = vld [vmem:[#allocation6 + $0x278] sm:$0xff] }
 0x621   : > { %v1770_v53 = vadd.f32 %v1769_v47, %v1759_v20  ;;  %v2223_v47 = vld [vmem:[#allocation6 + $0x258] sm:$0xff]  ;;  %v2220_v20 = vld [vmem:[#allocation6 + $0x240] sm:$0xff] }
 0x623   : > { %v1781_v43 = vadd.f32 %v1780_v15, %v1770_v53  ;;  %v2219_v53 = vld [vmem:[#allocation6 + $0x238] sm:$0xff]  ;;  %v2216_v15 = vld [vmem:[#allocation6 + $0x220] sm:$0xff] }
 0x625   : > { %v1792_v18 = vadd.f32 %v1791_v31, %v1781_v43  ;;  %v2213_v43 = vld [vmem:[#allocation6 + $0x208] sm:$0xff]  ;;  %v2215_v31 = vld [vmem:[#allocation6 + $0x218] sm:$0xff] }
 0x627   : > { %v5666_v52 = vmax.f32 %v1792_v18, 0.0  ;;  %v2212_v18 = vld [vmem:[#allocation6 + $0x200] sm:$0xff] }
 0x629   : > { %3852 = vmatmul.mubr.msk.f32.vlgmr.msra.gmra.mxu1 %vm1827_vm0, %v5666_v52  ;;  %3853 = vmatmul.mubr.msk.f32.vlgmr.msra.gmra.mxu0 %vm1827_vm0, %v5666_v52  ;;  %v2036_v17 = vrot.slane %v5666_v52, 1 }
 0x62a   : > { %2056 = vmatpush1.msra.mxu1 %v2032_v55  ;;  %2127 = vmatpush1.msra.mxu0 %v2034_v44  ;;  %v2214_v55 = vld [vmem:[#allocation6 + $0x210] sm:$0xff]  ;;  %v2244_v44 = vrot.slane %v5666_v52, 2 }
 0x62b   : > { %2057 = vmatprep.subr.mxu1 %v2029_v13  ;;  %2128 = vmatprep.subr.mxu0 %v2031_v63  ;;  %v2449_v13 = vld [vmem:[#allocation6 + $0x3e8] sm:$0xff]  ;;  %v2451_v63 = vld [vmem:[#allocation6 + $0x3f8] sm:$0xff] }
 0x62c   : > { %2058 = vmatpush1.msra.mxu1 %v2028_v7  ;;  %2129 = vmatpush1.msra.mxu0 %v2030_v12  ;;  %v2448_v7 = vld [vmem:[#allocation6 + $0x3e0] sm:$0xff]  ;;  %v2450_v12 = vld [vmem:[#allocation6 + $0x3f0] sm:$0xff] }
 0x62d   : > { %2059 = vmatprep.subr.mxu1 %v2025_v32  ;;  %2130 = vmatprep.subr.mxu0 %v2027_v61  ;;  %v2445_v32 = vld [vmem:[#allocation6 + $0x3c8] sm:$0xff]  ;;  %v2447_v61 = vld [vmem:[#allocation6 + $0x3d8] sm:$0xff] }
 0x62e   : > { %2060 = vmatpush1.msra.mxu1 %v2024_v30  ;;  %2131 = vmatpush1.msra.mxu0 %v2026_v27  ;;  %v2444_v30 = vld [vmem:[#allocation6 + $0x3c0] sm:$0xff]  ;;  %v2446_v27 = vld [vmem:[#allocation6 + $0x3d0] sm:$0xff] }
 0x62f   : > { %2061 = vmatprep.subr.mxu1 %v2021_v59  ;;  %2132 = vmatprep.subr.mxu0 %v2023_v0  ;;  %v2441_v59 = vld [vmem:[#allocation6 + $0x3a8] sm:$0xff]  ;;  %v2443_v0 = vld [vmem:[#allocation6 + $0x3b8] sm:$0xff] }
 0x630   : > { %2062 = vmatpush1.msra.mxu1 %v2020_v21  ;;  %2133 = vmatpush1.msra.mxu0 %v2022_v3  ;;  %v2440_v21 = vld [vmem:[#allocation6 + $0x3a0] sm:$0xff]  ;;  %v2442_v3 = vld [vmem:[#allocation6 + $0x3b0] sm:$0xff] }
 0x631   : > { %2063 = vmatprep.subr.mxu1 %v2017_v2  ;;  %2134 = vmatprep.subr.mxu0 %v2019_v60  ;;  %v2437_v2 = vld [vmem:[#allocation6 + $0x388] sm:$0xff]  ;;  %v2439_v60 = vld [vmem:[#allocation6 + $0x398] sm:$0xff] }
 0x632   : > { %2064 = vmatpush1.msra.mxu1 %v2016_v10  ;;  %2135 = vmatpush1.msra.mxu0 %v2018_v22  ;;  %v2436_v10 = vld [vmem:[#allocation6 + $0x380] sm:$0xff]  ;;  %v2438_v22 = vld [vmem:[#allocation6 + $0x390] sm:$0xff] }
 0x633   : > { %2065 = vmatprep.subr.mxu1 %v2013_v35  ;;  %2136 = vmatprep.subr.mxu0 %v2015_v45  ;;  %v2433_v35 = vld [vmem:[#allocation6 + $0x368] sm:$0xff]  ;;  %v2435_v45 = vld [vmem:[#allocation6 + $0x378] sm:$0xff] }
 0x634   : > { %2066 = vmatpush1.msra.mxu1 %v2012_v16  ;;  %2137 = vmatpush1.msra.mxu0 %v2014_v42  ;;  %v2432_v16 = vld [vmem:[#allocation6 + $0x360] sm:$0xff]  ;;  %v2434_v42 = vld [vmem:[#allocation6 + $0x370] sm:$0xff] }
 0x635   : > { %2067 = vmatprep.subr.mxu1 %v2009_v36  ;;  %2138 = vmatprep.subr.mxu0 %v2011_v28  ;;  %v2429_v36 = vld [vmem:[#allocation6 + $0x348] sm:$0xff]  ;;  %v2431_v28 = vld [vmem:[#allocation6 + $0x358] sm:$0xff] }
 0x636   : > { %2068 = vmatpush1.msra.mxu1 %v2008_v48  ;;  %2139 = vmatpush1.msra.mxu0 %v2010_v24  ;;  %v2428_v48 = vld [vmem:[#allocation6 + $0x340] sm:$0xff]  ;;  %v2430_v24 = vld [vmem:[#allocation6 + $0x350] sm:$0xff] }
 0x637   : > { %2069 = vmatprep.subr.mxu1 %v2005_v34  ;;  %2140 = vmatprep.subr.mxu0 %v2007_v4  ;;  %v2425_v34 = vld [vmem:[#allocation6 + $0x328] sm:$0xff]  ;;  %v2427_v4 = vld [vmem:[#allocation6 + $0x338] sm:$0xff] }
 0x638   : > { %2070 = vmatpush1.msra.mxu1 %v2004_v26  ;;  %2103 = vmatprep.mubr.f32.mxu1 %v4228_v50  ;;  %v2424_v26 = vld [vmem:[#allocation6 + $0x320] sm:$0xff] }
 0x639   : > { %2141 = vmatpush1.msra.mxu0 %v2006_v62  ;;  %2174 = vmatprep.mubr.f32.mxu0 %v4228_v50  ;;  %v2426_v62 = vld [vmem:[#allocation6 + $0x330] sm:$0xff] }
 0x63a   : > { %3854 = vmatmul.mubr.msk.f32.vlgmr.msra.gmra.mxu1 %vm1827_vm0, %v2036_v17  ;;  %3855 = vmatmul.mubr.msk.f32.vlgmr.msra.gmra.mxu0 %vm1827_vm0, %v2036_v17  ;;  %v2421_v17 = vld [vmem:[#allocation6 + $0x308] sm:$0xff] }
 0x63b   : > { %2263 = vmatprep.subr.mxu1 %v2241_v51  ;;  %2334 = vmatprep.subr.mxu0 %v2243_v14  ;;  %v2423_v51 = vld [vmem:[#allocation6 + $0x318] sm:$0xff]  ;;  %v2420_v14 = vld [vmem:[#allocation6 + $0x300] sm:$0xff] }
 0x63c   : > { %2264 = vmatpush1.msra.mxu1 %v2240_v54  ;;  %2335 = vmatpush1.msra.mxu0 %v2242_v58  ;;  %v2422_v54 = vld [vmem:[#allocation6 + $0x310] sm:$0xff]  ;;  %v2452_v58 = vrot.slane %v5666_v52, 3 }
 0x63d   : > { %2265 = vmatprep.subr.mxu1 %v2237_v49  ;;  %2336 = vmatprep.subr.mxu0 %v2239_v29  ;;  %v2657_v49 = vld [vmem:[#allocation6 + $0x4e8] sm:$0xff]  ;;  %v2659_v29 = vld [vmem:[#allocation6 + $0x4f8] sm:$0xff] }
 0x63e   : > { %2266 = vmatpush1.msra.mxu1 %v2236_v46  ;;  %2337 = vmatpush1.msra.mxu0 %v2238_v38  ;;  %v2656_v46 = vld [vmem:[#allocation6 + $0x4e0] sm:$0xff]  ;;  %v2658_v38 = vld [vmem:[#allocation6 + $0x4f0] sm:$0xff] }
 0x63f   : > { %2267 = vmatprep.subr.mxu1 %v2233_v37  ;;  %2338 = vmatprep.subr.mxu0 %v2235_v40  ;;  %v2653_v37 = vld [vmem:[#allocation6 + $0x4c8] sm:$0xff]  ;;  %v2655_v40 = vld [vmem:[#allocation6 + $0x4d8] sm:$0xff] }
 0x640   : > { %2268 = vmatpush1.msra.mxu1 %v2232_v39  ;;  %2339 = vmatpush1.msra.mxu0 %v2234_v23  ;;  %v2652_v39 = vld [vmem:[#allocation6 + $0x4c0] sm:$0xff]  ;;  %v2654_v23 = vld [vmem:[#allocation6 + $0x4d0] sm:$0xff] }
 0x641   : > { %2269 = vmatprep.subr.mxu1 %v2229_v6  ;;  %2340 = vmatprep.subr.mxu0 %v2231_v9  ;;  %v2649_v6 = vld [vmem:[#allocation6 + $0x4a8] sm:$0xff]  ;;  %v2651_v9 = vld [vmem:[#allocation6 + $0x4b8] sm:$0xff] }
 0x642   : > { %2270 = vmatpush1.msra.mxu1 %v2228_v11  ;;  %2341 = vmatpush1.msra.mxu0 %v2230_v8  ;;  %v2648_v11 = vld [vmem:[#allocation6 + $0x4a0] sm:$0xff]  ;;  %v2650_v8 = vld [vmem:[#allocation6 + $0x4b0] sm:$0xff] }
 0x643   : > { %2271 = vmatprep.subr.mxu1 %v2225_v1  ;;  %2342 = vmatprep.subr.mxu0 %v2227_v33  ;;  %v2645_v1 = vld [vmem:[#allocation6 + $0x488] sm:$0xff]  ;;  %v2647_v33 = vld [vmem:[#allocation6 + $0x498] sm:$0xff] }
 0x644   : > { %2272 = vmatpush1.msra.mxu1 %v2224_v41  ;;  %2343 = vmatpush1.msra.mxu0 %v2226_v57  ;;  %v2644_v41 = vld [vmem:[#allocation6 + $0x480] sm:$0xff]  ;;  %v2646_v57 = vld [vmem:[#allocation6 + $0x490] sm:$0xff] }
 0x645   : > { %2273 = vmatprep.subr.mxu1 %v2221_v25  ;;  %2344 = vmatprep.subr.mxu0 %v2223_v47  ;;  %v2641_v25 = vld [vmem:[#allocation6 + $0x468] sm:$0xff]  ;;  %v2643_v47 = vld [vmem:[#allocation6 + $0x478] sm:$0xff] }
 0x646   : > { %2274 = vmatpush1.msra.mxu1 %v2220_v20  ;;  %2345 = vmatpush1.msra.mxu0 %v2222_v56  ;;  %v2640_v20 = vld [vmem:[#allocation6 + $0x460] sm:$0xff]  ;;  %v2642_v56 = vld [vmem:[#allocation6 + $0x470] sm:$0xff] }
 0x647   : > { %2275 = vmatprep.subr.mxu1 %v2217_v19  ;;  %2346 = vmatprep.subr.mxu0 %v2219_v53  ;;  %v2637_v19 = vld [vmem:[#allocation6 + $0x448] sm:$0xff]  ;;  %v2639_v53 = vld [vmem:[#allocation6 + $0x458] sm:$0xff] }
 0x648   : > { %2276 = vmatpush1.msra.mxu1 %v2216_v15  ;;  %2347 = vmatpush1.msra.mxu0 %v2218_v5  ;;  %v2636_v15 = vld [vmem:[#allocation6 + $0x440] sm:$0xff]  ;;  %v2638_v5 = vld [vmem:[#allocation6 + $0x450] sm:$0xff] }
 0x649   : > { %2277 = vmatprep.subr.mxu1 %v2213_v43  ;;  %2348 = vmatprep.subr.mxu0 %v2215_v31  ;;  %v2633_v43 = vld [vmem:[#allocation6 + $0x428] sm:$0xff]  ;;  %v2635_v31 = vld [vmem:[#allocation6 + $0x438] sm:$0xff] }
 0x64a   : > { %2278 = vmatpush1.msra.mxu1 %v2212_v18  ;;  %2311 = vmatprep.mubr.f32.mxu1 %v4228_v50  ;;  %v2632_v18 = vld [vmem:[#allocation6 + $0x420] sm:$0xff] }
 0x64b   : > { %2349 = vmatpush1.msra.mxu0 %v2214_v55  ;;  %2382 = vmatprep.mubr.f32.mxu0 %v4228_v50  ;;  %v2634_v55 = vld [vmem:[#allocation6 + $0x430] sm:$0xff] }
 0x64c   : > { %3856 = vmatmul.mubr.msk.f32.vlgmr.msra.gmra.mxu1 %vm1827_vm0, %v2244_v44  ;;  %3857 = vmatmul.mubr.msk.f32.vlgmr.msra.gmra.mxu0 %vm1827_vm0, %v2244_v44  ;;  %v2629_v44 = vld [vmem:[#allocation6 + $0x408] sm:$0xff] }
 0x64d   : > { %2471 = vmatprep.subr.mxu1 %v2449_v13  ;;  %2542 = vmatprep.subr.mxu0 %v2451_v63  ;;  %v2631_v13 = vld [vmem:[#allocation6 + $0x418] sm:$0xff]  ;;  %v2628_v63 = vld [vmem:[#allocation6 + $0x400] sm:$0xff] }
 0x64e   : > { %2472 = vmatpush1.msra.mxu1 %v2448_v7  ;;  %2543 = vmatpush1.msra.mxu0 %v2450_v12  ;;  %v2630_v7 = vld [vmem:[#allocation6 + $0x410] sm:$0xff]  ;;  %v2660_v12 = vrot.slane %v5666_v52, 4 }
 0x64f   : > { %2473 = vmatprep.subr.mxu1 %v2445_v32  ;;  %2544 = vmatprep.subr.mxu0 %v2447_v61  ;;  %v2865_v32 = vld [vmem:[#allocation6 + $0x5e8] sm:$0xff]  ;;  %v2867_v61 = vld [vmem:[#allocation6 + $0x5f8] sm:$0xff] }
 0x650   : > { %2474 = vmatpush1.msra.mxu1 %v2444_v30  ;;  %2545 = vmatpush1.msra.mxu0 %v2446_v27  ;;  %v2864_v30 = vld [vmem:[#allocation6 + $0x5e0] sm:$0xff]  ;;  %v2866_v27 = vld [vmem:[#allocation6 + $0x5f0] sm:$0xff] }
 0x651   : > { %2475 = vmatprep.subr.mxu1 %v2441_v59  ;;  %2546 = vmatprep.subr.mxu0 %v2443_v0  ;;  %v2861_v59 = vld [vmem:[#allocation6 + $0x5c8] sm:$0xff]  ;;  %v2863_v0 = vld [vmem:[#allocation6 + $0x5d8] sm:$0xff] }
 0x652   : > { %2476 = vmatpush1.msra.mxu1 %v2440_v21  ;;  %2547 = vmatpush1.msra.mxu0 %v2442_v3  ;;  %v2860_v21 = vld [vmem:[#allocation6 + $0x5c0] sm:$0xff]  ;;  %v2862_v3 = vld [vmem:[#allocation6 + $0x5d0] sm:$0xff] }
 0x653   : > { %2477 = vmatprep.subr.mxu1 %v2437_v2  ;;  %2548 = vmatprep.subr.mxu0 %v2439_v60  ;;  %v2857_v2 = vld [vmem:[#allocation6 + $0x5a8] sm:$0xff]  ;;  %v2859_v60 = vld [vmem:[#allocation6 + $0x5b8] sm:$0xff] }
 0x654   : > { %2478 = vmatpush1.msra.mxu1 %v2436_v10  ;;  %2549 = vmatpush1.msra.mxu0 %v2438_v22  ;;  %v2856_v10 = vld [vmem:[#allocation6 + $0x5a0] sm:$0xff]  ;;  %v2858_v22 = vld [vmem:[#allocation6 + $0x5b0] sm:$0xff] }
 0x655   : > { %2479 = vmatprep.subr.mxu1 %v2433_v35  ;;  %2550 = vmatprep.subr.mxu0 %v2435_v45  ;;  %v2853_v35 = vld [vmem:[#allocation6 + $0x588] sm:$0xff]  ;;  %v2855_v45 = vld [vmem:[#allocation6 + $0x598] sm:$0xff] }
 0x656   : > { %2480 = vmatpush1.msra.mxu1 %v2432_v16  ;;  %2551 = vmatpush1.msra.mxu0 %v2434_v42  ;;  %v2852_v16 = vld [vmem:[#allocation6 + $0x580] sm:$0xff]  ;;  %v2854_v42 = vld [vmem:[#allocation6 + $0x590] sm:$0xff] }
 0x657   : > { %2481 = vmatprep.subr.mxu1 %v2429_v36  ;;  %2552 = vmatprep.subr.mxu0 %v2431_v28  ;;  %v2849_v36 = vld [vmem:[#allocation6 + $0x568] sm:$0xff]  ;;  %v2851_v28 = vld [vmem:[#allocation6 + $0x578] sm:$0xff] }
 0x658   : > { %2482 = vmatpush1.msra.mxu1 %v2428_v48  ;;  %2553 = vmatpush1.msra.mxu0 %v2430_v24  ;;  %v2848_v48 = vld [vmem:[#allocation6 + $0x560] sm:$0xff]  ;;  %v2850_v24 = vld [vmem:[#allocation6 + $0x570] sm:$0xff] }
 0x659   : > { %2483 = vmatprep.subr.mxu1 %v2425_v34  ;;  %2554 = vmatprep.subr.mxu0 %v2427_v4  ;;  %v2845_v34 = vld [vmem:[#allocation6 + $0x548] sm:$0xff]  ;;  %v2847_v4 = vld [vmem:[#allocation6 + $0x558] sm:$0xff] }
 0x65a   : > { %2484 = vmatpush1.msra.mxu1 %v2424_v26  ;;  %2555 = vmatpush1.msra.mxu0 %v2426_v62  ;;  %v2844_v26 = vld [vmem:[#allocation6 + $0x540] sm:$0xff]  ;;  %v2846_v62 = vld [vmem:[#allocation6 + $0x550] sm:$0xff] }
 0x65b   : > { %2485 = vmatprep.subr.mxu1 %v2421_v17  ;;  %2556 = vmatprep.subr.mxu0 %v2423_v51  ;;  %v2841_v17 = vld [vmem:[#allocation6 + $0x528] sm:$0xff]  ;;  %v2843_v51 = vld [vmem:[#allocation6 + $0x538] sm:$0xff] }
 0x65c   : > { %2486 = vmatpush1.msra.mxu1 %v2420_v14  ;;  %2519 = vmatprep.mubr.f32.mxu1 %v4228_v50  ;;  %v2840_v14 = vld [vmem:[#allocation6 + $0x520] sm:$0xff] }
 0x65d   : > { %2557 = vmatpush1.msra.mxu0 %v2422_v54  ;;  %2590 = vmatprep.mubr.f32.mxu0 %v4228_v50  ;;  %v2842_v54 = vld [vmem:[#allocation6 + $0x530] sm:$0xff] }
 0x65e   : > { %3858 = vmatmul.mubr.msk.f32.vlgmr.msra.gmra.mxu1 %vm1827_vm0, %v2452_v58  ;;  %3859 = vmatmul.mubr.msk.f32.vlgmr.msra.gmra.mxu0 %vm1827_vm0, %v2452_v58  ;;  %v2837_v58 = vld [vmem:[#allocation6 + $0x508] sm:$0xff] }
 0x65f   : > { %2679 = vmatprep.subr.mxu1 %v2657_v49  ;;  %2750 = vmatprep.subr.mxu0 %v2659_v29  ;;  %v2839_v49 = vld [vmem:[#allocation6 + $0x518] sm:$0xff]  ;;  %v2836_v29 = vld [vmem:[#allocation6 + $0x500] sm:$0xff] }
 0x660   : > { %2680 = vmatpush1.msra.mxu1 %v2656_v46  ;;  %2751 = vmatpush1.msra.mxu0 %v2658_v38  ;;  %v2838_v46 = vld [vmem:[#allocation6 + $0x510] sm:$0xff]  ;;  %v2868_v38 = vrot.slane %v5666_v52, 5 }
 0x661   : > { %2681 = vmatprep.subr.mxu1 %v2653_v37  ;;  %2752 = vmatprep.subr.mxu0 %v2655_v40  ;;  %v3073_v37 = vld [vmem:[#allocation6 + $0x6e8] sm:$0xff]  ;;  %v3075_v40 = vld [vmem:[#allocation6 + $0x6f8] sm:$0xff] }
 0x662   : > { %2682 = vmatpush1.msra.mxu1 %v2652_v39  ;;  %2753 = vmatpush1.msra.mxu0 %v2654_v23  ;;  %v3072_v39 = vld [vmem:[#allocation6 + $0x6e0] sm:$0xff]  ;;  %v3074_v23 = vld [vmem:[#allocation6 + $0x6f0] sm:$0xff] }
 0x663   : > { %2683 = vmatprep.subr.mxu1 %v2649_v6  ;;  %2754 = vmatprep.subr.mxu0 %v2651_v9  ;;  %v3069_v6 = vld [vmem:[#allocation6 + $0x6c8] sm:$0xff]  ;;  %v3071_v9 = vld [vmem:[#allocation6 + $0x6d8] sm:$0xff] }
 0x664   : > { %2684 = vmatpush1.msra.mxu1 %v2648_v11  ;;  %2755 = vmatpush1.msra.mxu0 %v2650_v8  ;;  %v3068_v11 = vld [vmem:[#allocation6 + $0x6c0] sm:$0xff]  ;;  %v3070_v8 = vld [vmem:[#allocation6 + $0x6d0] sm:$0xff] }
 0x665   : > { %2685 = vmatprep.subr.mxu1 %v2645_v1  ;;  %2756 = vmatprep.subr.mxu0 %v2647_v33  ;;  %v3065_v1 = vld [vmem:[#allocation6 + $0x6a8] sm:$0xff]  ;;  %v3067_v33 = vld [vmem:[#allocation6 + $0x6b8] sm:$0xff] }
 0x666   : > { %2686 = vmatpush1.msra.mxu1 %v2644_v41  ;;  %2757 = vmatpush1.msra.mxu0 %v2646_v57  ;;  %v3064_v41 = vld [vmem:[#allocation6 + $0x6a0] sm:$0xff]  ;;  %v3066_v57 = vld [vmem:[#allocation6 + $0x6b0] sm:$0xff] }
 0x667   : > { %2687 = vmatprep.subr.mxu1 %v2641_v25  ;;  %2758 = vmatprep.subr.mxu0 %v2643_v47  ;;  %v3061_v25 = vld [vmem:[#allocation6 + $0x688] sm:$0xff]  ;;  %v3063_v47 = vld [vmem:[#allocation6 + $0x698] sm:$0xff] }
 0x668   : > { %2688 = vmatpush1.msra.mxu1 %v2640_v20  ;;  %2759 = vmatpush1.msra.mxu0 %v2642_v56  ;;  %v3060_v20 = vld [vmem:[#allocation6 + $0x680] sm:$0xff]  ;;  %v3062_v56 = vld [vmem:[#allocation6 + $0x690] sm:$0xff] }
 0x669   : > { %2689 = vmatprep.subr.mxu1 %v2637_v19  ;;  %2760 = vmatprep.subr.mxu0 %v2639_v53  ;;  %v3057_v19 = vld [vmem:[#allocation6 + $0x668] sm:$0xff]  ;;  %v3059_v53 = vld [vmem:[#allocation6 + $0x678] sm:$0xff] }
 0x66a   : > { %2690 = vmatpush1.msra.mxu1 %v2636_v15  ;;  %2761 = vmatpush1.msra.mxu0 %v2638_v5  ;;  %v3056_v15 = vld [vmem:[#allocation6 + $0x660] sm:$0xff]  ;;  %v3058_v5 = vld [vmem:[#allocation6 + $0x670] sm:$0xff] }
 0x66b   : > { %2691 = vmatprep.subr.mxu1 %v2633_v43  ;;  %2762 = vmatprep.subr.mxu0 %v2635_v31  ;;  %v3053_v43 = vld [vmem:[#allocation6 + $0x648] sm:$0xff]  ;;  %v3055_v31 = vld [vmem:[#allocation6 + $0x658] sm:$0xff] }
 0x66c   : > { %2692 = vmatpush1.msra.mxu1 %v2632_v18  ;;  %2763 = vmatpush1.msra.mxu0 %v2634_v55  ;;  %v3052_v18 = vld [vmem:[#allocation6 + $0x640] sm:$0xff]  ;;  %v3054_v55 = vld [vmem:[#allocation6 + $0x650] sm:$0xff] }
 0x66d   : > { %2693 = vmatprep.subr.mxu1 %v2629_v44  ;;  %2764 = vmatprep.subr.mxu0 %v2631_v13  ;;  %v3049_v44 = vld [vmem:[#allocation6 + $0x628] sm:$0xff]  ;;  %v3051_v13 = vld [vmem:[#allocation6 + $0x638] sm:$0xff] }
 0x66e   : > { %2694 = vmatpush1.msra.mxu1 %v2628_v63  ;;  %2727 = vmatprep.mubr.f32.mxu1 %v4228_v50  ;;  %v3048_v63 = vld [vmem:[#allocation6 + $0x620] sm:$0xff] }
 0x66f   : > { %2765 = vmatpush1.msra.mxu0 %v2630_v7  ;;  %2798 = vmatprep.mubr.f32.mxu0 %v4228_v50  ;;  %v3050_v7 = vld [vmem:[#allocation6 + $0x630] sm:$0xff] }
 0x670   : > { %3860 = vmatmul.mubr.msk.f32.vlgmr.msra.gmra.mxu1 %vm1827_vm0, %v2660_v12  ;;  %3861 = vmatmul.mubr.msk.f32.vlgmr.msra.gmra.mxu0 %vm1827_vm0, %v2660_v12  ;;  %v3045_v12 = vld [vmem:[#allocation6 + $0x608] sm:$0xff] }
 0x671   : > { %2887 = vmatprep.subr.mxu1 %v2865_v32  ;;  %2958 = vmatprep.subr.mxu0 %v2867_v61  ;;  %v3047_v32 = vld [vmem:[#allocation6 + $0x618] sm:$0xff]  ;;  %v3044_v61 = vld [vmem:[#allocation6 + $0x600] sm:$0xff] }
 0x672   : > { %2888 = vmatpush1.msra.mxu1 %v2864_v30  ;;  %2959 = vmatpush1.msra.mxu0 %v2866_v27  ;;  %v3046_v30 = vld [vmem:[#allocation6 + $0x610] sm:$0xff]  ;;  %v3076_v27 = vrot.slane %v5666_v52, 6 }
 0x673   : > { %2889 = vmatprep.subr.mxu1 %v2861_v59  ;;  %2960 = vmatprep.subr.mxu0 %v2863_v0  ;;  %v3281_v59 = vld [vmem:[#allocation6 + $0x7e8] sm:$0xff]  ;;  %v3283_v0 = vld [vmem:[#allocation6 + $0x7f8] sm:$0xff] }
 0x674   : > { %2890 = vmatpush1.msra.mxu1 %v2860_v21  ;;  %2961 = vmatpush1.msra.mxu0 %v2862_v3  ;;  %v3280_v21 = vld [vmem:[#allocation6 + $0x7e0] sm:$0xff]  ;;  %v3282_v3 = vld [vmem:[#allocation6 + $0x7f0] sm:$0xff] }
 0x675   : > { %2891 = vmatprep.subr.mxu1 %v2857_v2  ;;  %2962 = vmatprep.subr.mxu0 %v2859_v60  ;;  %v3277_v2 = vld [vmem:[#allocation6 + $0x7c8] sm:$0xff]  ;;  %v3279_v60 = vld [vmem:[#allocation6 + $0x7d8] sm:$0xff] }
 0x676   : > { %2892 = vmatpush1.msra.mxu1 %v2856_v10  ;;  %2963 = vmatpush1.msra.mxu0 %v2858_v22  ;;  %v3276_v10 = vld [vmem:[#allocation6 + $0x7c0] sm:$0xff]  ;;  %v3278_v22 = vld [vmem:[#allocation6 + $0x7d0] sm:$0xff] }
 0x677   : > { %2893 = vmatprep.subr.mxu1 %v2853_v35  ;;  %2964 = vmatprep.subr.mxu0 %v2855_v45  ;;  %v3273_v35 = vld [vmem:[#allocation6 + $0x7a8] sm:$0xff]  ;;  %v3275_v45 = vld [vmem:[#allocation6 + $0x7b8] sm:$0xff] }
 0x678   : > { %2894 = vmatpush1.msra.mxu1 %v2852_v16  ;;  %2965 = vmatpush1.msra.mxu0 %v2854_v42  ;;  %v3272_v16 = vld [vmem:[#allocation6 + $0x7a0] sm:$0xff]  ;;  %v3274_v42 = vld [vmem:[#allocation6 + $0x7b0] sm:$0xff] }
 0x679   : > { %2895 = vmatprep.subr.mxu1 %v2849_v36  ;;  %2966 = vmatprep.subr.mxu0 %v2851_v28  ;;  %v3269_v36 = vld [vmem:[#allocation6 + $0x788] sm:$0xff]  ;;  %v3271_v28 = vld [vmem:[#allocation6 + $0x798] sm:$0xff] }
 0x67a   : > { %2896 = vmatpush1.msra.mxu1 %v2848_v48  ;;  %2967 = vmatpush1.msra.mxu0 %v2850_v24  ;;  %v3268_v48 = vld [vmem:[#allocation6 + $0x780] sm:$0xff]  ;;  %v3270_v24 = vld [vmem:[#allocation6 + $0x790] sm:$0xff] }
 0x67b   : > { %2897 = vmatprep.subr.mxu1 %v2845_v34  ;;  %2968 = vmatprep.subr.mxu0 %v2847_v4  ;;  %v3265_v34 = vld [vmem:[#allocation6 + $0x768] sm:$0xff]  ;;  %v3267_v4 = vld [vmem:[#allocation6 + $0x778] sm:$0xff] }
 0x67c   : > { %2898 = vmatpush1.msra.mxu1 %v2844_v26  ;;  %2969 = vmatpush1.msra.mxu0 %v2846_v62  ;;  %v3264_v26 = vld [vmem:[#allocation6 + $0x760] sm:$0xff]  ;;  %v3266_v62 = vld [vmem:[#allocation6 + $0x770] sm:$0xff] }
 0x67d   : > { %2899 = vmatprep.subr.mxu1 %v2841_v17  ;;  %2970 = vmatprep.subr.mxu0 %v2843_v51  ;;  %v3261_v17 = vld [vmem:[#allocation6 + $0x748] sm:$0xff]  ;;  %v3263_v51 = vld [vmem:[#allocation6 + $0x758] sm:$0xff] }
 0x67e   : > { %2900 = vmatpush1.msra.mxu1 %v2840_v14  ;;  %2971 = vmatpush1.msra.mxu0 %v2842_v54  ;;  %v3260_v14 = vld [vmem:[#allocation6 + $0x740] sm:$0xff]  ;;  %v3262_v54 = vld [vmem:[#allocation6 + $0x750] sm:$0xff] }
 0x67f   : > { %2901 = vmatprep.subr.mxu1 %v2837_v58  ;;  %2972 = vmatprep.subr.mxu0 %v2839_v49  ;;  %v3257_v58 = vld [vmem:[#allocation6 + $0x728] sm:$0xff]  ;;  %v3259_v49 = vld [vmem:[#allocation6 + $0x738] sm:$0xff] }
 0x680   : > { %2902 = vmatpush1.msra.mxu1 %v2836_v29  ;;  %2935 = vmatprep.mubr.f32.mxu1 %v4228_v50  ;;  %v3256_v29 = vld [vmem:[#allocation6 + $0x720] sm:$0xff] }
 0x681   : > { %2973 = vmatpush1.msra.mxu0 %v2838_v46  ;;  %3006 = vmatprep.mubr.f32.mxu0 %v4228_v50  ;;  %v3258_v46 = vld [vmem:[#allocation6 + $0x730] sm:$0xff] }
 0x682   : > { %3862 = vmatmul.mubr.msk.f32.vlgmr.msra.gmra.mxu1 %vm1827_vm0, %v2868_v38  ;;  %3863 = vmatmul.mubr.msk.f32.vlgmr.msra.gmra.mxu0 %vm1827_vm0, %v2868_v38  ;;  %v3253_v38 = vld [vmem:[#allocation6 + $0x708] sm:$0xff] }
 0x683   : > { %3095 = vmatprep.subr.mxu1 %v3073_v37  ;;  %3166 = vmatprep.subr.mxu0 %v3075_v40  ;;  %v3255_v37 = vld [vmem:[#allocation6 + $0x718] sm:$0xff]  ;;  %v3252_v40 = vld [vmem:[#allocation6 + $0x700] sm:$0xff] }
 0x684   : > { %3096 = vmatpush1.msra.mxu1 %v3072_v39  ;;  %3167 = vmatpush1.msra.mxu0 %v3074_v23  ;;  %v3254_v39 = vld [vmem:[#allocation6 + $0x710] sm:$0xff]  ;;  %v3284_v23 = vrot.slane %v5666_v52, 7 }
 0x685   : > { %3097 = vmatprep.subr.mxu1 %v3069_v6  ;;  %3168 = vmatprep.subr.mxu0 %v3071_v9  ;;  %v3491_v6 = vld [vmem:[%s5981_s8 + $0xf8] sm:$0xff]  ;;  %v3490_v52 = vld [vmem:[%s5981_s8 + $0xf0] sm:$0xff] }
 0x686   : > { %3098 = vmatpush1.msra.mxu1 %v3068_v11  ;;  %3169 = vmatpush1.msra.mxu0 %v3070_v8  ;;  %v3523_v9 = vld [vmem:[%s5981_s8 + $0x1f8] sm:$0xff]  ;;  %v3522_v8 = vld [vmem:[%s5981_s8 + $0x1f0] sm:$0xff] }
 0x687   : > { %3099 = vmatprep.subr.mxu1 %v3065_v1  ;;  %3170 = vmatprep.subr.mxu0 %v3067_v33  ;;  %v3475_v11 = vld [vmem:[%s5981_s8 + $0x78] sm:$0xff]  ;;  %v3474_v1 = vld [vmem:[%s5981_s8 + $0x70] sm:$0xff] }
 0x688   : > { %3100 = vmatpush1.msra.mxu1 %v3064_v41  ;;  %3171 = vmatpush1.msra.mxu0 %v3066_v57  ;;  %v3506_v33 = vld [vmem:[%s5981_s8 + $0x170] sm:$0xff]  ;;  %v3489_v41 = vld [vmem:[%s5981_s8 + $0xe8] sm:$0xff] }
 0x689   : > { %3101 = vmatprep.subr.mxu1 %v3061_v25  ;;  %3172 = vmatprep.subr.mxu0 %v3063_v47  ;;  %v3521_v57 = vld [vmem:[%s5981_s8 + $0x1e8] sm:$0xff] }
 0x68a   : > { %3102 = vmatpush1.msra.mxu1 %v3060_v20  ;;  %3173 = vmatpush1.msra.mxu0 %v3062_v56  ;;  %v3473_v25 = vld [vmem:[%s5981_s8 + $0x68] sm:$0xff]  ;;  %v3488_v20 = vld [vmem:[%s5981_s8 + $0xe0] sm:$0xff] }
 0x68b   : > { %3103 = vmatprep.subr.mxu1 %v3057_v19  ;;  %3174 = vmatprep.subr.mxu0 %v3059_v53  ;;  %v3505_v47 = vld [vmem:[%s5981_s8 + $0x168] sm:$0xff]  ;;  %v3520_v56 = vld [vmem:[%s5981_s8 + $0x1e0] sm:$0xff] }
 0x68c   : > { %3104 = vmatpush1.msra.mxu1 %v3056_v15  ;;  %3175 = vmatpush1.msra.mxu0 %v3058_v5  ;;  %v3472_v19 = vld [vmem:[%s5981_s8 + $0x60] sm:$0xff]  ;;  %v3487_v15 = vld [vmem:[%s5981_s8 + $0xd8] sm:$0xff] }
 0x68d   : > { %3105 = vmatprep.subr.mxu1 %v3053_v43  ;;  %3176 = vmatprep.subr.mxu0 %v3055_v31  ;;  %v3504_v53 = vld [vmem:[%s5981_s8 + $0x160] sm:$0xff]  ;;  %v3519_v5 = vld [vmem:[%s5981_s8 + $0x1d8] sm:$0xff] }
 0x68e   : > { %3106 = vmatpush1.msra.mxu1 %v3052_v18  ;;  %3177 = vmatpush1.msra.mxu0 %v3054_v55  ;;  %v3471_v43 = vld [vmem:[%s5981_s8 + $0x58] sm:$0xff]  ;;  %v3486_v18 = vld [vmem:[%s5981_s8 + $0xd0] sm:$0xff] }
 0x68f   : > { %3107 = vmatprep.subr.mxu1 %v3049_v44  ;;  %3178 = vmatprep.subr.mxu0 %v3051_v13  ;;  %v3503_v31 = vld [vmem:[%s5981_s8 + $0x158] sm:$0xff]  ;;  %v3518_v55 = vld [vmem:[%s5981_s8 + $0x1d0] sm:$0xff] }
 0x690   : > { %3108 = vmatpush1.msra.mxu1 %v3048_v63  ;;  %3179 = vmatpush1.msra.mxu0 %v3050_v7  ;;  %v3470_v44 = vld [vmem:[%s5981_s8 + $0x50] sm:$0xff]  ;;  %v3485_v63 = vld [vmem:[%s5981_s8 + $0xc8] sm:$0xff] }
 0x691   : > { %3109 = vmatprep.subr.mxu1 %v3045_v12  ;;  %3180 = vmatprep.subr.mxu0 %v3047_v32  ;;  %v3502_v13 = vld [vmem:[%s5981_s8 + $0x150] sm:$0xff]  ;;  %v3517_v7 = vld [vmem:[%s5981_s8 + $0x1c8] sm:$0xff] }
 0x692   : > { %3110 = vmatpush1.msra.mxu1 %v3044_v61  ;;  %3143 = vmatprep.mubr.f32.mxu1 %v4228_v50  ;;  %v3469_v12 = vld [vmem:[%s5981_s8 + $0x48] sm:$0xff]  ;;  %v3484_v61 = vld [vmem:[%s5981_s8 + $0xc0] sm:$0xff] }
 0x693   : > { %3181 = vmatpush1.msra.mxu0 %v3046_v30  ;;  %3214 = vmatprep.mubr.f32.mxu0 %v4228_v50  ;;  %v3501_v32 = vld [vmem:[%s5981_s8 + $0x148] sm:$0xff]  ;;  %v3516_v30 = vld [vmem:[%s5981_s8 + $0x1c0] sm:$0xff] }
 0x694   : > { %3864 = vmatmul.mubr.msk.f32.vlgmr.msra.gmra.mxu1 %vm1827_vm0, %v3076_v27  ;;  %3865 = vmatmul.mubr.msk.f32.vlgmr.msra.gmra.mxu0 %vm1827_vm0, %v3076_v27  ;;  %v3468_v27 = vld [vmem:[%s5981_s8 + $0x40] sm:$0xff] }
 0x695   : > { %3303 = vmatprep.subr.mxu1 %v3281_v59  ;;  %3374 = vmatprep.subr.mxu0 %v3283_v0  ;;  %v3500_v59 = vld [vmem:[%s5981_s8 + $0x140] sm:$0xff]  ;;  %v3483_v0 = vld [vmem:[%s5981_s8 + $0xb8] sm:$0xff] }
 0x696   : > { %3304 = vmatpush1.msra.mxu1 %v3280_v21  ;;  %3375 = vmatpush1.msra.mxu0 %v3282_v3  ;;  %v3515_v21 = vld [vmem:[%s5981_s8 + $0x1b8] sm:$0xff] }
 0x697   : > { %3305 = vmatprep.subr.mxu1 %v3277_v2  ;;  %3376 = vmatprep.subr.mxu0 %v3279_v60  ;;  %v3467_v3 = vld [vmem:[%s5981_s8 + $0x38] sm:$0xff]  ;;  %v3482_v60 = vld [vmem:[%s5981_s8 + $0xb0] sm:$0xff] }
 0x698   : > { %3306 = vmatpush1.msra.mxu1 %v3276_v10  ;;  %3377 = vmatpush1.msra.mxu0 %v3278_v22  ;;  %v3499_v2 = vld [vmem:[%s5981_s8 + $0x138] sm:$0xff]  ;;  %v3514_v10 = vld [vmem:[%s5981_s8 + $0x1b0] sm:$0xff] }
 0x699   : > { %3307 = vmatprep.subr.mxu1 %v3273_v35  ;;  %3378 = vmatprep.subr.mxu0 %v3275_v45  ;;  %v3466_v22 = vld [vmem:[%s5981_s8 + $0x30] sm:$0xff]  ;;  %v3481_v45 = vld [vmem:[%s5981_s8 + $0xa8] sm:$0xff] }
 0x69a   : > { %3308 = vmatpush1.msra.mxu1 %v3272_v16  ;;  %3379 = vmatpush1.msra.mxu0 %v3274_v42  ;;  %v3498_v35 = vld [vmem:[%s5981_s8 + $0x130] sm:$0xff]  ;;  %v3513_v16 = vld [vmem:[%s5981_s8 + $0x1a8] sm:$0xff] }
 0x69b   : > { %3309 = vmatprep.subr.mxu1 %v3269_v36  ;;  %3380 = vmatprep.subr.mxu0 %v3271_v28  ;;  %v3465_v42 = vld [vmem:[%s5981_s8 + $0x28] sm:$0xff]  ;;  %v3480_v28 = vld [vmem:[%s5981_s8 + $0xa0] sm:$0xff] }
 0x69c   : > { %3310 = vmatpush1.msra.mxu1 %v3268_v48  ;;  %3381 = vmatpush1.msra.mxu0 %v3270_v24  ;;  %v3497_v36 = vld [vmem:[%s5981_s8 + $0x128] sm:$0xff]  ;;  %v3512_v48 = vld [vmem:[%s5981_s8 + $0x1a0] sm:$0xff] }
 0x69d   : > { %3311 = vmatprep.subr.mxu1 %v3265_v34  ;;  %3382 = vmatprep.subr.mxu0 %v3267_v4  ;;  %v3464_v24 = vld [vmem:[%s5981_s8 + $0x20] sm:$0xff]  ;;  %v3479_v4 = vld [vmem:[%s5981_s8 + $0x98] sm:$0xff] }
 0x69e   : > { %3312 = vmatpush1.msra.mxu1 %v3264_v26  ;;  %3383 = vmatpush1.msra.mxu0 %v3266_v62  ;;  %v3496_v34 = vld [vmem:[%s5981_s8 + $0x120] sm:$0xff]  ;;  %v3511_v26 = vld [vmem:[%s5981_s8 + $0x198] sm:$0xff] }
 0x69f   : > { %3313 = vmatprep.subr.mxu1 %v3261_v17  ;;  %3384 = vmatprep.subr.mxu0 %v3263_v51  ;;  %v3463_v62 = vld [vmem:[%s5981_s8 + $0x18] sm:$0xff]  ;;  %v3478_v51 = vld [vmem:[%s5981_s8 + $0x90] sm:$0xff] }
 0x6a0   : > { %3314 = vmatpush1.msra.mxu1 %v3260_v14  ;;  %3385 = vmatpush1.msra.mxu0 %v3262_v54  ;;  %v3495_v17 = vld [vmem:[%s5981_s8 + $0x118] sm:$0xff]  ;;  %v3510_v14 = vld [vmem:[%s5981_s8 + $0x190] sm:$0xff] }
 0x6a1   : > { %3315 = vmatprep.subr.mxu1 %v3257_v58  ;;  %3386 = vmatprep.subr.mxu0 %v3259_v49  ;;  %v3462_v54 = vld [vmem:[%s5981_s8 + $0x10] sm:$0xff]  ;;  %v3477_v49 = vld [vmem:[%s5981_s8 + $0x88] sm:$0xff] }
 0x6a2   : > { %3316 = vmatpush1.msra.mxu1 %v3256_v29  ;;  %3387 = vmatpush1.msra.mxu0 %v3258_v46  ;;  %v3494_v58 = vld [vmem:[%s5981_s8 + $0x110] sm:$0xff]  ;;  %v3509_v29 = vld [vmem:[%s5981_s8 + $0x188] sm:$0xff] }
 0x6a3   : > { %3317 = vmatprep.subr.mxu1 %v3253_v38  ;;  %3388 = vmatprep.subr.mxu0 %v3255_v37  ;;  %v3461_v46 = vld [vmem:[%s5981_s8 + $0x8] sm:$0xff]  ;;  %v3476_v37 = vld [vmem:[%s5981_s8 + $0x80] sm:$0xff] }
 0x6a4   : > { %3318 = vmatpush1.msra.mxu1 %v3252_v40  ;;  %3351 = vmatprep.mubr.f32.mxu1 %v4228_v50  ;;  %v3493_v38 = vld [vmem:[%s5981_s8 + $0x108] sm:$0xff]  ;;  %v3508_v40 = vld [vmem:[%s5981_s8 + $0x180] sm:$0xff] }
 0x6a5   : > { %3389 = vmatpush1.msra.mxu0 %v3254_v39  ;;  %3422 = vmatprep.mubr.f32.mxu0 %v4228_v50  ;;  %v3507_v50 = vld [vmem:[%s5981_s8 + $0x178] sm:$0xff]  ;;  %v3460_v39 = vld [vmem:[%s5981_s8] sm:$0xff] }
 0x6a6   : > { %3866 = vmatmul.mubr.msk.f32.vlgmr.msra.gmra.mxu1 %vm1827_vm0, %v3284_v23  ;;  %3867 = vmatmul.mubr.msk.f32.vlgmr.msra.gmra.mxu0 %vm1827_vm0, %v3284_v23  ;;  %v3492_v23 = vld [vmem:[%s5981_s8 + $0x100] sm:$0xff] }
 0x6a7   : > { %3930 = vmatprep.subr.mxu1 %v3491_v6  ;;  %3965 = vmatprep.subr.mxu0 %v3523_v9 }
 0x6a8   : > { %3931 = vmatpush3.msra.mxu1 %v3475_v11  ;;  %3966 = vmatpush3.msra.mxu0 %v3507_v50 }
 0x6a9   : > { %3932 = vmatprep.subr.mxu1 %v3490_v52  ;;  %3967 = vmatprep.subr.mxu0 %v3522_v8 }
 0x6aa   : > { %3933 = vmatpush3.msra.mxu1 %v3474_v1  ;;  %3968 = vmatpush3.msra.mxu0 %v3506_v33 }
 0x6ab   : > { %3934 = vmatprep.subr.mxu1 %v3489_v41  ;;  %3969 = vmatprep.subr.mxu0 %v3521_v57 }
 0x6ac   : > { %3935 = vmatpush3.msra.mxu1 %v3473_v25  ;;  %3970 = vmatpush3.msra.mxu0 %v3505_v47 }
 0x6ad   : > { %3936 = vmatprep.subr.mxu1 %v3488_v20  ;;  %3971 = vmatprep.subr.mxu0 %v3520_v56 }
 0x6ae   : > { %3937 = vmatpush3.msra.mxu1 %v3472_v19  ;;  %3972 = vmatpush3.msra.mxu0 %v3504_v53  ;;  %v4232_v19 = vmov 1966171168  }
 0x6af   : > { %3938 = vmatprep.subr.mxu1 %v3487_v15  ;;  %3973 = vmatprep.subr.mxu0 %v3519_v5  ;;  %v1980_v53 = vunpack.c.l.s4 %v4232_v19 }
 0x6b0   : > { %3939 = vmatpush3.msra.mxu1 %v3471_v43  ;;  %3974 = vmatpush3.msra.mxu0 %v3503_v31 }
 0x6b1   : > { %3940 = vmatprep.subr.mxu1 %v3486_v18  ;;  %3975 = vmatprep.subr.mxu0 %v3518_v55  ;;  %v1981_v18 = vunpack.c.0.s8 %v1980_v53  ;;  %v6138_v55 = vlaneseq }
 0x6b2   : > { %3941 = vmatpush3.msra.mxu1 %v3470_v44  ;;  %3976 = vmatpush3.msra.mxu0 %v3502_v13 }
 0x6b3   : > { %3942 = vmatprep.subr.mxu1 %v3485_v63  ;;  %3977 = vmatprep.subr.mxu0 %v3517_v7  ;;  %v5900_v44 = vshrl.u32 %v6138_v55, 7 }
 0x6b4   : > { %3943 = vmatpush3.msra.mxu1 %v3469_v12  ;;  %3978 = vmatpush3.msra.mxu0 %v3501_v32 }
 0x6b5   : > { %3944 = vmatprep.subr.mxu1 %v3484_v61  ;;  %3979 = vmatprep.subr.mxu0 %v3516_v30  ;;  %v5903_v12 = vsub.s32 %v1981_v18, %v5900_v44 }
 0x6b6   : > { %3945 = vmatpush3.msra.mxu1 %v3468_v27  ;;  %3980 = vmatpush3.msra.mxu0 %v3500_v59 }
 0x6b7   : > { %3946 = vmatprep.subr.mxu1 %v3483_v0  ;;  %3981 = vmatprep.subr.mxu0 %v3515_v21 }
 0x6b8   : > { %3947 = vmatpush3.msra.mxu1 %v3467_v3  ;;  %3982 = vmatpush3.msra.mxu0 %v3499_v2 }
 0x6b9   : > { %3948 = vmatprep.subr.mxu1 %v3482_v60  ;;  %3983 = vmatprep.subr.mxu0 %v3514_v10 }
 0x6ba   : > { %3949 = vmatpush3.msra.mxu1 %v3466_v22  ;;  %3984 = vmatpush3.msra.mxu0 %v3498_v35 }
 0x6bb   : > { %3950 = vmatprep.subr.mxu1 %v3481_v45  ;;  %3985 = vmatprep.subr.mxu0 %v3513_v16 }
 0x6bc   : > { %3951 = vmatpush3.msra.mxu1 %v3465_v42  ;;  %3986 = vmatpush3.msra.mxu0 %v3497_v36 }
 0x6bd   : > { %3952 = vmatprep.subr.mxu1 %v3480_v28  ;;  %3987 = vmatprep.subr.mxu0 %v3512_v48 }
 0x6be   : > { %3953 = vmatpush3.msra.mxu1 %v3464_v24  ;;  %3988 = vmatpush3.msra.mxu0 %v3496_v34 }
 0x6bf   : > { %3954 = vmatprep.subr.mxu1 %v3479_v4  ;;  %3989 = vmatprep.subr.mxu0 %v3511_v26 }
 0x6c0   : > { %3955 = vmatpush3.msra.mxu1 %v3463_v62  ;;  %3990 = vmatpush3.msra.mxu0 %v3495_v17 }
 0x6c1   : > { %3956 = vmatprep.subr.mxu1 %v3478_v51  ;;  %3991 = vmatprep.subr.mxu0 %v3510_v14 }
 0x6c2   : > { %3957 = vmatpush3.msra.mxu1 %v3462_v54  ;;  %3992 = vmatpush3.msra.mxu0 %v3494_v58 }
 0x6c3   : > { %3958 = vmatprep.subr.mxu1 %v3477_v49  ;;  %3993 = vmatprep.subr.mxu0 %v3509_v29 }
 0x6c4   : > { %3959 = vmatpush3.msra.mxu1 %v3461_v46  ;;  %3994 = vmatpush3.msra.mxu0 %v3493_v38  ;;  %v1794_v46 = vld [vmem:[%s5980_s7] sm:$0xf] }
 0x6c5   : > { %3960 = vmatprep.subr.mxu1 %v3476_v37  ;;  %3995 = vmatprep.subr.mxu0 %v3508_v40 }
 0x6c6   : > { %3961 = vmatpush3.msra.mxu1 %v3460_v39  ;;  %3996 = vmatpush3.msra.mxu0 %v3492_v23 }
 0x6e9   : > { %v1897_v6 = vpop.f32.mrf.mxu1  ;;  %v1968_v9 = vpop.f32.mrf.mxu0 }
 0x6eb   : > { %v1899_v11 = vpop.f32.mrf.mxu1  ;;  %v1970_v50 = vpop.f32.mrf.mxu0 }
 0x6ec   : > { %v1977_v7 = vcombine.low %v1897_v6, %v1899_v11  ;;  %v1978_v32 = vcombine.low %v1968_v9, %v1970_v50 }
 0x6ee   : > { %v1985_v0 = vrot.slane %v1977_v7, %v5903_v12  ;;  %v1992_v21 = vrot.slane %v1978_v32, %v5903_v12 }
 0x6f0   : > { %v1993_v28 = vcombine.low %v1985_v0, %v1992_v21  ;;  %v3532_v0 = vsub.s32 1, %v5900_v44 }
 0x6f2   : > { %v2000_v49 = vrot.slane %v1993_v28, %v5903_v12 }
 0x6f4   : > { %v2002_v50 = vadd.f32 %v2000_v49, %v1794_v46 }
 0x6fa   : > { %v2105_v52 = vpop.f32.mrf.mxu1  ;;  %v2176_v8 = vpop.f32.mrf.mxu0 }
 0x6fc   : > { %v2107_v1 = vpop.f32.mrf.mxu1  ;;  %v2178_v33 = vpop.f32.mrf.mxu0 }
 0x6fd   : > { %v2185_v27 = vcombine.low %v2105_v52, %v2107_v1  ;;  %v2186_v59 = vcombine.low %v2176_v8, %v2178_v33 }
 0x6ff   : > { %v2193_v22 = vrot.slane %v2185_v27, %v5903_v12  ;;  %v2200_v35 = vrot.slane %v2186_v59, %v5903_v12 }
 0x701   : > { %v2201_v26 = vcombine.low %v2193_v22, %v2200_v35 }
 0x703   : > { %v2208_v23 = vrot.slane %v2201_v26, %v5903_v12 }
 0x70c   : > { %v2313_v41 = vpop.f32.mrf.mxu1  ;;  %v2384_v57 = vpop.f32.mrf.mxu0 }
 0x70e   : > { %v2315_v25 = vpop.f32.mrf.mxu1  ;;  %v2386_v47 = vpop.f32.mrf.mxu0 }
 0x70f   : > { %v2393_v3 = vcombine.low %v2313_v41, %v2315_v25  ;;  %v2394_v2 = vcombine.low %v2384_v57, %v2386_v47  ;;  %v2210_v41 = vadd.f32 %v2208_v23, %v2002_v50 }
 0x711   : > { %v2401_v48 = vrot.slane %v2393_v3, %v5903_v12  ;;  %v2408_v24 = vrot.slane %v2394_v2, %v5903_v12  ;;  %v3540_v3 = vsub.s32 3, %v5900_v44  ;;  %v3528_v2 = vsub.s32 0, %v5900_v44 }
 0x713   : > { %v2409_v29 = vcombine.low %v2401_v48, %v2408_v24 }
 0x715   : > { %v2416_v52 = vrot.slane %v2409_v29, %v5903_v12 }
 0x71e   : > { %v2521_v20 = vpop.f32.mrf.mxu1  ;;  %v2592_v56 = vpop.f32.mrf.mxu0 }
 0x720   : > { %v2523_v15 = vpop.f32.mrf.mxu1  ;;  %v2594_v5 = vpop.f32.mrf.mxu0 }
 0x721   : > { %v2601_v42 = vcombine.low %v2521_v20, %v2523_v15  ;;  %v2602_v36 = vcombine.low %v2592_v56, %v2594_v5  ;;  %v2418_v56 = vadd.f32 %v2416_v52, %v2210_v41 }
 0x723   : > { %v2609_v51 = vrot.slane %v2601_v42, %v5903_v12  ;;  %v2616_v14 = vrot.slane %v2602_v36, %v5903_v12  ;;  %v3524_v36 = vld [vmem:[%s5982_s9] sm:$0x1] }
 0x725   : > { %v2617_v6 = vcombine.low %v2609_v51, %v2616_v14 }
 0x727   : > { %v2624_v57 = vrot.slane %v2617_v6, %v5903_v12 }
 0x730   : > { %v2729_v43 = vpop.f32.mrf.mxu1  ;;  %v2800_v31 = vpop.f32.mrf.mxu0 }
 0x732   : > { %v2731_v13 = vpop.f32.mrf.mxu1  ;;  %v2802_v63 = vpop.f32.mrf.mxu0 }
 0x733   : > { %v2809_v34 = vcombine.low %v2729_v43, %v2731_v13  ;;  %v2810_v4 = vcombine.low %v2800_v31, %v2802_v63  ;;  %v2626_v43 = vadd.f32 %v2624_v57, %v2418_v56 }
 0x735   : > { %v2817_v38 = vrot.slane %v2809_v34, %v5903_v12  ;;  %v2824_v37 = vrot.slane %v2810_v4, %v5903_v12 }
 0x737   : > { %v2825_v8 = vcombine.low %v2817_v38, %v2824_v37 }
 0x739   : > { %v2832_v19 = vrot.slane %v2825_v8, %v5903_v12 }
 0x73b   : > { %v2834_v13 = vadd.f32 %v2832_v19, %v2626_v43 }
 0x742   : > { %v2937_v61 = vpop.f32.mrf.mxu1  ;;  %v3008_v30 = vpop.f32.mrf.mxu0 }
 0x744   : > { %v2939_v60 = vpop.f32.mrf.mxu1  ;;  %v3010_v10 = vpop.f32.mrf.mxu0 }
 0x745   : > { %v3017_v54 = vcombine.low %v2937_v61, %v2939_v60  ;;  %v3018_v58 = vcombine.low %v3008_v30, %v3010_v10  ;;  %v3536_v60 = vsub.s32 2, %v5900_v44 }
 0x747   : > { %v3025_v9 = vrot.slane %v3017_v54, %v5903_v12  ;;  %v3032_v11 = vrot.slane %v3018_v58, %v5903_v12 }
 0x749   : > { %v3033_v25 = vcombine.low %v3025_v9, %v3032_v11 }
 0x74b   : > { %v3040_v31 = vrot.slane %v3033_v25, %v5903_v12 }
 0x74d   : > { %v3042_v61 = vadd.f32 %v3040_v31, %v2834_v13 }
 0x754   : > { %v3145_v45 = vpop.f32.mrf.mxu1  ;;  %v3216_v16 = vpop.f32.mrf.mxu0 }
 0x756   : > { %v3147_v62 = vpop.f32.mrf.mxu1  ;;  %v3218_v17 = vpop.f32.mrf.mxu0 }
 0x757   : > { %v3225_v40 = vcombine.low %v3145_v45, %v3147_v62  ;;  %v3226_v39 = vcombine.low %v3216_v16, %v3218_v17 }
 0x759   : > { %v3233_v1 = vrot.slane %v3225_v40, %v5903_v12  ;;  %v3240_v33 = vrot.slane %v3226_v39, %v5903_v12 }
 0x75b   : > { %v3241_v53 = vcombine.low %v3233_v1, %v3240_v33 }
 0x75d   : > { %v3248_v63 = vrot.slane %v3241_v53, %v5903_v12 }
 0x75f   : > { %v3250_v27 = vadd.f32 %v3248_v63, %v3042_v61 }
 0x766   : > { %v3353_v47 = vpop.f32.mrf.mxu1  ;;  %v3424_v20 = vpop.f32.mrf.mxu0 }
 0x768   : > { %v3355_v15 = vpop.f32.mrf.mxu1  ;;  %v3426_v5 = vpop.f32.mrf.mxu0 }
 0x769   : > { %v3433_v18 = vcombine.low %v3353_v47, %v3355_v15  ;;  %v3434_v55 = vcombine.low %v3424_v20, %v3426_v5 }
 0x76b   : > { %v3441_v7 = vrot.slane %v3433_v18, %v5903_v12  ;;  %v3448_v32 = vrot.slane %v3434_v55, %v5903_v12 }
 0x76d   : > { %v3449_v30 = vcombine.low %v3441_v7, %v3448_v32 }
 0x76f   : > { %v3456_v59 = vrot.slane %v3449_v30, %v5903_v12 }
 0x771   : > { %v3458_v21 = vadd.f32 %v3456_v59, %v3250_v27 }
 0x773   : > { %v3459_v10 = vmax.f32 %v3458_v21, 0.0 }
 0x775   : > { %v3533_v22 = vrot.slane %v3459_v10, %v3532_v0  ;;  %v3541_v35 = vrot.slane %v3459_v10, %v3540_v3  ;;  %v3529_v45 = vrot.slane %v3459_v10, %v3528_v2  ;;  %v3537_v16 = vrot.slane %v3459_v10, %v3536_v60 }
 0x777   : > { %3610 = vmatprep.mubr.f32.mxu1 %v3533_v22  ;;  %3680 = vmatprep.mubr.f32.mxu0 %v3541_v35 }
 0x778   : > { %3611 = vmatmul.mubr.f32.vlgmr.msra.gmra.mxu1 %v3529_v45  ;;  %3681 = vmatmul.mubr.f32.vlgmr.msra.gmra.mxu0 %v3537_v16 }
 0x838   : > { %v3962_v12 = vpop.f32.mrf.mxu1  ;;  %v3997_v42 = vpop.f32.mrf.mxu0 }
 0x83a   : > { %v3963_v28 = vpop.f32.mrf.mxu1  ;;  %v3998_v44 = vpop.f32.mrf.mxu0 }
 0x83b   : > { %v3964_v48 = vadd.f32 %v3963_v28, %v3962_v12  ;;  %v3999_v34 = vadd.f32 %v3998_v44, %v3997_v42 }
 0x83d   : > { %v3613_v24 = vadd.f32 %v3964_v48, %v3524_v36 }
 0x83f   : > { %v3683_v4 = vadd.f32 %v3999_v34, %v3613_v24 }
 0x841   : > { %3687 = vst.msk [vmem:[%s380_s22] sm:$0x1] %vm3686_vm1, %v3683_v4 }
 0x842   : > { %4165 = shalt.err (!%p4162_p1)
}
 0x843   : > { %s4166_s28 = scalar_lea.hbm %s3699_s18, 16  ;;  %s4170_s1 = scalar_lea.hbm %s5983_s10, 32 }
 0x844   : > { %p4167_p2 = scmp.ne.s32.totalorder %s3699_s18, %s4166_s28  ;;  %p4171_p5 = scmp.lt.s32.totalorder %s3699_s18, %s5983_s10 }
 0x845   : > { %p4172_p6 = scmp.lt.s32.totalorder %s4170_s1, %s4166_s28 }
 0x846   : > { %p4168_p3 = pnand %p4167_p2, %p6139_p0 }
 0x847   : > { %p4173_p10 = por %p4172_p6, %p4171_p5 }
 0x848   : > { %p4169_p9 = pneg %p4168_p3 }
 0x84a   : > { %p4174_p12 = pnand %p4173_p10, %p4169_p9 }
 0x84c   : > { %4177 = shalt.err (!%p4174_p12)
}
 0x84d   : > { %4050 = dma.vmem_to_hbm [thread:$0]  (%p6139_p0), %s3702_s20, 16, %s3699_s18, %s3689_s29  }
 0x84e PF: > { %p4067_p4 = scmp.ge.s32.totalorder %s4220_s16, 2  ;;  %s3713_s6 = sand.u32 1, %s4208_s13  }
 0x84f   : > { %p6140_p7 = scmp.ne.s32.totalorder %s6003_s24, 0  ;;  %s3714_s11 = scalar_lea.sflag [#allocation4], %s3713_s6 }
 0x851   : > { %p4060_p8 = pnand %p4067_p4, %p6140_p7 }
 0x853   : > { %p4061_p11 = pneg %p4060_p8 }
 0x855   : > { %4203 = dma.done.wait (%p4061_p11), %s3714_s11, 16  }
 0x856   : > { %4205 = vsyncadd (%p4061_p11), %s3714_s11, 4294967280  ;;  %s6141_s22 = sld [smem:[#allocation11_spill]]  ;;  %p22_p13 = scmp.ge.s32.totalorder %s4314_s19, 4  }
 0x857   : > { %s6142_s13 = smov %s4212_s14  ;;  %s6143_s14 = smov %s4216_s15 }
 0x858   : > { %s6145_s16 = smov %s4314_s19  ;;  %24 = sbr.rel (!%p22_p13) target bundleno = 11 (0xb), region = 112 }
 0x85c   : > { %s6144_s15 = smov %s6141_s22 }
 0x85d   :  { %3718 = vsyncpa [#allocation3], 1 }
 0x85e   :  { %3720 = vsyncpa [#allocation3 + $0x1], 1 }
 0x85f   :  { %3721 = vsyncpa [#allocation4], 1 }
 0x860   :  { %3723 = vsyncpa [#allocation4 + $0x1], 1 }
 0x861   :  { %3724 = vsyncpa [#allocation5], 1 }
 0x862   :  { %3726 = vsyncpa [#allocation5 + $0x1], 1 }

</bundles_post_ra>
